<compile_context>
chip_gen: v7x
topology: tpu7x:2x2x1
jax: 0.10.0
libtpu: 0.0.40
codegen_flags: <defaults>
</compile_context>

<pallas_src>
import functools

import jax
import jax.numpy as jnp
from jax import lax
from jax.experimental import pallas as pl
from jax.experimental.pallas import tpu as pltpu

LSTM_UNITS = 32                      # H (scaled down from 128 for the small test)
DENSE_HIDDEN_UNITS = 4 * LSTM_UNITS  # concat(max_pool, avg_pool) width
EMBED_SIZE = 128                     # embedding_matrix.shape[1]
VOCAB = 64                           # word_index
NUM_AUX = 6                          # num_aux_targets
OUT_PAD = 128                        # lane-dense padded head-output width


# ------------------------- fused forward kernel -------------------------
def _fused_forward_kernel(x_ref,                        # (S*bt, E) bf16, time-major
                          wih1_ref, whh1_ref, b1_ref,   # (E,8H) bf16, (2H,8H) bf16, (1,8H) f32
                          wih2_ref, whh2_ref, b2_ref,   # (2H,8H) bf16, (2H,8H) bf16, (1,8H) f32
                          w12_ref, b12_ref,             # (4H,8H) f32, (1,8H) f32
                          woa_ref, boa_ref,             # (4H,128) f32, (1,128) f32 (padded)
                          out_ref,                      # (bt, 128) f32
                          xp_scr,                       # (S*bt, 8H) f32 — reused by both layers
                          h1_scr, h2_scr):              # (S*bt, 2H) bf16 each
    SB = x_ref.shape[0]
    bt = out_ref.shape[0]
    S = SB // bt
    H = h1_scr.shape[-1] // 2
    G = 8 * H                          # interleaved gate width (both directions)
    D = 4 * H                          # DENSE_HIDDEN_UNITS

    # Forward-direction lanes inside each interleaved [gate_f | gate_b] block.
    fwd_gate_lanes = (lax.broadcasted_iota(jnp.int32, (bt, G), 1) % (2 * H)) < H
    bwd_h_lanes = lax.broadcasted_iota(jnp.int32, (bt, 2 * H), 1) >= H

    def run_layer(x_in, wih_ref, whh_ref, b_ref, h_scr, align_output):
        # ---- hoisted input projection: one matmul for all timesteps & both
        # directions (bf16 operands, f32 accumulate) ----
        xp_scr[...] = jnp.dot(x_in, wih_ref[...],
                              preferred_element_type=jnp.float32)

        # ---- hoisted direction select: swap the backward-gate lanes of rows
        # t and S-1-t so each serial step loads a single (bt, 8H) slab ----
        for t in range(S // 2):
            tr = S - 1 - t
            a = xp_scr[pl.ds(t * bt, bt), :]
            b = xp_scr[pl.ds(tr * bt, bt), :]
            xp_scr[pl.ds(t * bt, bt), :] = jnp.where(fwd_gate_lanes, a, b)
            xp_scr[pl.ds(tr * bt, bt), :] = jnp.where(fwd_gate_lanes, b, a)

        whh = whh_ref[...]                                # hoisted load (bf16)
        bias = jnp.broadcast_to(b_ref[...], (bt, G))      # hoisted broadcast (f32)

        def step(t, carry):
            h, c = carry                                  # f32 (bt, 2H): [fwd|bwd]
            g = (xp_scr[pl.ds(t * bt, bt), :]
                 + jnp.dot(h.astype(jnp.bfloat16), whh,
                           preferred_element_type=jnp.float32)
                 + bias)
            # gate layout: [i_f|i_b|f_f|f_b|o_f|o_b|g_f|g_b]
            sig = jax.nn.sigmoid(g[:, :6 * H])            # one EUP region (i, f, o)
            gg = jnp.tanh(g[:, 6 * H:])                   # one EUP region (g)
            i_g = sig[:, :2 * H]
            f_g = sig[:, 2 * H:4 * H]
            o_g = sig[:, 4 * H:6 * H]
            c = f_g * c + i_g * gg
            h = o_g * jnp.tanh(c)
            # one contiguous (bt, 2H) store per step; fwd half is for time t,
            # bwd half is for time S-1-t (fixed up after the loop if needed).
            h_scr[pl.ds(t * bt, bt), :] = h.astype(h_scr.dtype)
            return h, c

        z = jnp.zeros((bt, 2 * H), jnp.float32)
        lax.fori_loop(0, S, step, (z, z), unroll=True)

        if align_output:
            # row t holds [h_fwd(t) | h_bwd(S-1-t)] -> swap bwd columns so that
            # row t becomes [h_fwd(t) | h_bwd(t)] (needed as layer-2 input).
            for t in range(S // 2):
                tr = S - 1 - t
                a = h_scr[pl.ds(t * bt, bt), :]
                b = h_scr[pl.ds(tr * bt, bt), :]
                h_scr[pl.ds(t * bt, bt), :] = jnp.where(bwd_h_lanes, b, a)
                h_scr[pl.ds(tr * bt, bt), :] = jnp.where(bwd_h_lanes, a, b)

    # SpatialDropout(0.3) is identity at inference time.
    run_layer(x_ref[...], wih1_ref, whh1_ref, b1_ref, h1_scr, align_output=True)
    # layer 2 input is the single (S*bt, 2H) bf16 hidden buffer — no concatenate.
    run_layer(h1_scr[...], wih2_ref, whh2_ref, b2_ref, h2_scr, align_output=False)
    # (h2 alignment skipped: mean/max pooling over time is order-invariant.)

    # ---- pooling over time (f32 accumulation) + dense head ----
    v0 = h2_scr[pl.ds(0, bt), :].astype(jnp.float32)
    s_acc, m_acc = v0, v0
    for s in range(1, S):
        v = h2_scr[pl.ds(s * bt, bt), :].astype(jnp.float32)
        s_acc = s_acc + v
        m_acc = jnp.maximum(m_acc, v)
    # torch: h_conc = cat(max_pool, avg_pool); features inside each are [fwd|bwd].
    h_conc = jnp.concatenate([m_acc, s_acc * (1.0 / S)], axis=1)      # (bt, 4H)

    # merged dense layers: one dot for [W1|W2], one dot for [Wout|Waux] (padded
    # to 128 output lanes -> unmasked lane-dense store).
    z12 = (jnp.dot(h_conc, w12_ref[...], preferred_element_type=jnp.float32)
           + b12_ref[...])
    hidden = h_conc + jnp.maximum(z12[:, :D], 0.0) + jnp.maximum(z12[:, D:], 0.0)
    out_ref[...] = (jnp.dot(hidden, woa_ref[...],
                            preferred_element_type=jnp.float32) + boa_ref[...])


# ------------------------- weight packing (wrapper) -------------------------
def _interleave_gate_cols(mf, mb, H):
    """Pack gate columns as [i_f|i_b|f_f|f_b|o_f|o_b|g_f|g_b].

    PyTorch/nn.LSTM column order inside mf/mb is (i, f, g, o); we reorder so the
    three sigmoid gates are contiguous (one EUP push) and tanh's gate is last.
    """
    order = (0, 1, 3, 2)   # i, f, o, g
    return jnp.concatenate(
        [m[:, k * H:(k + 1) * H] for k in order for m in (mf, mb)], axis=1)


def _pack_bidir_lstm(p, H):
    wih = _interleave_gate_cols(p["wih_f"], p["wih_b"], H)        # (Din, 8H)
    z = jnp.zeros_like(p["whh_f"])
    whh = jnp.concatenate(
        [_interleave_gate_cols(p["whh_f"], z, H),                 # h_fwd rows
         _interleave_gate_cols(z, p["whh_b"], H)], axis=0)        # h_bwd rows
    b = _interleave_gate_cols(p["b_f"], p["b_b"], H)              # (1, 8H)
    return wih, whh, b


# ------------------------------- forward -------------------------------
def neural_net_fastai_forward(x_ids, params, *, batch_tile=None):
    B, S = x_ids.shape
    H = LSTM_UNITS
    E = params["embedding"].shape[1]
    f32, bf16 = jnp.float32, jnp.bfloat16

    bt = B if batch_tile is None else batch_tile
    assert B % bt == 0, (B, bt)
    nt = B // bt

    # Embedding gather in the wrapper: the table never enters VMEM (scales to
    # real vocab sizes); gathered activations stream in via the BlockSpec.
    x = jnp.take(params["embedding"], x_ids, axis=0)              # (B, S, E) f32
    x = (x.astype(bf16)
           .reshape(nt, bt, S, E)
           .transpose(0, 2, 1, 3)                                 # time-major per tile
           .reshape(nt, S * bt, E))

    wih1, whh1, b1 = _pack_bidir_lstm(params["lstm1"], H)
    wih2, whh2, b2 = _pack_bidir_lstm(params["lstm2"], H)
    w12 = jnp.concatenate([params["w1"], params["w2"]], axis=1)   # (4H, 8H)
    b12 = jnp.concatenate([params["b1"], params["b2"]], axis=1)   # (1, 8H)
    woa = jnp.concatenate([params["wo"], params["wa"]], axis=1)   # (4H, 1+AUX)
    boa = jnp.concatenate([params["bo"], params["ba"]], axis=1)   # (1, 1+AUX)
    n_out = woa.shape[1]
    woa = jnp.pad(woa, ((0, 0), (0, OUT_PAD - n_out)))            # lane-dense head
    boa = jnp.pad(boa, ((0, 0), (0, OUT_PAD - n_out)))

    weights = (wih1.astype(bf16), whh1.astype(bf16), b1,
               wih2.astype(bf16), whh2.astype(bf16), b2,
               w12, b12, woa, boa)

    def wspec(a):
        zeros = (0,) * a.ndim
        return pl.BlockSpec(a.shape, lambda i: zeros)

    out = pl.pallas_call(
        _fused_forward_kernel,
        out_shape=jax.ShapeDtypeStruct((nt, bt, OUT_PAD), f32),
        grid_spec=pltpu.PrefetchScalarGridSpec(
            num_scalar_prefetch=0,
            grid=(nt,),                                   # batch tiles
            in_specs=[pl.BlockSpec((None, S * bt, E), lambda i: (i, 0, 0))]
                     + [wspec(a) for a in weights],
            out_specs=pl.BlockSpec((None, bt, OUT_PAD), lambda i: (i, 0, 0)),
            scratch_shapes=[
                pltpu.VMEM((S * bt, 8 * H), f32),    # gate pre-acts (reused by both layers)
                pltpu.VMEM((S * bt, 2 * H), bf16),   # layer-1 hidden sequence [fwd|bwd]
                pltpu.VMEM((S * bt, 2 * H), bf16),   # layer-2 hidden sequence [fwd|bwd]
            ]),
        compiler_params=pltpu.CompilerParams(
            dimension_semantics=("parallel",),       # v7x: TCs split batch tiles
            vmem_limit_bytes=32 * 1024 * 1024),
    )(x, *weights)

    return out.reshape(B, OUT_PAD)[:, :n_out]


# ------------------------- params & pure-JAX reference -------------------------
def init_params(key):
    ks = jax.random.split(key, 11)

    def nrm(k, shape, scale=0.1):
        return scale * jax.random.normal(k, shape, jnp.float32)

    H = LSTM_UNITS
    D = DENSE_HIDDEN_UNITS

    def lstm_params(kbase, din):
        k = jax.random.split(kbase, 6)
        return {"wih_f": nrm(k[0], (din, 4 * H)),
                "whh_f": nrm(k[1], (H, 4 * H)),
                "b_f":   nrm(k[2], (1, 4 * H)),
                "wih_b": nrm(k[3], (din, 4 * H)),
                "whh_b": nrm(k[4], (H, 4 * H)),
                "b_b":   nrm(k[5], (1, 4 * H))}

    return {
        "embedding": nrm(ks[0], (VOCAB, EMBED_SIZE), 1.0),
        "lstm1": lstm_params(ks[1], EMBED_SIZE),
        "lstm2": lstm_params(ks[2], 2 * H),
        "w1": nrm(ks[3], (D, D)), "b1": nrm(ks[4], (1, D)),
        "w2": nrm(ks[5], (D, D)), "b2": nrm(ks[6], (1, D)),
        "wo": nrm(ks[7], (D, 1)), "bo": nrm(ks[8], (1, 1)),
        "wa": nrm(ks[9], (D, NUM_AUX)), "ba": nrm(ks[10], (1, NUM_AUX)),
    }


def _lstm_dir_ref(x_tm, wih, whh, b):
    H = whh.shape[0]
    B = x_tm.shape[1]

    def step(carry, xt):
        h, c = carry
        g = xt @ wih + h @ whh + b
        i = jax.nn.sigmoid(g[:, :H])
        f = jax.nn.sigmoid(g[:, H:2 * H])
        gg = jnp.tanh(g[:, 2 * H:3 * H])
        o = jax.nn.sigmoid(g[:, 3 * H:])
        c = f * c + i * gg
        h = o * jnp.tanh(c)
        return (h, c), h

    z = jnp.zeros((B, H), jnp.float32)
    _, hs = lax.scan(step, (z, z), x_tm)
    return hs


def _forward_ref(x_ids, params):
    emb = params["embedding"][x_ids]
    x_tm = jnp.transpose(emb, (1, 0, 2))

    def bi(x, p):
        hf = _lstm_dir_ref(x, p["wih_f"], p["whh_f"], p["b_f"])
        hb = _lstm_dir_ref(x[::-1], p["wih_b"], p["whh_b"], p["b_b"])[::-1]
        return jnp.concatenate([hf, hb], axis=-1)

    h2 = bi(bi(x_tm, params["lstm1"]), params["lstm2"])
    avg_pool = jnp.mean(h2, axis=0)
    max_pool = jnp.max(h2, axis=0)
    h_conc = jnp.concatenate([max_pool, avg_pool], axis=1)
    l1 = jax.nn.relu(h_conc @ params["w1"] + params["b1"])
    l2 = jax.nn.relu(h_conc @ params["w2"] + params["b2"])
    hidden = h_conc + l1 + l2
    result = hidden @ params["wo"] + params["bo"]
    aux = hidden @ params["wa"] + params["ba"]
    return jnp.concatenate([result, aux], axis=1)


if __name__ == "__main__":
    B, S = 4, 8
    key = jax.random.PRNGKey(0)
    k_p, k_x = jax.random.split(key)
    params = init_params(k_p)
    x_ids = jax.random.randint(k_x, (B, S), 0, VOCAB, dtype=jnp.int32)

    fwd = jax.jit(functools.partial(neural_net_fastai_forward, batch_tile=2))
    out = jax.block_until_ready(fwd(x_ids, params))
    assert out.shape == (B, 1 + NUM_AUX), out.shape

    ref = _forward_ref(x_ids, params)
    # Kernel runs bf16 MXU operands (f32 accumulate); the f32 reference uses
    # default precision — differences at the ~1e-2 scale are expected.
    assert jnp.allclose(out, ref, atol=3e-2, rtol=3e-2), (
        "mismatch vs pure-JAX reference: "
        f"max abs diff {float(jnp.max(jnp.abs(out - ref)))}")

    print("KERNEL_OK")
</pallas_src>

<mosaic_0001>
module attributes {stable_mosaic.version = 11 : i64} {
  func.func @_fused_forward_kernel(%arg0: i32, %arg1: memref<1x16x128xbf16, #tpu.memory_space<vmem>>, %arg2: memref<128x256xbf16, #tpu.memory_space<vmem>>, %arg3: memref<64x256xbf16, #tpu.memory_space<vmem>>, %arg4: memref<1x256xf32, #tpu.memory_space<vmem>>, %arg5: memref<64x256xbf16, #tpu.memory_space<vmem>>, %arg6: memref<64x256xbf16, #tpu.memory_space<vmem>>, %arg7: memref<1x256xf32, #tpu.memory_space<vmem>>, %arg8: memref<128x256xf32, #tpu.memory_space<vmem>>, %arg9: memref<1x256xf32, #tpu.memory_space<vmem>>, %arg10: memref<128x128xf32, #tpu.memory_space<vmem>>, %arg11: memref<1x128xf32, #tpu.memory_space<vmem>>, %arg12: memref<1x2x128xf32, #tpu.memory_space<vmem>>, %arg13: memref<16x256xf32, #tpu.memory_space<vmem>>, %arg14: memref<16x64xbf16, #tpu.memory_space<vmem>>, %arg15: memref<16x64xbf16, #tpu.memory_space<vmem>>) attributes {dimension_semantics = [#tpu.dimension_semantics<parallel>], iteration_bounds = array<i64: 2>, scalar_prefetch = 0 : i64, scratch_operands = 3 : i64, tpu.core_type = #tpu.core_type<tc>, window_params = [{transform_indices = @transform_0, window_bounds = array<i64: 1, 16, 128>}, {pipeline_mode = #tpu.pipeline_mode<synchronous>, transform_indices = @transform_1, window_bounds = array<i64: 128, 256>}, {pipeline_mode = #tpu.pipeline_mode<synchronous>, transform_indices = @transform_2, window_bounds = array<i64: 64, 256>}, {pipeline_mode = #tpu.pipeline_mode<synchronous>, transform_indices = @transform_3, window_bounds = array<i64: 1, 256>}, {pipeline_mode = #tpu.pipeline_mode<synchronous>, transform_indices = @transform_4, window_bounds = array<i64: 64, 256>}, {pipeline_mode = #tpu.pipeline_mode<synchronous>, transform_indices = @transform_5, window_bounds = array<i64: 64, 256>}, {pipeline_mode = #tpu.pipeline_mode<synchronous>, transform_indices = @transform_6, window_bounds = array<i64: 1, 256>}, {pipeline_mode = #tpu.pipeline_mode<synchronous>, transform_indices = @transform_7, window_bounds = array<i64: 128, 256>}, {pipeline_mode = #tpu.pipeline_mode<synchronous>, transform_indices = @transform_8, window_bounds = array<i64: 1, 256>}, {pipeline_mode = #tpu.pipeline_mode<synchronous>, transform_indices = @transform_9, window_bounds = array<i64: 128, 128>}, {pipeline_mode = #tpu.pipeline_mode<synchronous>, transform_indices = @transform_10, window_bounds = array<i64: 1, 128>}, {transform_indices = @transform_11, window_bounds = array<i64: 1, 2, 128>}]} {
    %0 = tpu.iota {dimensions = array<i32: 1>} : vector<2x256xi32>
    %c64_i32 = arith.constant 64 : i32
    %c0_i32 = arith.constant 0 : i32
    %1 = arith.cmpi eq, %c64_i32, %c0_i32 : i32
    %c1_i32 = arith.constant 1 : i32
    %2 = arith.select %1, %c1_i32, %c64_i32 : i32
    %3 = vector.broadcast %2 : i32 to vector<2x256xi32>
    %4 = arith.remsi %0, %3 : vector<2x256xi32>
    %c0_i32_0 = arith.constant 0 : i32
    %5 = vector.broadcast %c0_i32_0 : i32 to vector<2x256xi32>
    %6 = arith.cmpi ne, %4, %5 : vector<2x256xi32>
    %c0_i32_1 = arith.constant 0 : i32
    %7 = vector.broadcast %c0_i32_1 : i32 to vector<2x256xi32>
    %8 = arith.cmpi slt, %4, %7 : vector<2x256xi32>
    %c0_i32_2 = arith.constant 0 : i32
    %9 = arith.cmpi slt, %2, %c0_i32_2 : i32
    %10 = vector.broadcast %9 : i1 to vector<2x256xi1>
    %11 = vector.broadcast %10 : vector<2x256xi1> to vector<2x256xi1>
    %12 = arith.xori %8, %11 : vector<2x256xi1>
    %13 = arith.andi %12, %6 : vector<2x256xi1>
    %14 = vector.broadcast %2 : i32 to vector<2x256xi32>
    %15 = arith.addi %4, %14 : vector<2x256xi32>
    %16 = arith.select %13, %15, %4 : vector<2x256xi1>, vector<2x256xi32>
    %c32_i32 = arith.constant 32 : i32
    %17 = vector.broadcast %c32_i32 : i32 to vector<2x256xi32>
    %18 = arith.cmpi slt, %16, %17 : vector<2x256xi32>
    %19 = tpu.iota {dimensions = array<i32: 1>} : vector<2x64xi32>
    %c32_i32_3 = arith.constant 32 : i32
    %20 = vector.broadcast %c32_i32_3 : i32 to vector<2x64xi32>
    %21 = arith.cmpi sge, %19, %20 : vector<2x64xi32>
    %c0 = arith.constant 0 : index
    %c0_4 = arith.constant 0 : index
    %c0_5 = arith.constant 0 : index
    %22 = vector.load %arg1[%c0, %c0_4, %c0_5] : memref<1x16x128xbf16, #tpu.memory_space<vmem>>, vector<1x16x128xbf16>
    %23 = vector.shape_cast %22 : vector<1x16x128xbf16> to vector<16x128xbf16>
    %c0_6 = arith.constant 0 : index
    %c0_7 = arith.constant 0 : index
    %24 = vector.load %arg2[%c0_6, %c0_7] : memref<128x256xbf16, #tpu.memory_space<vmem>>, vector<128x256xbf16>
    %cst = arith.constant dense<0.000000e+00> : vector<16x256xf32>
    %25 = tpu.matmul %23, %24, %cst {dimension_numbers = #tpu.dot_dimension_numbers<[1], [0], [0], [1], [0, 0, 1, 1], [], []>} : vector<16x128xbf16>, vector<128x256xbf16>, vector<16x256xf32> -> vector<16x256xf32>
    %c0_8 = arith.constant 0 : index
    %c0_9 = arith.constant 0 : index
    %26 = vector.load %arg13[%c0_8, %c0_9] : memref<16x256xf32, #tpu.memory_space<vmem>>, vector<16x256xf32>
    tpu.vector_store %arg13[%c0_8, %c0_9], %25 {strides = array<i32>} : memref<16x256xf32, #tpu.memory_space<vmem>>, vector<16x256xf32>,
    %c0_10 = arith.constant 0 : index
    %c0_11 = arith.constant 0 : index
    %27 = vector.load %arg13[%c0_10, %c0_11] : memref<16x256xf32, #tpu.memory_space<vmem>>, vector<2x256xf32>
    %c14 = arith.constant 14 : index
    %c0_12 = arith.constant 0 : index
    %28 = vector.load %arg13[%c14, %c0_12] : memref<16x256xf32, #tpu.memory_space<vmem>>, vector<2x256xf32>
    %29 = arith.select %18, %27, %28 : vector<2x256xi1>, vector<2x256xf32>
    %c0_13 = arith.constant 0 : index
    %c0_14 = arith.constant 0 : index
    %30 = vector.load %arg13[%c0_13, %c0_14] : memref<16x256xf32, #tpu.memory_space<vmem>>, vector<2x256xf32>
    tpu.vector_store %arg13[%c0_13, %c0_14], %29 {strides = array<i32>} : memref<16x256xf32, #tpu.memory_space<vmem>>, vector<2x256xf32>,
    %31 = arith.select %18, %28, %27 : vector<2x256xi1>, vector<2x256xf32>
    %c14_15 = arith.constant 14 : index
    %c0_16 = arith.constant 0 : index
    %32 = vector.load %arg13[%c14_15, %c0_16] : memref<16x256xf32, #tpu.memory_space<vmem>>, vector<2x256xf32>
    tpu.vector_store %arg13[%c14_15, %c0_16], %31 {strides = array<i32>} : memref<16x256xf32, #tpu.memory_space<vmem>>, vector<2x256xf32>,
    %c2 = arith.constant 2 : index
    %c0_17 = arith.constant 0 : index
    %33 = vector.load %arg13[%c2, %c0_17] : memref<16x256xf32, #tpu.memory_space<vmem>>, vector<2x256xf32>
    %c12 = arith.constant 12 : index
    %c0_18 = arith.constant 0 : index
    %34 = vector.load %arg13[%c12, %c0_18] : memref<16x256xf32, #tpu.memory_space<vmem>>, vector<2x256xf32>
    %35 = arith.select %18, %33, %34 : vector<2x256xi1>, vector<2x256xf32>
    %c2_19 = arith.constant 2 : index
    %c0_20 = arith.constant 0 : index
    %36 = vector.load %arg13[%c2_19, %c0_20] : memref<16x256xf32, #tpu.memory_space<vmem>>, vector<2x256xf32>
    tpu.vector_store %arg13[%c2_19, %c0_20], %35 {strides = array<i32>} : memref<16x256xf32, #tpu.memory_space<vmem>>, vector<2x256xf32>,
    %37 = arith.select %18, %34, %33 : vector<2x256xi1>, vector<2x256xf32>
    %c12_21 = arith.constant 12 : index
    %c0_22 = arith.constant 0 : index
    %38 = vector.load %arg13[%c12_21, %c0_22] : memref<16x256xf32, #tpu.memory_space<vmem>>, vector<2x256xf32>
    tpu.vector_store %arg13[%c12_21, %c0_22], %37 {strides = array<i32>} : memref<16x256xf32, #tpu.memory_space<vmem>>, vector<2x256xf32>,
    %c4 = arith.constant 4 : index
    %c0_23 = arith.constant 0 : index
    %39 = vector.load %arg13[%c4, %c0_23] : memref<16x256xf32, #tpu.memory_space<vmem>>, vector<2x256xf32>
    %c10 = arith.constant 10 : index
    %c0_24 = arith.constant 0 : index
    %40 = vector.load %arg13[%c10, %c0_24] : memref<16x256xf32, #tpu.memory_space<vmem>>, vector<2x256xf32>
    %41 = arith.select %18, %39, %40 : vector<2x256xi1>, vector<2x256xf32>
    %c4_25 = arith.constant 4 : index
    %c0_26 = arith.constant 0 : index
    %42 = vector.load %arg13[%c4_25, %c0_26] : memref<16x256xf32, #tpu.memory_space<vmem>>, vector<2x256xf32>
    tpu.vector_store %arg13[%c4_25, %c0_26], %41 {strides = array<i32>} : memref<16x256xf32, #tpu.memory_space<vmem>>, vector<2x256xf32>,
    %43 = arith.select %18, %40, %39 : vector<2x256xi1>, vector<2x256xf32>
    %c10_27 = arith.constant 10 : index
    %c0_28 = arith.constant 0 : index
    %44 = vector.load %arg13[%c10_27, %c0_28] : memref<16x256xf32, #tpu.memory_space<vmem>>, vector<2x256xf32>
    tpu.vector_store %arg13[%c10_27, %c0_28], %43 {strides = array<i32>} : memref<16x256xf32, #tpu.memory_space<vmem>>, vector<2x256xf32>,
    %c6 = arith.constant 6 : index
    %c0_29 = arith.constant 0 : index
    %45 = vector.load %arg13[%c6, %c0_29] : memref<16x256xf32, #tpu.memory_space<vmem>>, vector<2x256xf32>
    %c8 = arith.constant 8 : index
    %c0_30 = arith.constant 0 : index
    %46 = vector.load %arg13[%c8, %c0_30] : memref<16x256xf32, #tpu.memory_space<vmem>>, vector<2x256xf32>
    %47 = arith.select %18, %45, %46 : vector<2x256xi1>, vector<2x256xf32>
    %c6_31 = arith.constant 6 : index
    %c0_32 = arith.constant 0 : index
    %48 = vector.load %arg13[%c6_31, %c0_32] : memref<16x256xf32, #tpu.memory_space<vmem>>, vector<2x256xf32>
    tpu.vector_store %arg13[%c6_31, %c0_32], %47 {strides = array<i32>} : memref<16x256xf32, #tpu.memory_space<vmem>>, vector<2x256xf32>,
    %49 = arith.select %18, %46, %45 : vector<2x256xi1>, vector<2x256xf32>
    %c8_33 = arith.constant 8 : index
    %c0_34 = arith.constant 0 : index
    %50 = vector.load %arg13[%c8_33, %c0_34] : memref<16x256xf32, #tpu.memory_space<vmem>>, vector<2x256xf32>
    tpu.vector_store %arg13[%c8_33, %c0_34], %49 {strides = array<i32>} : memref<16x256xf32, #tpu.memory_space<vmem>>, vector<2x256xf32>,
    %c0_35 = arith.constant 0 : index
    %c0_36 = arith.constant 0 : index
    %51 = vector.load %arg3[%c0_35, %c0_36] : memref<64x256xbf16, #tpu.memory_space<vmem>>, vector<64x256xbf16>
    %c0_37 = arith.constant 0 : index
    %c0_38 = arith.constant 0 : index
    %52 = vector.load %arg4[%c0_37, %c0_38] : memref<1x256xf32, #tpu.memory_space<vmem>>, vector<1x256xf32>
    %53 = vector.shape_cast %52 : vector<1x256xf32> to vector<1x256xf32>
    %54 = vector.broadcast %53 : vector<1x256xf32> to vector<2x256xf32>
    %cst_39 = arith.constant 0.000000e+00 : f32
    %55 = vector.broadcast %cst_39 : f32 to vector<2x64xf32>
    %c0_i32_40 = arith.constant 0 : i32
    %c2_i32 = arith.constant 2 : i32
    %56 = arith.muli %c0_i32_40, %c2_i32 : i32
    %57 = arith.index_cast %56 : i32 to index
    %c0_41 = arith.constant 0 : index
    %58 = vector.load %arg13[%57, %c0_41] : memref<16x256xf32, #tpu.memory_space<vmem>>, vector<2x256xf32>
    %59 = arith.truncf %55 : vector<2x64xf32> to vector<2x64xbf16>
    %cst_42 = arith.constant dense<0.000000e+00> : vector<2x256xf32>
    %60 = tpu.matmul %59, %51, %cst_42 {dimension_numbers = #tpu.dot_dimension_numbers<[1], [0], [0], [1], [0, 0, 1, 1], [], []>} : vector<2x64xbf16>, vector<64x256xbf16>, vector<2x256xf32> -> vector<2x256xf32>
    %61 = arith.addf %58, %60 : vector<2x256xf32>
    %62 = arith.addf %61, %54 : vector<2x256xf32>
    %63 = vector.extract_strided_slice %62 {offsets = [0, 0], sizes = [2, 192], strides = [1, 1]} : vector<2x256xf32> to vector<2x192xf32>
    %64 = arith.negf %63 : vector<2x192xf32>
    %65 = math.exp %64 : vector<2x192xf32>
    %cst_43 = arith.constant 1.000000e+00 : f32
    %66 = vector.broadcast %cst_43 : f32 to vector<2x192xf32>
    %67 = arith.addf %66, %65 : vector<2x192xf32>
    %68 = arith.divf %66, %67 : vector<2x192xf32>
    %69 = vector.extract_strided_slice %62 {offsets = [0, 192], sizes = [2, 64], strides = [1, 1]} : vector<2x256xf32> to vector<2x64xf32>
    %70 = math.tanh %69 : vector<2x64xf32>
    %71 = vector.extract_strided_slice %68 {offsets = [0, 0], sizes = [2, 64], strides = [1, 1]} : vector<2x192xf32> to vector<2x64xf32>
    %72 = vector.extract_strided_slice %68 {offsets = [0, 64], sizes = [2, 64], strides = [1, 1]} : vector<2x192xf32> to vector<2x64xf32>
    %73 = vector.extract_strided_slice %68 {offsets = [0, 128], sizes = [2, 64], strides = [1, 1]} : vector<2x192xf32> to vector<2x64xf32>
    %74 = arith.mulf %72, %55 : vector<2x64xf32>
    %75 = arith.mulf %71, %70 : vector<2x64xf32>
    %76 = arith.addf %74, %75 : vector<2x64xf32>
    %77 = math.tanh %76 : vector<2x64xf32>
    %78 = arith.mulf %73, %77 : vector<2x64xf32>
    %79 = arith.truncf %78 : vector<2x64xf32> to vector<2x64xbf16>
    %c2_i32_44 = arith.constant 2 : i32
    %80 = arith.muli %c0_i32_40, %c2_i32_44 : i32
    %81 = arith.index_cast %80 : i32 to index
    %c0_45 = arith.constant 0 : index
    %82 = vector.load %arg14[%81, %c0_45] : memref<16x64xbf16, #tpu.memory_space<vmem>>, vector<2x64xbf16>
    tpu.vector_store %arg14[%81, %c0_45], %79 {strides = array<i32>} : memref<16x64xbf16, #tpu.memory_space<vmem>>, vector<2x64xbf16>,
    %c1_i32_46 = arith.constant 1 : i32
    %c2_i32_47 = arith.constant 2 : i32
    %83 = arith.muli %c1_i32_46, %c2_i32_47 : i32
    %84 = arith.index_cast %83 : i32 to index
    %c0_48 = arith.constant 0 : index
    %85 = vector.load %arg13[%84, %c0_48] : memref<16x256xf32, #tpu.memory_space<vmem>>, vector<2x256xf32>
    %86 = arith.truncf %78 : vector<2x64xf32> to vector<2x64xbf16>
    %cst_49 = arith.constant dense<0.000000e+00> : vector<2x256xf32>
    %87 = tpu.matmul %86, %51, %cst_49 {dimension_numbers = #tpu.dot_dimension_numbers<[1], [0], [0], [1], [0, 0, 1, 1], [], []>} : vector<2x64xbf16>, vector<64x256xbf16>, vector<2x256xf32> -> vector<2x256xf32>
    %88 = arith.addf %85, %87 : vector<2x256xf32>
    %89 = arith.addf %88, %54 : vector<2x256xf32>
    %90 = vector.extract_strided_slice %89 {offsets = [0, 0], sizes = [2, 192], strides = [1, 1]} : vector<2x256xf32> to vector<2x192xf32>
    %91 = arith.negf %90 : vector<2x192xf32>
    %92 = math.exp %91 : vector<2x192xf32>
    %cst_50 = arith.constant 1.000000e+00 : f32
    %93 = vector.broadcast %cst_50 : f32 to vector<2x192xf32>
    %94 = arith.addf %93, %92 : vector<2x192xf32>
    %95 = arith.divf %93, %94 : vector<2x192xf32>
    %96 = vector.extract_strided_slice %89 {offsets = [0, 192], sizes = [2, 64], strides = [1, 1]} : vector<2x256xf32> to vector<2x64xf32>
    %97 = math.tanh %96 : vector<2x64xf32>
    %98 = vector.extract_strided_slice %95 {offsets = [0, 0], sizes = [2, 64], strides = [1, 1]} : vector<2x192xf32> to vector<2x64xf32>
    %99 = vector.extract_strided_slice %95 {offsets = [0, 64], sizes = [2, 64], strides = [1, 1]} : vector<2x192xf32> to vector<2x64xf32>
    %100 = vector.extract_strided_slice %95 {offsets = [0, 128], sizes = [2, 64], strides = [1, 1]} : vector<2x192xf32> to vector<2x64xf32>
    %101 = arith.mulf %99, %76 : vector<2x64xf32>
    %102 = arith.mulf %98, %97 : vector<2x64xf32>
    %103 = arith.addf %101, %102 : vector<2x64xf32>
    %104 = math.tanh %103 : vector<2x64xf32>
    %105 = arith.mulf %100, %104 : vector<2x64xf32>
    %106 = arith.truncf %105 : vector<2x64xf32> to vector<2x64xbf16>
    %c2_i32_51 = arith.constant 2 : i32
    %107 = arith.muli %c1_i32_46, %c2_i32_51 : i32
    %108 = arith.index_cast %107 : i32 to index
    %c0_52 = arith.constant 0 : index
    %109 = vector.load %arg14[%108, %c0_52] : memref<16x64xbf16, #tpu.memory_space<vmem>>, vector<2x64xbf16>
    tpu.vector_store %arg14[%108, %c0_52], %106 {strides = array<i32>} : memref<16x64xbf16, #tpu.memory_space<vmem>>, vector<2x64xbf16>,
    %c2_i32_53 = arith.constant 2 : i32
    %c2_i32_54 = arith.constant 2 : i32
    %110 = arith.muli %c2_i32_53, %c2_i32_54 : i32
    %111 = arith.index_cast %110 : i32 to index
    %c0_55 = arith.constant 0 : index
    %112 = vector.load %arg13[%111, %c0_55] : memref<16x256xf32, #tpu.memory_space<vmem>>, vector<2x256xf32>
    %113 = arith.truncf %105 : vector<2x64xf32> to vector<2x64xbf16>
    %cst_56 = arith.constant dense<0.000000e+00> : vector<2x256xf32>
    %114 = tpu.matmul %113, %51, %cst_56 {dimension_numbers = #tpu.dot_dimension_numbers<[1], [0], [0], [1], [0, 0, 1, 1], [], []>} : vector<2x64xbf16>, vector<64x256xbf16>, vector<2x256xf32> -> vector<2x256xf32>
    %115 = arith.addf %112, %114 : vector<2x256xf32>
    %116 = arith.addf %115, %54 : vector<2x256xf32>
    %117 = vector.extract_strided_slice %116 {offsets = [0, 0], sizes = [2, 192], strides = [1, 1]} : vector<2x256xf32> to vector<2x192xf32>
    %118 = arith.negf %117 : vector<2x192xf32>
    %119 = math.exp %118 : vector<2x192xf32>
    %cst_57 = arith.constant 1.000000e+00 : f32
    %120 = vector.broadcast %cst_57 : f32 to vector<2x192xf32>
    %121 = arith.addf %120, %119 : vector<2x192xf32>
    %122 = arith.divf %120, %121 : vector<2x192xf32>
    %123 = vector.extract_strided_slice %116 {offsets = [0, 192], sizes = [2, 64], strides = [1, 1]} : vector<2x256xf32> to vector<2x64xf32>
    %124 = math.tanh %123 : vector<2x64xf32>
    %125 = vector.extract_strided_slice %122 {offsets = [0, 0], sizes = [2, 64], strides = [1, 1]} : vector<2x192xf32> to vector<2x64xf32>
    %126 = vector.extract_strided_slice %122 {offsets = [0, 64], sizes = [2, 64], strides = [1, 1]} : vector<2x192xf32> to vector<2x64xf32>
    %127 = vector.extract_strided_slice %122 {offsets = [0, 128], sizes = [2, 64], strides = [1, 1]} : vector<2x192xf32> to vector<2x64xf32>
    %128 = arith.mulf %126, %103 : vector<2x64xf32>
    %129 = arith.mulf %125, %124 : vector<2x64xf32>
    %130 = arith.addf %128, %129 : vector<2x64xf32>
    %131 = math.tanh %130 : vector<2x64xf32>
    %132 = arith.mulf %127, %131 : vector<2x64xf32>
    %133 = arith.truncf %132 : vector<2x64xf32> to vector<2x64xbf16>
    %c2_i32_58 = arith.constant 2 : i32
    %134 = arith.muli %c2_i32_53, %c2_i32_58 : i32
    %135 = arith.index_cast %134 : i32 to index
    %c0_59 = arith.constant 0 : index
    %136 = vector.load %arg14[%135, %c0_59] : memref<16x64xbf16, #tpu.memory_space<vmem>>, vector<2x64xbf16>
    tpu.vector_store %arg14[%135, %c0_59], %133 {strides = array<i32>} : memref<16x64xbf16, #tpu.memory_space<vmem>>, vector<2x64xbf16>,
    %c3_i32 = arith.constant 3 : i32
    %c2_i32_60 = arith.constant 2 : i32
    %137 = arith.muli %c3_i32, %c2_i32_60 : i32
    %138 = arith.index_cast %137 : i32 to index
    %c0_61 = arith.constant 0 : index
    %139 = vector.load %arg13[%138, %c0_61] : memref<16x256xf32, #tpu.memory_space<vmem>>, vector<2x256xf32>
    %140 = arith.truncf %132 : vector<2x64xf32> to vector<2x64xbf16>
    %cst_62 = arith.constant dense<0.000000e+00> : vector<2x256xf32>
    %141 = tpu.matmul %140, %51, %cst_62 {dimension_numbers = #tpu.dot_dimension_numbers<[1], [0], [0], [1], [0, 0, 1, 1], [], []>} : vector<2x64xbf16>, vector<64x256xbf16>, vector<2x256xf32> -> vector<2x256xf32>
    %142 = arith.addf %139, %141 : vector<2x256xf32>
    %143 = arith.addf %142, %54 : vector<2x256xf32>
    %144 = vector.extract_strided_slice %143 {offsets = [0, 0], sizes = [2, 192], strides = [1, 1]} : vector<2x256xf32> to vector<2x192xf32>
    %145 = arith.negf %144 : vector<2x192xf32>
    %146 = math.exp %145 : vector<2x192xf32>
    %cst_63 = arith.constant 1.000000e+00 : f32
    %147 = vector.broadcast %cst_63 : f32 to vector<2x192xf32>
    %148 = arith.addf %147, %146 : vector<2x192xf32>
    %149 = arith.divf %147, %148 : vector<2x192xf32>
    %150 = vector.extract_strided_slice %143 {offsets = [0, 192], sizes = [2, 64], strides = [1, 1]} : vector<2x256xf32> to vector<2x64xf32>
    %151 = math.tanh %150 : vector<2x64xf32>
    %152 = vector.extract_strided_slice %149 {offsets = [0, 0], sizes = [2, 64], strides = [1, 1]} : vector<2x192xf32> to vector<2x64xf32>
    %153 = vector.extract_strided_slice %149 {offsets = [0, 64], sizes = [2, 64], strides = [1, 1]} : vector<2x192xf32> to vector<2x64xf32>
    %154 = vector.extract_strided_slice %149 {offsets = [0, 128], sizes = [2, 64], strides = [1, 1]} : vector<2x192xf32> to vector<2x64xf32>
    %155 = arith.mulf %153, %130 : vector<2x64xf32>
    %156 = arith.mulf %152, %151 : vector<2x64xf32>
    %157 = arith.addf %155, %156 : vector<2x64xf32>
    %158 = math.tanh %157 : vector<2x64xf32>
    %159 = arith.mulf %154, %158 : vector<2x64xf32>
    %160 = arith.truncf %159 : vector<2x64xf32> to vector<2x64xbf16>
    %c2_i32_64 = arith.constant 2 : i32
    %161 = arith.muli %c3_i32, %c2_i32_64 : i32
    %162 = arith.index_cast %161 : i32 to index
    %c0_65 = arith.constant 0 : index
    %163 = vector.load %arg14[%162, %c0_65] : memref<16x64xbf16, #tpu.memory_space<vmem>>, vector<2x64xbf16>
    tpu.vector_store %arg14[%162, %c0_65], %160 {strides = array<i32>} : memref<16x64xbf16, #tpu.memory_space<vmem>>, vector<2x64xbf16>,
    %c4_i32 = arith.constant 4 : i32
    %c2_i32_66 = arith.constant 2 : i32
    %164 = arith.muli %c4_i32, %c2_i32_66 : i32
    %165 = arith.index_cast %164 : i32 to index
    %c0_67 = arith.constant 0 : index
    %166 = vector.load %arg13[%165, %c0_67] : memref<16x256xf32, #tpu.memory_space<vmem>>, vector<2x256xf32>
    %167 = arith.truncf %159 : vector<2x64xf32> to vector<2x64xbf16>
    %cst_68 = arith.constant dense<0.000000e+00> : vector<2x256xf32>
    %168 = tpu.matmul %167, %51, %cst_68 {dimension_numbers = #tpu.dot_dimension_numbers<[1], [0], [0], [1], [0, 0, 1, 1], [], []>} : vector<2x64xbf16>, vector<64x256xbf16>, vector<2x256xf32> -> vector<2x256xf32>
    %169 = arith.addf %166, %168 : vector<2x256xf32>
    %170 = arith.addf %169, %54 : vector<2x256xf32>
    %171 = vector.extract_strided_slice %170 {offsets = [0, 0], sizes = [2, 192], strides = [1, 1]} : vector<2x256xf32> to vector<2x192xf32>
    %172 = arith.negf %171 : vector<2x192xf32>
    %173 = math.exp %172 : vector<2x192xf32>
    %cst_69 = arith.constant 1.000000e+00 : f32
    %174 = vector.broadcast %cst_69 : f32 to vector<2x192xf32>
    %175 = arith.addf %174, %173 : vector<2x192xf32>
    %176 = arith.divf %174, %175 : vector<2x192xf32>
    %177 = vector.extract_strided_slice %170 {offsets = [0, 192], sizes = [2, 64], strides = [1, 1]} : vector<2x256xf32> to vector<2x64xf32>
    %178 = math.tanh %177 : vector<2x64xf32>
    %179 = vector.extract_strided_slice %176 {offsets = [0, 0], sizes = [2, 64], strides = [1, 1]} : vector<2x192xf32> to vector<2x64xf32>
    %180 = vector.extract_strided_slice %176 {offsets = [0, 64], sizes = [2, 64], strides = [1, 1]} : vector<2x192xf32> to vector<2x64xf32>
    %181 = vector.extract_strided_slice %176 {offsets = [0, 128], sizes = [2, 64], strides = [1, 1]} : vector<2x192xf32> to vector<2x64xf32>
    %182 = arith.mulf %180, %157 : vector<2x64xf32>
    %183 = arith.mulf %179, %178 : vector<2x64xf32>
    %184 = arith.addf %182, %183 : vector<2x64xf32>
    %185 = math.tanh %184 : vector<2x64xf32>
    %186 = arith.mulf %181, %185 : vector<2x64xf32>
    %187 = arith.truncf %186 : vector<2x64xf32> to vector<2x64xbf16>
    %c2_i32_70 = arith.constant 2 : i32
    %188 = arith.muli %c4_i32, %c2_i32_70 : i32
    %189 = arith.index_cast %188 : i32 to index
    %c0_71 = arith.constant 0 : index
    %190 = vector.load %arg14[%189, %c0_71] : memref<16x64xbf16, #tpu.memory_space<vmem>>, vector<2x64xbf16>
    tpu.vector_store %arg14[%189, %c0_71], %187 {strides = array<i32>} : memref<16x64xbf16, #tpu.memory_space<vmem>>, vector<2x64xbf16>,
    %c5_i32 = arith.constant 5 : i32
    %c2_i32_72 = arith.constant 2 : i32
    %191 = arith.muli %c5_i32, %c2_i32_72 : i32
    %192 = arith.index_cast %191 : i32 to index
    %c0_73 = arith.constant 0 : index
    %193 = vector.load %arg13[%192, %c0_73] : memref<16x256xf32, #tpu.memory_space<vmem>>, vector<2x256xf32>
    %194 = arith.truncf %186 : vector<2x64xf32> to vector<2x64xbf16>
    %cst_74 = arith.constant dense<0.000000e+00> : vector<2x256xf32>
    %195 = tpu.matmul %194, %51, %cst_74 {dimension_numbers = #tpu.dot_dimension_numbers<[1], [0], [0], [1], [0, 0, 1, 1], [], []>} : vector<2x64xbf16>, vector<64x256xbf16>, vector<2x256xf32> -> vector<2x256xf32>
    %196 = arith.addf %193, %195 : vector<2x256xf32>
    %197 = arith.addf %196, %54 : vector<2x256xf32>
    %198 = vector.extract_strided_slice %197 {offsets = [0, 0], sizes = [2, 192], strides = [1, 1]} : vector<2x256xf32> to vector<2x192xf32>
    %199 = arith.negf %198 : vector<2x192xf32>
    %200 = math.exp %199 : vector<2x192xf32>
    %cst_75 = arith.constant 1.000000e+00 : f32
    %201 = vector.broadcast %cst_75 : f32 to vector<2x192xf32>
    %202 = arith.addf %201, %200 : vector<2x192xf32>
    %203 = arith.divf %201, %202 : vector<2x192xf32>
    %204 = vector.extract_strided_slice %197 {offsets = [0, 192], sizes = [2, 64], strides = [1, 1]} : vector<2x256xf32> to vector<2x64xf32>
    %205 = math.tanh %204 : vector<2x64xf32>
    %206 = vector.extract_strided_slice %203 {offsets = [0, 0], sizes = [2, 64], strides = [1, 1]} : vector<2x192xf32> to vector<2x64xf32>
    %207 = vector.extract_strided_slice %203 {offsets = [0, 64], sizes = [2, 64], strides = [1, 1]} : vector<2x192xf32> to vector<2x64xf32>
    %208 = vector.extract_strided_slice %203 {offsets = [0, 128], sizes = [2, 64], strides = [1, 1]} : vector<2x192xf32> to vector<2x64xf32>
    %209 = arith.mulf %207, %184 : vector<2x64xf32>
    %210 = arith.mulf %206, %205 : vector<2x64xf32>
    %211 = arith.addf %209, %210 : vector<2x64xf32>
    %212 = math.tanh %211 : vector<2x64xf32>
    %213 = arith.mulf %208, %212 : vector<2x64xf32>
    %214 = arith.truncf %213 : vector<2x64xf32> to vector<2x64xbf16>
    %c2_i32_76 = arith.constant 2 : i32
    %215 = arith.muli %c5_i32, %c2_i32_76 : i32
    %216 = arith.index_cast %215 : i32 to index
    %c0_77 = arith.constant 0 : index
    %217 = vector.load %arg14[%216, %c0_77] : memref<16x64xbf16, #tpu.memory_space<vmem>>, vector<2x64xbf16>
    tpu.vector_store %arg14[%216, %c0_77], %214 {strides = array<i32>} : memref<16x64xbf16, #tpu.memory_space<vmem>>, vector<2x64xbf16>,
    %c6_i32 = arith.constant 6 : i32
    %c2_i32_78 = arith.constant 2 : i32
    %218 = arith.muli %c6_i32, %c2_i32_78 : i32
    %219 = arith.index_cast %218 : i32 to index
    %c0_79 = arith.constant 0 : index
    %220 = vector.load %arg13[%219, %c0_79] : memref<16x256xf32, #tpu.memory_space<vmem>>, vector<2x256xf32>
    %221 = arith.truncf %213 : vector<2x64xf32> to vector<2x64xbf16>
    %cst_80 = arith.constant dense<0.000000e+00> : vector<2x256xf32>
    %222 = tpu.matmul %221, %51, %cst_80 {dimension_numbers = #tpu.dot_dimension_numbers<[1], [0], [0], [1], [0, 0, 1, 1], [], []>} : vector<2x64xbf16>, vector<64x256xbf16>, vector<2x256xf32> -> vector<2x256xf32>
    %223 = arith.addf %220, %222 : vector<2x256xf32>
    %224 = arith.addf %223, %54 : vector<2x256xf32>
    %225 = vector.extract_strided_slice %224 {offsets = [0, 0], sizes = [2, 192], strides = [1, 1]} : vector<2x256xf32> to vector<2x192xf32>
    %226 = arith.negf %225 : vector<2x192xf32>
    %227 = math.exp %226 : vector<2x192xf32>
    %cst_81 = arith.constant 1.000000e+00 : f32
    %228 = vector.broadcast %cst_81 : f32 to vector<2x192xf32>
    %229 = arith.addf %228, %227 : vector<2x192xf32>
    %230 = arith.divf %228, %229 : vector<2x192xf32>
    %231 = vector.extract_strided_slice %224 {offsets = [0, 192], sizes = [2, 64], strides = [1, 1]} : vector<2x256xf32> to vector<2x64xf32>
    %232 = math.tanh %231 : vector<2x64xf32>
    %233 = vector.extract_strided_slice %230 {offsets = [0, 0], sizes = [2, 64], strides = [1, 1]} : vector<2x192xf32> to vector<2x64xf32>
    %234 = vector.extract_strided_slice %230 {offsets = [0, 64], sizes = [2, 64], strides = [1, 1]} : vector<2x192xf32> to vector<2x64xf32>
    %235 = vector.extract_strided_slice %230 {offsets = [0, 128], sizes = [2, 64], strides = [1, 1]} : vector<2x192xf32> to vector<2x64xf32>
    %236 = arith.mulf %234, %211 : vector<2x64xf32>
    %237 = arith.mulf %233, %232 : vector<2x64xf32>
    %238 = arith.addf %236, %237 : vector<2x64xf32>
    %239 = math.tanh %238 : vector<2x64xf32>
    %240 = arith.mulf %235, %239 : vector<2x64xf32>
    %241 = arith.truncf %240 : vector<2x64xf32> to vector<2x64xbf16>
    %c2_i32_82 = arith.constant 2 : i32
    %242 = arith.muli %c6_i32, %c2_i32_82 : i32
    %243 = arith.index_cast %242 : i32 to index
    %c0_83 = arith.constant 0 : index
    %244 = vector.load %arg14[%243, %c0_83] : memref<16x64xbf16, #tpu.memory_space<vmem>>, vector<2x64xbf16>
    tpu.vector_store %arg14[%243, %c0_83], %241 {strides = array<i32>} : memref<16x64xbf16, #tpu.memory_space<vmem>>, vector<2x64xbf16>,
    %c7_i32 = arith.constant 7 : i32
    %c2_i32_84 = arith.constant 2 : i32
    %245 = arith.muli %c7_i32, %c2_i32_84 : i32
    %246 = arith.index_cast %245 : i32 to index
    %c0_85 = arith.constant 0 : index
    %247 = vector.load %arg13[%246, %c0_85] : memref<16x256xf32, #tpu.memory_space<vmem>>, vector<2x256xf32>
    %248 = arith.truncf %240 : vector<2x64xf32> to vector<2x64xbf16>
    %cst_86 = arith.constant dense<0.000000e+00> : vector<2x256xf32>
    %249 = tpu.matmul %248, %51, %cst_86 {dimension_numbers = #tpu.dot_dimension_numbers<[1], [0], [0], [1], [0, 0, 1, 1], [], []>} : vector<2x64xbf16>, vector<64x256xbf16>, vector<2x256xf32> -> vector<2x256xf32>
    %250 = arith.addf %247, %249 : vector<2x256xf32>
    %251 = arith.addf %250, %54 : vector<2x256xf32>
    %252 = vector.extract_strided_slice %251 {offsets = [0, 0], sizes = [2, 192], strides = [1, 1]} : vector<2x256xf32> to vector<2x192xf32>
    %253 = arith.negf %252 : vector<2x192xf32>
    %254 = math.exp %253 : vector<2x192xf32>
    %cst_87 = arith.constant 1.000000e+00 : f32
    %255 = vector.broadcast %cst_87 : f32 to vector<2x192xf32>
    %256 = arith.addf %255, %254 : vector<2x192xf32>
    %257 = arith.divf %255, %256 : vector<2x192xf32>
    %258 = vector.extract_strided_slice %251 {offsets = [0, 192], sizes = [2, 64], strides = [1, 1]} : vector<2x256xf32> to vector<2x64xf32>
    %259 = math.tanh %258 : vector<2x64xf32>
    %260 = vector.extract_strided_slice %257 {offsets = [0, 0], sizes = [2, 64], strides = [1, 1]} : vector<2x192xf32> to vector<2x64xf32>
    %261 = vector.extract_strided_slice %257 {offsets = [0, 64], sizes = [2, 64], strides = [1, 1]} : vector<2x192xf32> to vector<2x64xf32>
    %262 = vector.extract_strided_slice %257 {offsets = [0, 128], sizes = [2, 64], strides = [1, 1]} : vector<2x192xf32> to vector<2x64xf32>
    %263 = arith.mulf %261, %238 : vector<2x64xf32>
    %264 = arith.mulf %260, %259 : vector<2x64xf32>
    %265 = arith.addf %263, %264 : vector<2x64xf32>
    %266 = math.tanh %265 : vector<2x64xf32>
    %267 = arith.mulf %262, %266 : vector<2x64xf32>
    %268 = arith.truncf %267 : vector<2x64xf32> to vector<2x64xbf16>
    %c2_i32_88 = arith.constant 2 : i32
    %269 = arith.muli %c7_i32, %c2_i32_88 : i32
    %270 = arith.index_cast %269 : i32 to index
    %c0_89 = arith.constant 0 : index
    %271 = vector.load %arg14[%270, %c0_89] : memref<16x64xbf16, #tpu.memory_space<vmem>>, vector<2x64xbf16>
    tpu.vector_store %arg14[%270, %c0_89], %268 {strides = array<i32>} : memref<16x64xbf16, #tpu.memory_space<vmem>>, vector<2x64xbf16>,
    %c8_i32 = arith.constant 8 : i32
    %c0_90 = arith.constant 0 : index
    %c0_91 = arith.constant 0 : index
    %272 = vector.load %arg14[%c0_90, %c0_91] : memref<16x64xbf16, #tpu.memory_space<vmem>>, vector<2x64xbf16>
    %c14_92 = arith.constant 14 : index
    %c0_93 = arith.constant 0 : index
    %273 = vector.load %arg14[%c14_92, %c0_93] : memref<16x64xbf16, #tpu.memory_space<vmem>>, vector<2x64xbf16>
    %274 = arith.select %21, %273, %272 : vector<2x64xi1>, vector<2x64xbf16>
    %c0_94 = arith.constant 0 : index
    %c0_95 = arith.constant 0 : index
    %275 = vector.load %arg14[%c0_94, %c0_95] : memref<16x64xbf16, #tpu.memory_space<vmem>>, vector<2x64xbf16>
    tpu.vector_store %arg14[%c0_94, %c0_95], %274 {strides = array<i32>} : memref<16x64xbf16, #tpu.memory_space<vmem>>, vector<2x64xbf16>,
    %276 = arith.select %21, %272, %273 : vector<2x64xi1>, vector<2x64xbf16>
    %c14_96 = arith.constant 14 : index
    %c0_97 = arith.constant 0 : index
    %277 = vector.load %arg14[%c14_96, %c0_97] : memref<16x64xbf16, #tpu.memory_space<vmem>>, vector<2x64xbf16>
    tpu.vector_store %arg14[%c14_96, %c0_97], %276 {strides = array<i32>} : memref<16x64xbf16, #tpu.memory_space<vmem>>, vector<2x64xbf16>,
    %c2_98 = arith.constant 2 : index
    %c0_99 = arith.constant 0 : index
    %278 = vector.load %arg14[%c2_98, %c0_99] : memref<16x64xbf16, #tpu.memory_space<vmem>>, vector<2x64xbf16>
    %c12_100 = arith.constant 12 : index
    %c0_101 = arith.constant 0 : index
    %279 = vector.load %arg14[%c12_100, %c0_101] : memref<16x64xbf16, #tpu.memory_space<vmem>>, vector<2x64xbf16>
    %280 = arith.select %21, %279, %278 : vector<2x64xi1>, vector<2x64xbf16>
    %c2_102 = arith.constant 2 : index
    %c0_103 = arith.constant 0 : index
    %281 = vector.load %arg14[%c2_102, %c0_103] : memref<16x64xbf16, #tpu.memory_space<vmem>>, vector<2x64xbf16>
    tpu.vector_store %arg14[%c2_102, %c0_103], %280 {strides = array<i32>} : memref<16x64xbf16, #tpu.memory_space<vmem>>, vector<2x64xbf16>,
    %282 = arith.select %21, %278, %279 : vector<2x64xi1>, vector<2x64xbf16>
    %c12_104 = arith.constant 12 : index
    %c0_105 = arith.constant 0 : index
    %283 = vector.load %arg14[%c12_104, %c0_105] : memref<16x64xbf16, #tpu.memory_space<vmem>>, vector<2x64xbf16>
    tpu.vector_store %arg14[%c12_104, %c0_105], %282 {strides = array<i32>} : memref<16x64xbf16, #tpu.memory_space<vmem>>, vector<2x64xbf16>,
    %c4_106 = arith.constant 4 : index
    %c0_107 = arith.constant 0 : index
    %284 = vector.load %arg14[%c4_106, %c0_107] : memref<16x64xbf16, #tpu.memory_space<vmem>>, vector<2x64xbf16>
    %c10_108 = arith.constant 10 : index
    %c0_109 = arith.constant 0 : index
    %285 = vector.load %arg14[%c10_108, %c0_109] : memref<16x64xbf16, #tpu.memory_space<vmem>>, vector<2x64xbf16>
    %286 = arith.select %21, %285, %284 : vector<2x64xi1>, vector<2x64xbf16>
    %c4_110 = arith.constant 4 : index
    %c0_111 = arith.constant 0 : index
    %287 = vector.load %arg14[%c4_110, %c0_111] : memref<16x64xbf16, #tpu.memory_space<vmem>>, vector<2x64xbf16>
    tpu.vector_store %arg14[%c4_110, %c0_111], %286 {strides = array<i32>} : memref<16x64xbf16, #tpu.memory_space<vmem>>, vector<2x64xbf16>,
    %288 = arith.select %21, %284, %285 : vector<2x64xi1>, vector<2x64xbf16>
    %c10_112 = arith.constant 10 : index
    %c0_113 = arith.constant 0 : index
    %289 = vector.load %arg14[%c10_112, %c0_113] : memref<16x64xbf16, #tpu.memory_space<vmem>>, vector<2x64xbf16>
    tpu.vector_store %arg14[%c10_112, %c0_113], %288 {strides = array<i32>} : memref<16x64xbf16, #tpu.memory_space<vmem>>, vector<2x64xbf16>,
    %c6_114 = arith.constant 6 : index
    %c0_115 = arith.constant 0 : index
    %290 = vector.load %arg14[%c6_114, %c0_115] : memref<16x64xbf16, #tpu.memory_space<vmem>>, vector<2x64xbf16>
    %c8_116 = arith.constant 8 : index
    %c0_117 = arith.constant 0 : index
    %291 = vector.load %arg14[%c8_116, %c0_117] : memref<16x64xbf16, #tpu.memory_space<vmem>>, vector<2x64xbf16>
    %292 = arith.select %21, %291, %290 : vector<2x64xi1>, vector<2x64xbf16>
    %c6_118 = arith.constant 6 : index
    %c0_119 = arith.constant 0 : index
    %293 = vector.load %arg14[%c6_118, %c0_119] : memref<16x64xbf16, #tpu.memory_space<vmem>>, vector<2x64xbf16>
    tpu.vector_store %arg14[%c6_118, %c0_119], %292 {strides = array<i32>} : memref<16x64xbf16, #tpu.memory_space<vmem>>, vector<2x64xbf16>,
    %294 = arith.select %21, %290, %291 : vector<2x64xi1>, vector<2x64xbf16>
    %c8_120 = arith.constant 8 : index
    %c0_121 = arith.constant 0 : index
    %295 = vector.load %arg14[%c8_120, %c0_121] : memref<16x64xbf16, #tpu.memory_space<vmem>>, vector<2x64xbf16>
    tpu.vector_store %arg14[%c8_120, %c0_121], %294 {strides = array<i32>} : memref<16x64xbf16, #tpu.memory_space<vmem>>, vector<2x64xbf16>,
    %c0_122 = arith.constant 0 : index
    %c0_123 = arith.constant 0 : index
    %296 = vector.load %arg14[%c0_122, %c0_123] : memref<16x64xbf16, #tpu.memory_space<vmem>>, vector<16x64xbf16>
    %c0_124 = arith.constant 0 : index
    %c0_125 = arith.constant 0 : index
    %297 = vector.load %arg5[%c0_124, %c0_125] : memref<64x256xbf16, #tpu.memory_space<vmem>>, vector<64x256xbf16>
    %cst_126 = arith.constant dense<0.000000e+00> : vector<16x256xf32>
    %298 = tpu.matmul %296, %297, %cst_126 {dimension_numbers = #tpu.dot_dimension_numbers<[1], [0], [0], [1], [0, 0, 1, 1], [], []>} : vector<16x64xbf16>, vector<64x256xbf16>, vector<16x256xf32> -> vector<16x256xf32>
    %c0_127 = arith.constant 0 : index
    %c0_128 = arith.constant 0 : index
    %299 = vector.load %arg13[%c0_127, %c0_128] : memref<16x256xf32, #tpu.memory_space<vmem>>, vector<16x256xf32>
    tpu.vector_store %arg13[%c0_127, %c0_128], %298 {strides = array<i32>} : memref<16x256xf32, #tpu.memory_space<vmem>>, vector<16x256xf32>,
    %c0_129 = arith.constant 0 : index
    %c0_130 = arith.constant 0 : index
    %300 = vector.load %arg13[%c0_129, %c0_130] : memref<16x256xf32, #tpu.memory_space<vmem>>, vector<2x256xf32>
    %c14_131 = arith.constant 14 : index
    %c0_132 = arith.constant 0 : index
    %301 = vector.load %arg13[%c14_131, %c0_132] : memref<16x256xf32, #tpu.memory_space<vmem>>, vector<2x256xf32>
    %302 = arith.select %18, %300, %301 : vector<2x256xi1>, vector<2x256xf32>
    %c0_133 = arith.constant 0 : index
    %c0_134 = arith.constant 0 : index
    %303 = vector.load %arg13[%c0_133, %c0_134] : memref<16x256xf32, #tpu.memory_space<vmem>>, vector<2x256xf32>
    tpu.vector_store %arg13[%c0_133, %c0_134], %302 {strides = array<i32>} : memref<16x256xf32, #tpu.memory_space<vmem>>, vector<2x256xf32>,
    %304 = arith.select %18, %301, %300 : vector<2x256xi1>, vector<2x256xf32>
    %c14_135 = arith.constant 14 : index
    %c0_136 = arith.constant 0 : index
    %305 = vector.load %arg13[%c14_135, %c0_136] : memref<16x256xf32, #tpu.memory_space<vmem>>, vector<2x256xf32>
    tpu.vector_store %arg13[%c14_135, %c0_136], %304 {strides = array<i32>} : memref<16x256xf32, #tpu.memory_space<vmem>>, vector<2x256xf32>,
    %c2_137 = arith.constant 2 : index
    %c0_138 = arith.constant 0 : index
    %306 = vector.load %arg13[%c2_137, %c0_138] : memref<16x256xf32, #tpu.memory_space<vmem>>, vector<2x256xf32>
    %c12_139 = arith.constant 12 : index
    %c0_140 = arith.constant 0 : index
    %307 = vector.load %arg13[%c12_139, %c0_140] : memref<16x256xf32, #tpu.memory_space<vmem>>, vector<2x256xf32>
    %308 = arith.select %18, %306, %307 : vector<2x256xi1>, vector<2x256xf32>
    %c2_141 = arith.constant 2 : index
    %c0_142 = arith.constant 0 : index
    %309 = vector.load %arg13[%c2_141, %c0_142] : memref<16x256xf32, #tpu.memory_space<vmem>>, vector<2x256xf32>
    tpu.vector_store %arg13[%c2_141, %c0_142], %308 {strides = array<i32>} : memref<16x256xf32, #tpu.memory_space<vmem>>, vector<2x256xf32>,
    %310 = arith.select %18, %307, %306 : vector<2x256xi1>, vector<2x256xf32>
    %c12_143 = arith.constant 12 : index
    %c0_144 = arith.constant 0 : index
    %311 = vector.load %arg13[%c12_143, %c0_144] : memref<16x256xf32, #tpu.memory_space<vmem>>, vector<2x256xf32>
    tpu.vector_store %arg13[%c12_143, %c0_144], %310 {strides = array<i32>} : memref<16x256xf32, #tpu.memory_space<vmem>>, vector<2x256xf32>,
    %c4_145 = arith.constant 4 : index
    %c0_146 = arith.constant 0 : index
    %312 = vector.load %arg13[%c4_145, %c0_146] : memref<16x256xf32, #tpu.memory_space<vmem>>, vector<2x256xf32>
    %c10_147 = arith.constant 10 : index
    %c0_148 = arith.constant 0 : index
    %313 = vector.load %arg13[%c10_147, %c0_148] : memref<16x256xf32, #tpu.memory_space<vmem>>, vector<2x256xf32>
    %314 = arith.select %18, %312, %313 : vector<2x256xi1>, vector<2x256xf32>
    %c4_149 = arith.constant 4 : index
    %c0_150 = arith.constant 0 : index
    %315 = vector.load %arg13[%c4_149, %c0_150] : memref<16x256xf32, #tpu.memory_space<vmem>>, vector<2x256xf32>
    tpu.vector_store %arg13[%c4_149, %c0_150], %314 {strides = array<i32>} : memref<16x256xf32, #tpu.memory_space<vmem>>, vector<2x256xf32>,
    %316 = arith.select %18, %313, %312 : vector<2x256xi1>, vector<2x256xf32>
    %c10_151 = arith.constant 10 : index
    %c0_152 = arith.constant 0 : index
    %317 = vector.load %arg13[%c10_151, %c0_152] : memref<16x256xf32, #tpu.memory_space<vmem>>, vector<2x256xf32>
    tpu.vector_store %arg13[%c10_151, %c0_152], %316 {strides = array<i32>} : memref<16x256xf32, #tpu.memory_space<vmem>>, vector<2x256xf32>,
    %c6_153 = arith.constant 6 : index
    %c0_154 = arith.constant 0 : index
    %318 = vector.load %arg13[%c6_153, %c0_154] : memref<16x256xf32, #tpu.memory_space<vmem>>, vector<2x256xf32>
    %c8_155 = arith.constant 8 : index
    %c0_156 = arith.constant 0 : index
    %319 = vector.load %arg13[%c8_155, %c0_156] : memref<16x256xf32, #tpu.memory_space<vmem>>, vector<2x256xf32>
    %320 = arith.select %18, %318, %319 : vector<2x256xi1>, vector<2x256xf32>
    %c6_157 = arith.constant 6 : index
    %c0_158 = arith.constant 0 : index
    %321 = vector.load %arg13[%c6_157, %c0_158] : memref<16x256xf32, #tpu.memory_space<vmem>>, vector<2x256xf32>
    tpu.vector_store %arg13[%c6_157, %c0_158], %320 {strides = array<i32>} : memref<16x256xf32, #tpu.memory_space<vmem>>, vector<2x256xf32>,
    %322 = arith.select %18, %319, %318 : vector<2x256xi1>, vector<2x256xf32>
    %c8_159 = arith.constant 8 : index
    %c0_160 = arith.constant 0 : index
    %323 = vector.load %arg13[%c8_159, %c0_160] : memref<16x256xf32, #tpu.memory_space<vmem>>, vector<2x256xf32>
    tpu.vector_store %arg13[%c8_159, %c0_160], %322 {strides = array<i32>} : memref<16x256xf32, #tpu.memory_space<vmem>>, vector<2x256xf32>,
    %c0_161 = arith.constant 0 : index
    %c0_162 = arith.constant 0 : index
    %324 = vector.load %arg6[%c0_161, %c0_162] : memref<64x256xbf16, #tpu.memory_space<vmem>>, vector<64x256xbf16>
    %c0_163 = arith.constant 0 : index
    %c0_164 = arith.constant 0 : index
    %325 = vector.load %arg7[%c0_163, %c0_164] : memref<1x256xf32, #tpu.memory_space<vmem>>, vector<1x256xf32>
    %326 = vector.shape_cast %325 : vector<1x256xf32> to vector<1x256xf32>
    %327 = vector.broadcast %326 : vector<1x256xf32> to vector<2x256xf32>
    %cst_165 = arith.constant 0.000000e+00 : f32
    %328 = vector.broadcast %cst_165 : f32 to vector<2x64xf32>
    %c0_i32_166 = arith.constant 0 : i32
    %c2_i32_167 = arith.constant 2 : i32
    %329 = arith.muli %c0_i32_166, %c2_i32_167 : i32
    %330 = arith.index_cast %329 : i32 to index
    %c0_168 = arith.constant 0 : index
    %331 = vector.load %arg13[%330, %c0_168] : memref<16x256xf32, #tpu.memory_space<vmem>>, vector<2x256xf32>
    %332 = arith.truncf %328 : vector<2x64xf32> to vector<2x64xbf16>
    %cst_169 = arith.constant dense<0.000000e+00> : vector<2x256xf32>
    %333 = tpu.matmul %332, %324, %cst_169 {dimension_numbers = #tpu.dot_dimension_numbers<[1], [0], [0], [1], [0, 0, 1, 1], [], []>} : vector<2x64xbf16>, vector<64x256xbf16>, vector<2x256xf32> -> vector<2x256xf32>
    %334 = arith.addf %331, %333 : vector<2x256xf32>
    %335 = arith.addf %334, %327 : vector<2x256xf32>
    %336 = vector.extract_strided_slice %335 {offsets = [0, 0], sizes = [2, 192], strides = [1, 1]} : vector<2x256xf32> to vector<2x192xf32>
    %337 = arith.negf %336 : vector<2x192xf32>
    %338 = math.exp %337 : vector<2x192xf32>
    %cst_170 = arith.constant 1.000000e+00 : f32
    %339 = vector.broadcast %cst_170 : f32 to vector<2x192xf32>
    %340 = arith.addf %339, %338 : vector<2x192xf32>
    %341 = arith.divf %339, %340 : vector<2x192xf32>
    %342 = vector.extract_strided_slice %335 {offsets = [0, 192], sizes = [2, 64], strides = [1, 1]} : vector<2x256xf32> to vector<2x64xf32>
    %343 = math.tanh %342 : vector<2x64xf32>
    %344 = vector.extract_strided_slice %341 {offsets = [0, 0], sizes = [2, 64], strides = [1, 1]} : vector<2x192xf32> to vector<2x64xf32>
    %345 = vector.extract_strided_slice %341 {offsets = [0, 64], sizes = [2, 64], strides = [1, 1]} : vector<2x192xf32> to vector<2x64xf32>
    %346 = vector.extract_strided_slice %341 {offsets = [0, 128], sizes = [2, 64], strides = [1, 1]} : vector<2x192xf32> to vector<2x64xf32>
    %347 = arith.mulf %345, %328 : vector<2x64xf32>
    %348 = arith.mulf %344, %343 : vector<2x64xf32>
    %349 = arith.addf %347, %348 : vector<2x64xf32>
    %350 = math.tanh %349 : vector<2x64xf32>
    %351 = arith.mulf %346, %350 : vector<2x64xf32>
    %352 = arith.truncf %351 : vector<2x64xf32> to vector<2x64xbf16>
    %c2_i32_171 = arith.constant 2 : i32
    %353 = arith.muli %c0_i32_166, %c2_i32_171 : i32
    %354 = arith.index_cast %353 : i32 to index
    %c0_172 = arith.constant 0 : index
    %355 = vector.load %arg15[%354, %c0_172] : memref<16x64xbf16, #tpu.memory_space<vmem>>, vector<2x64xbf16>
    tpu.vector_store %arg15[%354, %c0_172], %352 {strides = array<i32>} : memref<16x64xbf16, #tpu.memory_space<vmem>>, vector<2x64xbf16>,
    %c1_i32_173 = arith.constant 1 : i32
    %c2_i32_174 = arith.constant 2 : i32
    %356 = arith.muli %c1_i32_173, %c2_i32_174 : i32
    %357 = arith.index_cast %356 : i32 to index
    %c0_175 = arith.constant 0 : index
    %358 = vector.load %arg13[%357, %c0_175] : memref<16x256xf32, #tpu.memory_space<vmem>>, vector<2x256xf32>
    %359 = arith.truncf %351 : vector<2x64xf32> to vector<2x64xbf16>
    %cst_176 = arith.constant dense<0.000000e+00> : vector<2x256xf32>
    %360 = tpu.matmul %359, %324, %cst_176 {dimension_numbers = #tpu.dot_dimension_numbers<[1], [0], [0], [1], [0, 0, 1, 1], [], []>} : vector<2x64xbf16>, vector<64x256xbf16>, vector<2x256xf32> -> vector<2x256xf32>
    %361 = arith.addf %358, %360 : vector<2x256xf32>
    %362 = arith.addf %361, %327 : vector<2x256xf32>
    %363 = vector.extract_strided_slice %362 {offsets = [0, 0], sizes = [2, 192], strides = [1, 1]} : vector<2x256xf32> to vector<2x192xf32>
    %364 = arith.negf %363 : vector<2x192xf32>
    %365 = math.exp %364 : vector<2x192xf32>
    %cst_177 = arith.constant 1.000000e+00 : f32
    %366 = vector.broadcast %cst_177 : f32 to vector<2x192xf32>
    %367 = arith.addf %366, %365 : vector<2x192xf32>
    %368 = arith.divf %366, %367 : vector<2x192xf32>
    %369 = vector.extract_strided_slice %362 {offsets = [0, 192], sizes = [2, 64], strides = [1, 1]} : vector<2x256xf32> to vector<2x64xf32>
    %370 = math.tanh %369 : vector<2x64xf32>
    %371 = vector.extract_strided_slice %368 {offsets = [0, 0], sizes = [2, 64], strides = [1, 1]} : vector<2x192xf32> to vector<2x64xf32>
    %372 = vector.extract_strided_slice %368 {offsets = [0, 64], sizes = [2, 64], strides = [1, 1]} : vector<2x192xf32> to vector<2x64xf32>
    %373 = vector.extract_strided_slice %368 {offsets = [0, 128], sizes = [2, 64], strides = [1, 1]} : vector<2x192xf32> to vector<2x64xf32>
    %374 = arith.mulf %372, %349 : vector<2x64xf32>
    %375 = arith.mulf %371, %370 : vector<2x64xf32>
    %376 = arith.addf %374, %375 : vector<2x64xf32>
    %377 = math.tanh %376 : vector<2x64xf32>
    %378 = arith.mulf %373, %377 : vector<2x64xf32>
    %379 = arith.truncf %378 : vector<2x64xf32> to vector<2x64xbf16>
    %c2_i32_178 = arith.constant 2 : i32
    %380 = arith.muli %c1_i32_173, %c2_i32_178 : i32
    %381 = arith.index_cast %380 : i32 to index
    %c0_179 = arith.constant 0 : index
    %382 = vector.load %arg15[%381, %c0_179] : memref<16x64xbf16, #tpu.memory_space<vmem>>, vector<2x64xbf16>
    tpu.vector_store %arg15[%381, %c0_179], %379 {strides = array<i32>} : memref<16x64xbf16, #tpu.memory_space<vmem>>, vector<2x64xbf16>,
    %c2_i32_180 = arith.constant 2 : i32
    %c2_i32_181 = arith.constant 2 : i32
    %383 = arith.muli %c2_i32_180, %c2_i32_181 : i32
    %384 = arith.index_cast %383 : i32 to index
    %c0_182 = arith.constant 0 : index
    %385 = vector.load %arg13[%384, %c0_182] : memref<16x256xf32, #tpu.memory_space<vmem>>, vector<2x256xf32>
    %386 = arith.truncf %378 : vector<2x64xf32> to vector<2x64xbf16>
    %cst_183 = arith.constant dense<0.000000e+00> : vector<2x256xf32>
    %387 = tpu.matmul %386, %324, %cst_183 {dimension_numbers = #tpu.dot_dimension_numbers<[1], [0], [0], [1], [0, 0, 1, 1], [], []>} : vector<2x64xbf16>, vector<64x256xbf16>, vector<2x256xf32> -> vector<2x256xf32>
    %388 = arith.addf %385, %387 : vector<2x256xf32>
    %389 = arith.addf %388, %327 : vector<2x256xf32>
    %390 = vector.extract_strided_slice %389 {offsets = [0, 0], sizes = [2, 192], strides = [1, 1]} : vector<2x256xf32> to vector<2x192xf32>
    %391 = arith.negf %390 : vector<2x192xf32>
    %392 = math.exp %391 : vector<2x192xf32>
    %cst_184 = arith.constant 1.000000e+00 : f32
    %393 = vector.broadcast %cst_184 : f32 to vector<2x192xf32>
    %394 = arith.addf %393, %392 : vector<2x192xf32>
    %395 = arith.divf %393, %394 : vector<2x192xf32>
    %396 = vector.extract_strided_slice %389 {offsets = [0, 192], sizes = [2, 64], strides = [1, 1]} : vector<2x256xf32> to vector<2x64xf32>
    %397 = math.tanh %396 : vector<2x64xf32>
    %398 = vector.extract_strided_slice %395 {offsets = [0, 0], sizes = [2, 64], strides = [1, 1]} : vector<2x192xf32> to vector<2x64xf32>
    %399 = vector.extract_strided_slice %395 {offsets = [0, 64], sizes = [2, 64], strides = [1, 1]} : vector<2x192xf32> to vector<2x64xf32>
    %400 = vector.extract_strided_slice %395 {offsets = [0, 128], sizes = [2, 64], strides = [1, 1]} : vector<2x192xf32> to vector<2x64xf32>
    %401 = arith.mulf %399, %376 : vector<2x64xf32>
    %402 = arith.mulf %398, %397 : vector<2x64xf32>
    %403 = arith.addf %401, %402 : vector<2x64xf32>
    %404 = math.tanh %403 : vector<2x64xf32>
    %405 = arith.mulf %400, %404 : vector<2x64xf32>
    %406 = arith.truncf %405 : vector<2x64xf32> to vector<2x64xbf16>
    %c2_i32_185 = arith.constant 2 : i32
    %407 = arith.muli %c2_i32_180, %c2_i32_185 : i32
    %408 = arith.index_cast %407 : i32 to index
    %c0_186 = arith.constant 0 : index
    %409 = vector.load %arg15[%408, %c0_186] : memref<16x64xbf16, #tpu.memory_space<vmem>>, vector<2x64xbf16>
    tpu.vector_store %arg15[%408, %c0_186], %406 {strides = array<i32>} : memref<16x64xbf16, #tpu.memory_space<vmem>>, vector<2x64xbf16>,
    %c3_i32_187 = arith.constant 3 : i32
    %c2_i32_188 = arith.constant 2 : i32
    %410 = arith.muli %c3_i32_187, %c2_i32_188 : i32
    %411 = arith.index_cast %410 : i32 to index
    %c0_189 = arith.constant 0 : index
    %412 = vector.load %arg13[%411, %c0_189] : memref<16x256xf32, #tpu.memory_space<vmem>>, vector<2x256xf32>
    %413 = arith.truncf %405 : vector<2x64xf32> to vector<2x64xbf16>
    %cst_190 = arith.constant dense<0.000000e+00> : vector<2x256xf32>
    %414 = tpu.matmul %413, %324, %cst_190 {dimension_numbers = #tpu.dot_dimension_numbers<[1], [0], [0], [1], [0, 0, 1, 1], [], []>} : vector<2x64xbf16>, vector<64x256xbf16>, vector<2x256xf32> -> vector<2x256xf32>
    %415 = arith.addf %412, %414 : vector<2x256xf32>
    %416 = arith.addf %415, %327 : vector<2x256xf32>
    %417 = vector.extract_strided_slice %416 {offsets = [0, 0], sizes = [2, 192], strides = [1, 1]} : vector<2x256xf32> to vector<2x192xf32>
    %418 = arith.negf %417 : vector<2x192xf32>
    %419 = math.exp %418 : vector<2x192xf32>
    %cst_191 = arith.constant 1.000000e+00 : f32
    %420 = vector.broadcast %cst_191 : f32 to vector<2x192xf32>
    %421 = arith.addf %420, %419 : vector<2x192xf32>
    %422 = arith.divf %420, %421 : vector<2x192xf32>
    %423 = vector.extract_strided_slice %416 {offsets = [0, 192], sizes = [2, 64], strides = [1, 1]} : vector<2x256xf32> to vector<2x64xf32>
    %424 = math.tanh %423 : vector<2x64xf32>
    %425 = vector.extract_strided_slice %422 {offsets = [0, 0], sizes = [2, 64], strides = [1, 1]} : vector<2x192xf32> to vector<2x64xf32>
    %426 = vector.extract_strided_slice %422 {offsets = [0, 64], sizes = [2, 64], strides = [1, 1]} : vector<2x192xf32> to vector<2x64xf32>
    %427 = vector.extract_strided_slice %422 {offsets = [0, 128], sizes = [2, 64], strides = [1, 1]} : vector<2x192xf32> to vector<2x64xf32>
    %428 = arith.mulf %426, %403 : vector<2x64xf32>
    %429 = arith.mulf %425, %424 : vector<2x64xf32>
    %430 = arith.addf %428, %429 : vector<2x64xf32>
    %431 = math.tanh %430 : vector<2x64xf32>
    %432 = arith.mulf %427, %431 : vector<2x64xf32>
    %433 = arith.truncf %432 : vector<2x64xf32> to vector<2x64xbf16>
    %c2_i32_192 = arith.constant 2 : i32
    %434 = arith.muli %c3_i32_187, %c2_i32_192 : i32
    %435 = arith.index_cast %434 : i32 to index
    %c0_193 = arith.constant 0 : index
    %436 = vector.load %arg15[%435, %c0_193] : memref<16x64xbf16, #tpu.memory_space<vmem>>, vector<2x64xbf16>
    tpu.vector_store %arg15[%435, %c0_193], %433 {strides = array<i32>} : memref<16x64xbf16, #tpu.memory_space<vmem>>, vector<2x64xbf16>,
    %c4_i32_194 = arith.constant 4 : i32
    %c2_i32_195 = arith.constant 2 : i32
    %437 = arith.muli %c4_i32_194, %c2_i32_195 : i32
    %438 = arith.index_cast %437 : i32 to index
    %c0_196 = arith.constant 0 : index
    %439 = vector.load %arg13[%438, %c0_196] : memref<16x256xf32, #tpu.memory_space<vmem>>, vector<2x256xf32>
    %440 = arith.truncf %432 : vector<2x64xf32> to vector<2x64xbf16>
    %cst_197 = arith.constant dense<0.000000e+00> : vector<2x256xf32>
    %441 = tpu.matmul %440, %324, %cst_197 {dimension_numbers = #tpu.dot_dimension_numbers<[1], [0], [0], [1], [0, 0, 1, 1], [], []>} : vector<2x64xbf16>, vector<64x256xbf16>, vector<2x256xf32> -> vector<2x256xf32>
    %442 = arith.addf %439, %441 : vector<2x256xf32>
    %443 = arith.addf %442, %327 : vector<2x256xf32>
    %444 = vector.extract_strided_slice %443 {offsets = [0, 0], sizes = [2, 192], strides = [1, 1]} : vector<2x256xf32> to vector<2x192xf32>
    %445 = arith.negf %444 : vector<2x192xf32>
    %446 = math.exp %445 : vector<2x192xf32>
    %cst_198 = arith.constant 1.000000e+00 : f32
    %447 = vector.broadcast %cst_198 : f32 to vector<2x192xf32>
    %448 = arith.addf %447, %446 : vector<2x192xf32>
    %449 = arith.divf %447, %448 : vector<2x192xf32>
    %450 = vector.extract_strided_slice %443 {offsets = [0, 192], sizes = [2, 64], strides = [1, 1]} : vector<2x256xf32> to vector<2x64xf32>
    %451 = math.tanh %450 : vector<2x64xf32>
    %452 = vector.extract_strided_slice %449 {offsets = [0, 0], sizes = [2, 64], strides = [1, 1]} : vector<2x192xf32> to vector<2x64xf32>
    %453 = vector.extract_strided_slice %449 {offsets = [0, 64], sizes = [2, 64], strides = [1, 1]} : vector<2x192xf32> to vector<2x64xf32>
    %454 = vector.extract_strided_slice %449 {offsets = [0, 128], sizes = [2, 64], strides = [1, 1]} : vector<2x192xf32> to vector<2x64xf32>
    %455 = arith.mulf %453, %430 : vector<2x64xf32>
    %456 = arith.mulf %452, %451 : vector<2x64xf32>
    %457 = arith.addf %455, %456 : vector<2x64xf32>
    %458 = math.tanh %457 : vector<2x64xf32>
    %459 = arith.mulf %454, %458 : vector<2x64xf32>
    %460 = arith.truncf %459 : vector<2x64xf32> to vector<2x64xbf16>
    %c2_i32_199 = arith.constant 2 : i32
    %461 = arith.muli %c4_i32_194, %c2_i32_199 : i32
    %462 = arith.index_cast %461 : i32 to index
    %c0_200 = arith.constant 0 : index
    %463 = vector.load %arg15[%462, %c0_200] : memref<16x64xbf16, #tpu.memory_space<vmem>>, vector<2x64xbf16>
    tpu.vector_store %arg15[%462, %c0_200], %460 {strides = array<i32>} : memref<16x64xbf16, #tpu.memory_space<vmem>>, vector<2x64xbf16>,
    %c5_i32_201 = arith.constant 5 : i32
    %c2_i32_202 = arith.constant 2 : i32
    %464 = arith.muli %c5_i32_201, %c2_i32_202 : i32
    %465 = arith.index_cast %464 : i32 to index
    %c0_203 = arith.constant 0 : index
    %466 = vector.load %arg13[%465, %c0_203] : memref<16x256xf32, #tpu.memory_space<vmem>>, vector<2x256xf32>
    %467 = arith.truncf %459 : vector<2x64xf32> to vector<2x64xbf16>
    %cst_204 = arith.constant dense<0.000000e+00> : vector<2x256xf32>
    %468 = tpu.matmul %467, %324, %cst_204 {dimension_numbers = #tpu.dot_dimension_numbers<[1], [0], [0], [1], [0, 0, 1, 1], [], []>} : vector<2x64xbf16>, vector<64x256xbf16>, vector<2x256xf32> -> vector<2x256xf32>
    %469 = arith.addf %466, %468 : vector<2x256xf32>
    %470 = arith.addf %469, %327 : vector<2x256xf32>
    %471 = vector.extract_strided_slice %470 {offsets = [0, 0], sizes = [2, 192], strides = [1, 1]} : vector<2x256xf32> to vector<2x192xf32>
    %472 = arith.negf %471 : vector<2x192xf32>
    %473 = math.exp %472 : vector<2x192xf32>
    %cst_205 = arith.constant 1.000000e+00 : f32
    %474 = vector.broadcast %cst_205 : f32 to vector<2x192xf32>
    %475 = arith.addf %474, %473 : vector<2x192xf32>
    %476 = arith.divf %474, %475 : vector<2x192xf32>
    %477 = vector.extract_strided_slice %470 {offsets = [0, 192], sizes = [2, 64], strides = [1, 1]} : vector<2x256xf32> to vector<2x64xf32>
    %478 = math.tanh %477 : vector<2x64xf32>
    %479 = vector.extract_strided_slice %476 {offsets = [0, 0], sizes = [2, 64], strides = [1, 1]} : vector<2x192xf32> to vector<2x64xf32>
    %480 = vector.extract_strided_slice %476 {offsets = [0, 64], sizes = [2, 64], strides = [1, 1]} : vector<2x192xf32> to vector<2x64xf32>
    %481 = vector.extract_strided_slice %476 {offsets = [0, 128], sizes = [2, 64], strides = [1, 1]} : vector<2x192xf32> to vector<2x64xf32>
    %482 = arith.mulf %480, %457 : vector<2x64xf32>
    %483 = arith.mulf %479, %478 : vector<2x64xf32>
    %484 = arith.addf %482, %483 : vector<2x64xf32>
    %485 = math.tanh %484 : vector<2x64xf32>
    %486 = arith.mulf %481, %485 : vector<2x64xf32>
    %487 = arith.truncf %486 : vector<2x64xf32> to vector<2x64xbf16>
    %c2_i32_206 = arith.constant 2 : i32
    %488 = arith.muli %c5_i32_201, %c2_i32_206 : i32
    %489 = arith.index_cast %488 : i32 to index
    %c0_207 = arith.constant 0 : index
    %490 = vector.load %arg15[%489, %c0_207] : memref<16x64xbf16, #tpu.memory_space<vmem>>, vector<2x64xbf16>
    tpu.vector_store %arg15[%489, %c0_207], %487 {strides = array<i32>} : memref<16x64xbf16, #tpu.memory_space<vmem>>, vector<2x64xbf16>,
    %c6_i32_208 = arith.constant 6 : i32
    %c2_i32_209 = arith.constant 2 : i32
    %491 = arith.muli %c6_i32_208, %c2_i32_209 : i32
    %492 = arith.index_cast %491 : i32 to index
    %c0_210 = arith.constant 0 : index
    %493 = vector.load %arg13[%492, %c0_210] : memref<16x256xf32, #tpu.memory_space<vmem>>, vector<2x256xf32>
    %494 = arith.truncf %486 : vector<2x64xf32> to vector<2x64xbf16>
    %cst_211 = arith.constant dense<0.000000e+00> : vector<2x256xf32>
    %495 = tpu.matmul %494, %324, %cst_211 {dimension_numbers = #tpu.dot_dimension_numbers<[1], [0], [0], [1], [0, 0, 1, 1], [], []>} : vector<2x64xbf16>, vector<64x256xbf16>, vector<2x256xf32> -> vector<2x256xf32>
    %496 = arith.addf %493, %495 : vector<2x256xf32>
    %497 = arith.addf %496, %327 : vector<2x256xf32>
    %498 = vector.extract_strided_slice %497 {offsets = [0, 0], sizes = [2, 192], strides = [1, 1]} : vector<2x256xf32> to vector<2x192xf32>
    %499 = arith.negf %498 : vector<2x192xf32>
    %500 = math.exp %499 : vector<2x192xf32>
    %cst_212 = arith.constant 1.000000e+00 : f32
    %501 = vector.broadcast %cst_212 : f32 to vector<2x192xf32>
    %502 = arith.addf %501, %500 : vector<2x192xf32>
    %503 = arith.divf %501, %502 : vector<2x192xf32>
    %504 = vector.extract_strided_slice %497 {offsets = [0, 192], sizes = [2, 64], strides = [1, 1]} : vector<2x256xf32> to vector<2x64xf32>
    %505 = math.tanh %504 : vector<2x64xf32>
    %506 = vector.extract_strided_slice %503 {offsets = [0, 0], sizes = [2, 64], strides = [1, 1]} : vector<2x192xf32> to vector<2x64xf32>
    %507 = vector.extract_strided_slice %503 {offsets = [0, 64], sizes = [2, 64], strides = [1, 1]} : vector<2x192xf32> to vector<2x64xf32>
    %508 = vector.extract_strided_slice %503 {offsets = [0, 128], sizes = [2, 64], strides = [1, 1]} : vector<2x192xf32> to vector<2x64xf32>
    %509 = arith.mulf %507, %484 : vector<2x64xf32>
    %510 = arith.mulf %506, %505 : vector<2x64xf32>
    %511 = arith.addf %509, %510 : vector<2x64xf32>
    %512 = math.tanh %511 : vector<2x64xf32>
    %513 = arith.mulf %508, %512 : vector<2x64xf32>
    %514 = arith.truncf %513 : vector<2x64xf32> to vector<2x64xbf16>
    %c2_i32_213 = arith.constant 2 : i32
    %515 = arith.muli %c6_i32_208, %c2_i32_213 : i32
    %516 = arith.index_cast %515 : i32 to index
    %c0_214 = arith.constant 0 : index
    %517 = vector.load %arg15[%516, %c0_214] : memref<16x64xbf16, #tpu.memory_space<vmem>>, vector<2x64xbf16>
    tpu.vector_store %arg15[%516, %c0_214], %514 {strides = array<i32>} : memref<16x64xbf16, #tpu.memory_space<vmem>>, vector<2x64xbf16>,
    %c7_i32_215 = arith.constant 7 : i32
    %c2_i32_216 = arith.constant 2 : i32
    %518 = arith.muli %c7_i32_215, %c2_i32_216 : i32
    %519 = arith.index_cast %518 : i32 to index
    %c0_217 = arith.constant 0 : index
    %520 = vector.load %arg13[%519, %c0_217] : memref<16x256xf32, #tpu.memory_space<vmem>>, vector<2x256xf32>
    %521 = arith.truncf %513 : vector<2x64xf32> to vector<2x64xbf16>
    %cst_218 = arith.constant dense<0.000000e+00> : vector<2x256xf32>
    %522 = tpu.matmul %521, %324, %cst_218 {dimension_numbers = #tpu.dot_dimension_numbers<[1], [0], [0], [1], [0, 0, 1, 1], [], []>} : vector<2x64xbf16>, vector<64x256xbf16>, vector<2x256xf32> -> vector<2x256xf32>
    %523 = arith.addf %520, %522 : vector<2x256xf32>
    %524 = arith.addf %523, %327 : vector<2x256xf32>
    %525 = vector.extract_strided_slice %524 {offsets = [0, 0], sizes = [2, 192], strides = [1, 1]} : vector<2x256xf32> to vector<2x192xf32>
    %526 = arith.negf %525 : vector<2x192xf32>
    %527 = math.exp %526 : vector<2x192xf32>
    %cst_219 = arith.constant 1.000000e+00 : f32
    %528 = vector.broadcast %cst_219 : f32 to vector<2x192xf32>
    %529 = arith.addf %528, %527 : vector<2x192xf32>
    %530 = arith.divf %528, %529 : vector<2x192xf32>
    %531 = vector.extract_strided_slice %524 {offsets = [0, 192], sizes = [2, 64], strides = [1, 1]} : vector<2x256xf32> to vector<2x64xf32>
    %532 = math.tanh %531 : vector<2x64xf32>
    %533 = vector.extract_strided_slice %530 {offsets = [0, 0], sizes = [2, 64], strides = [1, 1]} : vector<2x192xf32> to vector<2x64xf32>
    %534 = vector.extract_strided_slice %530 {offsets = [0, 64], sizes = [2, 64], strides = [1, 1]} : vector<2x192xf32> to vector<2x64xf32>
    %535 = vector.extract_strided_slice %530 {offsets = [0, 128], sizes = [2, 64], strides = [1, 1]} : vector<2x192xf32> to vector<2x64xf32>
    %536 = arith.mulf %534, %511 : vector<2x64xf32>
    %537 = arith.mulf %533, %532 : vector<2x64xf32>
    %538 = arith.addf %536, %537 : vector<2x64xf32>
    %539 = math.tanh %538 : vector<2x64xf32>
    %540 = arith.mulf %535, %539 : vector<2x64xf32>
    %541 = arith.truncf %540 : vector<2x64xf32> to vector<2x64xbf16>
    %c2_i32_220 = arith.constant 2 : i32
    %542 = arith.muli %c7_i32_215, %c2_i32_220 : i32
    %543 = arith.index_cast %542 : i32 to index
    %c0_221 = arith.constant 0 : index
    %544 = vector.load %arg15[%543, %c0_221] : memref<16x64xbf16, #tpu.memory_space<vmem>>, vector<2x64xbf16>
    tpu.vector_store %arg15[%543, %c0_221], %541 {strides = array<i32>} : memref<16x64xbf16, #tpu.memory_space<vmem>>, vector<2x64xbf16>,
    %c8_i32_222 = arith.constant 8 : i32
    %c0_223 = arith.constant 0 : index
    %c0_224 = arith.constant 0 : index
    %545 = vector.load %arg15[%c0_223, %c0_224] : memref<16x64xbf16, #tpu.memory_space<vmem>>, vector<2x64xbf16>
    %546 = arith.extf %545 : vector<2x64xbf16> to vector<2x64xf32>
    %c2_225 = arith.constant 2 : index
    %c0_226 = arith.constant 0 : index
    %547 = vector.load %arg15[%c2_225, %c0_226] : memref<16x64xbf16, #tpu.memory_space<vmem>>, vector<2x64xbf16>
    %548 = arith.extf %547 : vector<2x64xbf16> to vector<2x64xf32>
    %549 = arith.addf %546, %548 : vector<2x64xf32>
    %550 = arith.maximumf %546, %548 : vector<2x64xf32>
    %c4_227 = arith.constant 4 : index
    %c0_228 = arith.constant 0 : index
    %551 = vector.load %arg15[%c4_227, %c0_228] : memref<16x64xbf16, #tpu.memory_space<vmem>>, vector<2x64xbf16>
    %552 = arith.extf %551 : vector<2x64xbf16> to vector<2x64xf32>
    %553 = arith.addf %549, %552 : vector<2x64xf32>
    %554 = arith.maximumf %550, %552 : vector<2x64xf32>
    %c6_229 = arith.constant 6 : index
    %c0_230 = arith.constant 0 : index
    %555 = vector.load %arg15[%c6_229, %c0_230] : memref<16x64xbf16, #tpu.memory_space<vmem>>, vector<2x64xbf16>
    %556 = arith.extf %555 : vector<2x64xbf16> to vector<2x64xf32>
    %557 = arith.addf %553, %556 : vector<2x64xf32>
    %558 = arith.maximumf %554, %556 : vector<2x64xf32>
    %c8_231 = arith.constant 8 : index
    %c0_232 = arith.constant 0 : index
    %559 = vector.load %arg15[%c8_231, %c0_232] : memref<16x64xbf16, #tpu.memory_space<vmem>>, vector<2x64xbf16>
    %560 = arith.extf %559 : vector<2x64xbf16> to vector<2x64xf32>
    %561 = arith.addf %557, %560 : vector<2x64xf32>
    %562 = arith.maximumf %558, %560 : vector<2x64xf32>
    %c10_233 = arith.constant 10 : index
    %c0_234 = arith.constant 0 : index
    %563 = vector.load %arg15[%c10_233, %c0_234] : memref<16x64xbf16, #tpu.memory_space<vmem>>, vector<2x64xbf16>
    %564 = arith.extf %563 : vector<2x64xbf16> to vector<2x64xf32>
    %565 = arith.addf %561, %564 : vector<2x64xf32>
    %566 = arith.maximumf %562, %564 : vector<2x64xf32>
    %c12_235 = arith.constant 12 : index
    %c0_236 = arith.constant 0 : index
    %567 = vector.load %arg15[%c12_235, %c0_236] : memref<16x64xbf16, #tpu.memory_space<vmem>>, vector<2x64xbf16>
    %568 = arith.extf %567 : vector<2x64xbf16> to vector<2x64xf32>
    %569 = arith.addf %565, %568 : vector<2x64xf32>
    %570 = arith.maximumf %566, %568 : vector<2x64xf32>
    %c14_237 = arith.constant 14 : index
    %c0_238 = arith.constant 0 : index
    %571 = vector.load %arg15[%c14_237, %c0_238] : memref<16x64xbf16, #tpu.memory_space<vmem>>, vector<2x64xbf16>
    %572 = arith.extf %571 : vector<2x64xbf16> to vector<2x64xf32>
    %573 = arith.addf %569, %572 : vector<2x64xf32>
    %574 = arith.maximumf %570, %572 : vector<2x64xf32>
    %cst_239 = arith.constant 1.250000e-01 : f32
    %575 = vector.broadcast %cst_239 : f32 to vector<2x64xf32>
    %576 = arith.mulf %573, %575 : vector<2x64xf32>
    %577 = tpu.concatenate %574, %576 in 1 : vector<2x64xf32>, vector<2x64xf32> -> vector<2x128xf32>
    %c0_240 = arith.constant 0 : index
    %c0_241 = arith.constant 0 : index
    %578 = vector.load %arg8[%c0_240, %c0_241] : memref<128x256xf32, #tpu.memory_space<vmem>>, vector<128x256xf32>
    %cst_242 = arith.constant dense<0.000000e+00> : vector<2x256xf32>
    %579 = tpu.matmul %577, %578, %cst_242 {dimension_numbers = #tpu.dot_dimension_numbers<[1], [0], [0], [1], [0, 0, 1, 1], [], []>} : vector<2x128xf32>, vector<128x256xf32>, vector<2x256xf32> -> vector<2x256xf32>
    %c0_243 = arith.constant 0 : index
    %c0_244 = arith.constant 0 : index
    %580 = vector.load %arg9[%c0_243, %c0_244] : memref<1x256xf32, #tpu.memory_space<vmem>>, vector<1x256xf32>
    %581 = vector.broadcast %580 : vector<1x256xf32> to vector<2x256xf32>
    %582 = arith.addf %579, %581 : vector<2x256xf32>
    %583 = vector.extract_strided_slice %582 {offsets = [0, 0], sizes = [2, 128], strides = [1, 1]} : vector<2x256xf32> to vector<2x128xf32>
    %cst_245 = arith.constant 0.000000e+00 : f32
    %584 = vector.broadcast %cst_245 : f32 to vector<2x128xf32>
    %585 = arith.maximumf %583, %584 : vector<2x128xf32>
    %586 = arith.addf %577, %585 : vector<2x128xf32>
    %587 = vector.extract_strided_slice %582 {offsets = [0, 128], sizes = [2, 128], strides = [1, 1]} : vector<2x256xf32> to vector<2x128xf32>
    %cst_246 = arith.constant 0.000000e+00 : f32
    %588 = vector.broadcast %cst_246 : f32 to vector<2x128xf32>
    %589 = arith.maximumf %587, %588 : vector<2x128xf32>
    %590 = arith.addf %586, %589 : vector<2x128xf32>
    %c0_247 = arith.constant 0 : index
    %c0_248 = arith.constant 0 : index
    %591 = vector.load %arg10[%c0_247, %c0_248] : memref<128x128xf32, #tpu.memory_space<vmem>>, vector<128x128xf32>
    %cst_249 = arith.constant dense<0.000000e+00> : vector<2x128xf32>
    %592 = tpu.matmul %590, %591, %cst_249 {dimension_numbers = #tpu.dot_dimension_numbers<[1], [0], [0], [1], [0, 0, 1, 1], [], []>} : vector<2x128xf32>, vector<128x128xf32>, vector<2x128xf32> -> vector<2x128xf32>
    %c0_250 = arith.constant 0 : index
    %c0_251 = arith.constant 0 : index
    %593 = vector.load %arg11[%c0_250, %c0_251] : memref<1x128xf32, #tpu.memory_space<vmem>>, vector<1x128xf32>
    %594 = vector.broadcast %593 : vector<1x128xf32> to vector<2x128xf32>
    %595 = arith.addf %592, %594 : vector<2x128xf32>
    %c0_252 = arith.constant 0 : index
    %c0_253 = arith.constant 0 : index
    %c0_254 = arith.constant 0 : index
    %596 = vector.load %arg12[%c0_252, %c0_253, %c0_254] : memref<1x2x128xf32, #tpu.memory_space<vmem>>, vector<1x2x128xf32>
    %597 = vector.shape_cast %596 : vector<1x2x128xf32> to vector<2x128xf32>
    %598 = vector.shape_cast %595 : vector<2x128xf32> to vector<1x2x128xf32>
    tpu.vector_store %arg12[%c0_252, %c0_253, %c0_254], %598 {strides = array<i32>} : memref<1x2x128xf32, #tpu.memory_space<vmem>>, vector<1x2x128xf32>,
    return
  }
  func.func @transform_0(%arg0: i32) -> (i32, i32, i32) {
    %c0_i32 = arith.constant 0 : i32
    %c0_i32_0 = arith.constant 0 : i32
    %c0_i32_1 = arith.constant 0 : i32
    return %arg0, %c0_i32, %c0_i32_0 : i32, i32, i32
  }
  func.func @transform_1(%arg0: i32) -> (i32, i32) {
    %c0_i32 = arith.constant 0 : i32
    %c0_i32_0 = arith.constant 0 : i32
    %c0_i32_1 = arith.constant 0 : i32
    return %c0_i32, %c0_i32_0 : i32, i32
  }
  func.func @transform_2(%arg0: i32) -> (i32, i32) {
    %c0_i32 = arith.constant 0 : i32
    %c0_i32_0 = arith.constant 0 : i32
    %c0_i32_1 = arith.constant 0 : i32
    return %c0_i32, %c0_i32_0 : i32, i32
  }
  func.func @transform_3(%arg0: i32) -> (i32, i32) {
    %c0_i32 = arith.constant 0 : i32
    %c0_i32_0 = arith.constant 0 : i32
    %c0_i32_1 = arith.constant 0 : i32
    return %c0_i32, %c0_i32_0 : i32, i32
  }
  func.func @transform_4(%arg0: i32) -> (i32, i32) {
    %c0_i32 = arith.constant 0 : i32
    %c0_i32_0 = arith.constant 0 : i32
    %c0_i32_1 = arith.constant 0 : i32
    return %c0_i32, %c0_i32_0 : i32, i32
  }
  func.func @transform_5(%arg0: i32) -> (i32, i32) {
    %c0_i32 = arith.constant 0 : i32
    %c0_i32_0 = arith.constant 0 : i32
    %c0_i32_1 = arith.constant 0 : i32
    return %c0_i32, %c0_i32_0 : i32, i32
  }
  func.func @transform_6(%arg0: i32) -> (i32, i32) {
    %c0_i32 = arith.constant 0 : i32
    %c0_i32_0 = arith.constant 0 : i32
    %c0_i32_1 = arith.constant 0 : i32
    return %c0_i32, %c0_i32_0 : i32, i32
  }
  func.func @transform_7(%arg0: i32) -> (i32, i32) {
    %c0_i32 = arith.constant 0 : i32
    %c0_i32_0 = arith.constant 0 : i32
    %c0_i32_1 = arith.constant 0 : i32
    return %c0_i32, %c0_i32_0 : i32, i32
  }
  func.func @transform_8(%arg0: i32) -> (i32, i32) {
    %c0_i32 = arith.constant 0 : i32
    %c0_i32_0 = arith.constant 0 : i32
    %c0_i32_1 = arith.constant 0 : i32
    return %c0_i32, %c0_i32_0 : i32, i32
  }
  func.func @transform_9(%arg0: i32) -> (i32, i32) {
    %c0_i32 = arith.constant 0 : i32
    %c0_i32_0 = arith.constant 0 : i32
    %c0_i32_1 = arith.constant 0 : i32
    return %c0_i32, %c0_i32_0 : i32, i32
  }
  func.func @transform_10(%arg0: i32) -> (i32, i32) {
    %c0_i32 = arith.constant 0 : i32
    %c0_i32_0 = arith.constant 0 : i32
    %c0_i32_1 = arith.constant 0 : i32
    return %c0_i32, %c0_i32_0 : i32, i32
  }
  func.func @transform_11(%arg0: i32) -> (i32, i32, i32) {
    %c0_i32 = arith.constant 0 : i32
    %c0_i32_0 = arith.constant 0 : i32
    %c0_i32_1 = arith.constant 0 : i32
    return %arg0, %c0_i32, %c0_i32_0 : i32, i32, i32
  }
}

</mosaic_0001>

<bundles_post_ra>
// kernel: neural_net_fastai_forward.1
= control target key start
LH: loop header
LB: loop body
LE: loop exit
PB: predicated region body
PF: predicated region fallthrough
CT: control target
= control target key end

     0   :  { %16 = vsyncpa [#allocation6], 0  ;;  %s4380_s0 = inlined_call_operand.vmem [shape: bf16[2,16,128], index: 0, kind: input, shape index: {}]   ;;  %s4381_s1 = inlined_call_operand.vmem [shape: bf16[128,256], index: 1, kind: input, shape index: {}]   ;;  %s4382_s2 = inlined_call_operand.vmem [shape: bf16[64,256], index: 2, kind: input, shape index: {}]   ;;  %s4383_s3 = inlined_call_operand.vmem [shape: f32[1,256], index: 3, kind: input, shape index: {}]   ;;  %s4384_s4 = inlined_call_operand.vmem [shape: bf16[64,256], index: 4, kind: input, shape index: {}]   ;;  %s4385_s5 = inlined_call_operand.vmem [shape: bf16[64,256], index: 5, kind: input, shape index: {}]   ;;  %s4386_s6 = inlined_call_operand.vmem [shape: f32[1,256], index: 6, kind: input, shape index: {}]   ;;  %s4387_s7 = inlined_call_operand.vmem [shape: f32[128,256], index: 7, kind: input, shape index: {}]   ;;  %s4388_s8 = inlined_call_operand.vmem [shape: f32[1,256], index: 8, kind: input, shape index: {}]   ;;  %s4389_s9 = inlined_call_operand.vmem [shape: f32[128,128], index: 9, kind: input, shape index: {}]   ;;  %s4390_s10 = inlined_call_operand.vmem [shape: f32[1,128], index: 10, kind: input, shape index: {}]   ;;  %s4391_s11 = inlined_call_operand.hbm [shape: f32[2,2,128], index: 11, kind: output, shape index: {}]  }
   0x1   :  { %18 = vsyncpa [#allocation6 + $0x1], 0  ;;  %s3511_s17 = smov 0   ;;  %s3513_s18 = smov 0  }
   0x2   :  { %s3515_s19 = smov 0   ;;  %s3517_s20 = smov 0  }
   0x3 LB: > { %4395 = sst [smem:[#allocation8_spill]] %s3439_s19  ;;  %s3532_s21 = sadd.s32 4294967295, %s3443_s20   ;;  %s3443_s20 = sphi %s3517_s20, %s4406_s20   ;;  %s3439_s19 = sphi %s3515_s19, %s4408_s19   ;;  %s3435_s18 = sphi %s3513_s18, %s4410_s18   ;;  %s3431_s17 = sphi %s3511_s17, %s4409_s17  }
   0x4   : > { %s2875_s22 = sadd.s32 4294967294, %s3443_s20   ;;  %s3536_s23 = sadd.s32 1, %s3443_s20  }
   0x5   : > { %4396 = sst [smem:[#allocation9_spill]] %s3536_s23  ;;  %s267_s24 = sadd.s32 1, %s3439_s19 }
   0x6   : > { %s264_s25 = ssub.s32 %s3443_s20, %s3536_s23  ;;  %p277_p0 = scmp.ne.s32.totalorder %s3439_s19, %s3435_s18 }
   0x7   : > { %p265_p1 = scmp.eq.s32.totalorder %s264_s25, 0  ;;  %p278_p2 = scmp.eq.s32.totalorder %s3532_s21, 1 }
   0x8   : > { %p283_p3 = scmp.ne.s32.totalorder %s3435_s18, %s3431_s17  ;;  %p284_p4 = scmp.eq.s32.totalorder %s2875_s22, 1 }
   0x9   : > { %s3547_s26 = scalar_select %p265_p1, %s3439_s19, %s267_s24  }
   0xa   : > { %p3549_p5 = por %p278_p2, %p277_p0  ;;  %p3553_p6 = por %p284_p4, %p283_p3 }
   0xb   : > { %4397 = sst [smem:[#allocation10_spill]] %s3547_s26  ;;  %p2878_p7 = scmp.ge.s32.totalorder %s3443_s20, 1 }
   0xc   : > { %p340_p8 = scmp.lt.s32.totalorder %s3443_s20, 3 }
   0xe   : > { %p341_p9 = pnand %p2878_p7, %p340_p8 }
   0xf   : > { %v3128_v0 = vld [vmem:[%s4381_s1 + $0x4] ss:$8 sps:$4 sm:$0xff] (!%p341_p9)   ;;  %p380_p10 = scmp.lt.s32.totalorder (!%p341_p9), %s3532_s21, 1  ;;  %v3130_v1 = vld [vmem:[%s4381_s1] ss:$8 sps:$4 sm:$0xff] (!%p341_p9)   ;;  %v3445_v2 = vmov (!%p341_p9), 0   ;;  %v386_v26 = vlaneseq (!%p341_p9) }
  0x10   : > { %344 = sbr.rel (%p341_p9) target bundleno = 10219 (0x27eb), region = 64  ;;  %552 = vmatprep.mubr.bf16.mxu0 (!%p341_p9), %v3445_v2  ;;  %761 = vmatprep.mubr.bf16.mxu1 (!%p341_p9), %v3445_v2  ;;  %v3131_v3 = vld [vmem:[%s4381_s1 + $0x14] ss:$8 sps:$4 sm:$0xff] (!%p341_p9)   ;;  %v3133_v4 = vld [vmem:[%s4381_s1 + $0x10] ss:$8 sps:$4 sm:$0xff] (!%p341_p9)   ;;  %vm805_vm2 = vcmask (!%p341_p9), 516096  }
  0x11   : > { %520 = vmatprep.subr.bf16.mxu0 (!%p341_p9), %v3128_v0  ;;  %v3134_v5 = vld [vmem:[%s4381_s1 + $0x24] ss:$8 sps:$4 sm:$0xff] (!%p341_p9)   ;;  %v3136_v6 = vld [vmem:[%s4381_s1 + $0x20] ss:$8 sps:$4 sm:$0xff] (!%p341_p9)   ;;  %v3137_v7 = vld [vmem:[%s4381_s1 + $0x34] ss:$8 sps:$4 sm:$0xff] (!%p341_p9)  }
  0x12   : > { %521 = vmatpush1.bf16.msra.mxu0 (!%p341_p9), %v3130_v1  ;;  %v3139_v8 = vld [vmem:[%s4381_s1 + $0x30] ss:$8 sps:$4 sm:$0xff] (!%p341_p9)   ;;  %v3140_v9 = vld [vmem:[%s4381_s1 + $0x44] ss:$8 sps:$4 sm:$0xff] (!%p341_p9)   ;;  %v3603_v11 = vld [vmem:[%s4382_s2] ss:$8 sps:$4 sm:$0xff] (!%p341_p9)  }
  0x13   : > { %522 = vmatprep.subr.bf16.mxu0 (!%p341_p9), %v3131_v3  ;;  %v3598_v10 = vld [vmem:[%s4382_s2 + $0x4] ss:$8 sps:$4 sm:$0xff] (!%p341_p9)   ;;  %v3608_v12 = vld [vmem:[%s4382_s2 + $0x14] ss:$8 sps:$4 sm:$0xff] (!%p341_p9)   ;;  %v3142_v13 = vld [vmem:[%s4381_s1 + $0x40] ss:$8 sps:$4 sm:$0xff] (!%p341_p9)  }
  0x14   : > { %729 = vmatprep.subr.bf16.mxu1 (!%p341_p9), %v3598_v10  ;;  %v3618_v14 = vld [vmem:[%s4382_s2 + $0x10] ss:$8 sps:$4 sm:$0xff] (!%p341_p9)   ;;  %v3143_v15 = vld [vmem:[%s4381_s1 + $0x54] ss:$8 sps:$4 sm:$0xff] (!%p341_p9)   ;;  %v3627_v16 = vld [vmem:[%s4382_s2 + $0x24] ss:$8 sps:$4 sm:$0xff] (!%p341_p9)  }
  0x15   : > { %730 = vmatpush1.bf16.msra.mxu1 (!%p341_p9), %v3603_v11  ;;  %v3145_v17 = vld [vmem:[%s4381_s1 + $0x50] ss:$8 sps:$4 sm:$0xff] (!%p341_p9)   ;;  %v3635_v18 = vld [vmem:[%s4382_s2 + $0x20] ss:$8 sps:$4 sm:$0xff] (!%p341_p9)   ;;  %v3146_v19 = vld [vmem:[%s4381_s1 + $0x64] ss:$8 sps:$4 sm:$0xff] (!%p341_p9)  }
  0x16   : > { %523 = vmatpush1.bf16.msra.mxu0 (!%p341_p9), %v3133_v4  ;;  %731 = vmatprep.subr.bf16.mxu1 (!%p341_p9), %v3608_v12  ;;  %v3643_v20 = vld [vmem:[%s4382_s2 + $0x34] ss:$8 sps:$4 sm:$0xff] (!%p341_p9)   ;;  %v3148_v21 = vld [vmem:[%s4381_s1 + $0x60] ss:$8 sps:$4 sm:$0xff] (!%p341_p9)   ;;  %v3654_v22 = vld [vmem:[%s4382_s2 + $0x30] ss:$8 sps:$4 sm:$0xff] (!%p341_p9)  }
  0x17   : > { %s381_s16 = scalar_select %p380_p10, %s3532_s21, 1  ;;  %524 = vmatprep.subr.bf16.mxu0 %v3134_v5  ;;  %v3149_v23 = vld [vmem:[%s4381_s1 + $0x74] ss:$8 sps:$4 sm:$0xff]   ;;  %v3151_v24 = vld [vmem:[%s4381_s1 + $0x70] ss:$8 sps:$4 sm:$0xff]   ;;  %v3686_v27 = vand.u32 127, %v386_v26 }
  0x18   : > { %v3702_v48 = vshrl.u32 %v386_v26, 7  ;;  %vm725_vm3 = vcmask 523264   ;;  %vm897_vm4 = vcmask 517121   ;;  %vm991_vm5 = vcmask 518146   ;;  %s377_s23 = sand.u32 1, %s3435_s18  }
  0x19   : > { %s2975_s30 = sshll.u32 %s381_s16, 3  ;;  %732 = vmatpush1.bf16.msra.mxu1 %v3618_v14  ;;  %v388_v31 = vadd.s32 128, %v3686_v27  ;;  %v393_v36 = vand.u32 63, %v3686_v27  ;;  %vm1085_vm6 = vcmask 519171   ;;  %vm1176_vm7 = vcmask 520196   ;;  %s2879_s15 = sshll.u32 %s377_s23, 1 }
  0x1a   : > { %s3587_s22 = scalar_lea.vmem %s4380_s0, %s2975_s30  ;;  %525 = vmatpush1.bf16.msra.mxu0 %v3136_v6  ;;  %733 = vmatprep.subr.bf16.mxu1 %v3627_v16  ;;  %s3446_s30 = smov 64   ;;  %vm415_vm8 = vcmp.ge.s32.totalorder %v3686_v27, 32  ;;  %vm1271_vm10 = vcmask 521221   ;;  %vm1367_vm11 = vcmask 522246   ;;  %vm1463_vm12 = vcmask 523271  }
  0x1b   : > { %526 = vmatprep.subr.bf16.mxu0 %v3137_v7  ;;  %v3152_v25 = vld [vmem:[%s3587_s22] sm:$0xff]   ;;  %v400_v37 = vand.u32 63, %v388_v31  ;;  %vm3694_vm0 = vcmp.lt.s32.totalorder %v393_v36, 32  ;;  %vm3832_vm9 = vmpackc.low %vm415_vm8, %vm415_vm8  ;;  %vm3449_vm13 = vmmov 0   ;;  %s2972_s16 = sshll.u32 %s3532_s21, 5  ;;  %s379_s25 = scalar_lea.vmem [#allocation5], %s2879_s15 }
  0x1c   : > { %s2816_s29 = sshll.u32 %s379_s25, 4  ;;  %s4338_s14 = scalar_lea.hbm %s4391_s11, %s2972_s16  ;;  %s4340_s29 = int_to_ptr.vmem [resolvable:$true] %s2816_s29 }
  0x1d   : > { %734 = vmatpush1.bf16.msra.mxu1 %v3635_v18  ;;  %vm3698_vm1 = vcmp.lt.s32.totalorder %v400_v37, 32  ;;  %s2803_s19 = scalar_lea.sflag [#allocation6], %s377_s23  ;;  %s3381_s26 = scalar_lea.vmem %s4340_s29, 32 }
  0x1e   : > { %527 = vmatpush1.bf16.msra.mxu0 %v3139_v8  ;;  %735 = vmatprep.subr.bf16.mxu1 %v3643_v20  ;;  %p3382_p11 = scmp.ne.s32.totalorder %s4340_s29, %s3381_s26  ;;  %s3450_s21 = smov [#allocation5]  }
  0x1f   : > { %528 = vmatprep.subr.bf16.mxu0 %v3140_v9  ;;  %s3385_s22 = sshll.u32 %s3450_s21, 4  ;;  %s3386_s22 = int_to_ptr.vmem [resolvable:$false] %s3385_s22 }
  0x20   : > { %p3383_p12 = pnand %p3382_p11, %p3549_p5  ;;  %s3387_s15 = scalar_lea.vmem %s3386_s22, 64 }
  0x21   : > { %736 = vmatpush1.bf16.msra.mxu1 %v3654_v22  ;;  %p3388_p0 = scmp.lt.s32.totalorder %s4340_s29, %s3386_s22  ;;  %p3389_p1 = scmp.lt.s32.totalorder %s3387_s15, %s3381_s26 }
  0x22   : > { %529 = vmatpush1.bf16.msra.mxu0 %v3142_v13  ;;  %812 = vmatprep.subr.bf16.mxu1 %v3598_v10  ;;  %p3384_p13 = pneg %p3383_p12 }
  0x23   : > { %530 = vmatprep.subr.bf16.mxu0 %v3143_v15  ;;  %p3390_p2 = por %p3389_p1, %p3388_p0 }
  0x24   : > { %762 = vmatmul.mubr.bf16.vlgmr.msra.gmra.mrb[0].mxu1 %v3445_v2 }
  0x25   : > { %813 = vmatpush1.bf16.msra.mxu1 %v3603_v11  ;;  %844 = vmatprep.mubr.bf16.mxu1 %v3445_v2  ;;  %p3391_p3 = pnand %p3390_p2, %p3384_p13 }
  0x26   : > { %531 = vmatpush1.bf16.msra.mxu0 %v3145_v17  ;;  %814 = vmatprep.subr.bf16.mxu1 %v3608_v12 }
  0x27   : > { %532 = vmatprep.subr.bf16.mxu0 %v3146_v19 }
  0x29   : > { %815 = vmatpush1.bf16.msra.mxu1 %v3618_v14 }
  0x2a   : > { %533 = vmatpush1.bf16.msra.mxu0 %v3148_v21  ;;  %816 = vmatprep.subr.bf16.mxu1 %v3627_v16 }
  0x2b   : > { %534 = vmatprep.subr.bf16.mxu0 %v3149_v23 }
  0x2d   : > { %817 = vmatpush1.bf16.msra.mxu1 %v3635_v18 }
  0x2e   : > { %535 = vmatpush1.bf16.msra.mxu0 %v3151_v24  ;;  %818 = vmatprep.subr.bf16.mxu1 %v3643_v20 }
  0x2f   : > { %906 = vmatprep.subr.bf16.mxu0 %v3598_v10 }
  0x31   : > { %553 = vmatmul.mubr.bf16.vlgmr.msra.gmra.mrb[0].mxu0 %v3152_v25  ;;  %819 = vmatpush1.bf16.msra.mxu1 %v3654_v22 }
  0x32   : > { %907 = vmatpush1.bf16.msra.mxu0 %v3603_v11  ;;  %938 = vmatprep.mubr.bf16.mxu0 %v3445_v2 }
  0x33   : > { %908 = vmatprep.subr.bf16.mxu0 %v3608_v12  ;;  %1000 = vmatprep.subr.bf16.mxu1 %v3598_v10 }
  0x36   : > { %909 = vmatpush1.bf16.msra.mxu0 %v3618_v14 }
  0x37   : > { %910 = vmatprep.subr.bf16.mxu0 %v3627_v16 }
  0x3a   : > { %911 = vmatpush1.bf16.msra.mxu0 %v3635_v18 }
  0x3b   : > { %912 = vmatprep.subr.bf16.mxu0 %v3643_v20 }
  0x3e   : > { %913 = vmatpush1.bf16.msra.mxu0 %v3654_v22 }
  0x3f   : > { %1094 = vmatprep.subr.bf16.mxu0 %v3598_v10 }
  0xf7   : > { %v3688_v28 = vpop.f32.mrb[0].mxu1 }
  0xf8   : > { %v3690_v29 = vpop.f32.mrb[1].mxu1 }
  0xf9   : > { %v767_v30 = vpop.f32.mrb[2].mxu1 }
  0xfa   : > { %v768_v32 = vpop.f32.mrb[3].mxu1 }
 0x104   : > { %v554_v33 = vpop.f32.mrb[0].mxu0 }
 0x105   : > { %563 = vst [vmem:[#allocation2] sm:$0xff] %v554_v33  ;;  %v556_v34 = vpop.f32.mrb[1].mxu0 }
 0x106   : > { %564 = vst [vmem:[#allocation2 + $0x8] sm:$0xff] %v556_v34  ;;  %v558_v35 = vpop.f32.mrb[2].mxu0 }
 0x107   : > { %565 = vst [vmem:[#allocation2 + $0x10] sm:$0xff] %v558_v35  ;;  %v560_v38 = vpop.f32.mrb[3].mxu0 }
 0x108   : > { %566 = vst [vmem:[#allocation2 + $0x18] sm:$0xff] %v560_v38  ;;  %v3737_v38 = vsub.s32 1, %v3702_v48 }
 0x10c   : > { %v567_v41 = vld [vmem:[#allocation2] sm:$0x3]  ;;  %v591_v42 = vld [vmem:[#allocation2] sm:$0xc]  ;;  %v615_v43 = vld [vmem:[#allocation2] sm:$0x30] }
 0x10d   : > { %v583_v44 = vrot.slane %v567_v41, 2  ;;  %v607_v45 = vrot.slane %v591_v42, 6  ;;  %v631_v46 = vrot.slane %v615_v43, 2  ;;  %v639_v47 = vld [vmem:[#allocation2] sm:$0xc0] }
 0x10e   : > { %v569_v49 = vld [vmem:[#allocation2 + $0x10] sm:$0xc0]  ;;  %v593_v50 = vld [vmem:[#allocation2 + $0x10] sm:$0x30]  ;;  %v617_v51 = vld [vmem:[#allocation2 + $0x10] sm:$0xc] }
 0x10f   : > { %v573_v52 = vrot.slane %v569_v49, 6  ;;  %v587_v53 = vsel %vm3694_vm0, %v569_v49, %v583_v44  ;;  %v597_v54 = vrot.slane %v593_v50, 2  ;;  %v611_v55 = vsel %vm3694_vm0, %v593_v50, %v607_v45  ;;  %v641_v56 = vld [vmem:[#allocation2 + $0x10] sm:$0x3]  ;;  %v568_v57 = vld [vmem:[#allocation2 + $0x8] sm:$0x3] }
 0x110   : > { %589 = vst [vmem:[#allocation2 + $0x10] sm:$0xc0] %v587_v53  ;;  %613 = vst [vmem:[#allocation2 + $0x10] sm:$0x30] %v611_v55  ;;  %v621_v58 = vrot.slane %v617_v51, 6  ;;  %v635_v59 = vsel %vm3694_vm0, %v617_v51, %v631_v46  ;;  %v645_v60 = vrot.slane %v641_v56, 2 }
 0x111   : > { %v655_v61 = vrot.slane %v639_v47, 6  ;;  %v570_v62 = vld [vmem:[#allocation2 + $0x18] sm:$0xc0]  ;;  %v577_v63 = vsel %vm3694_vm0, %v567_v41, %v573_v52  ;;  %v601_v0 = vsel %vm3694_vm0, %v591_v42, %v597_v54  ;;  %637 = vst [vmem:[#allocation2 + $0x10] sm:$0xc] %v635_v59  ;;  %v584_v3 = vrot.slane %v568_v57, 2 }
 0x112   : > { %v574_v1 = vrot.slane %v570_v62, 6  ;;  %v592_v4 = vld [vmem:[#allocation2 + $0x8] sm:$0xc]  ;;  %v594_v5 = vld [vmem:[#allocation2 + $0x18] sm:$0x30]  ;;  %v625_v6 = vsel %vm3694_vm0, %v615_v43, %v621_v58  ;;  %v649_v7 = vsel %vm3694_vm0, %v639_v47, %v645_v60  ;;  %v3749_v47 = vsub.s32 0, %v3702_v48 }
 0x113   : > { %579 = vst [vmem:[#allocation2] sm:$0x3] %v577_v63  ;;  %603 = vst [vmem:[#allocation2] sm:$0xc] %v601_v0  ;;  %v659_v8 = vsel %vm3694_vm0, %v641_v56, %v655_v61  ;;  %v598_v9 = vrot.slane %v594_v5, 2  ;;  %v588_v19 = vsel %vm3698_vm1, %v570_v62, %v584_v3  ;;  %v608_v21 = vrot.slane %v592_v4, 6 }
 0x114   : > { %v616_v13 = vld [vmem:[#allocation2 + $0x8] sm:$0x30]  ;;  %v618_v15 = vld [vmem:[#allocation2 + $0x18] sm:$0xc]  ;;  %627 = vst [vmem:[#allocation2] sm:$0x30] %v625_v6  ;;  %v578_v17 = vsel %vm3698_vm1, %v568_v57, %v574_v1 }
 0x115   : > { %651 = vst [vmem:[#allocation2] sm:$0xc0] %v649_v7  ;;  %661 = vst [vmem:[#allocation2 + $0x10] sm:$0x3] %v659_v8  ;;  %v622_v23 = vrot.slane %v618_v15, 6  ;;  %v602_v26 = vsel %vm3698_vm1, %v592_v4, %v598_v9  ;;  %v632_v30 = vrot.slane %v616_v13, 2  ;;  %v612_v33 = vsel %vm3698_vm1, %v594_v5, %v608_v21 }
 0x116   : > { %v640_v24 = vld [vmem:[#allocation2 + $0x8] sm:$0xc0]  ;;  %v642_v25 = vld [vmem:[#allocation2 + $0x18] sm:$0x3]  ;;  %580 = vst [vmem:[#allocation2 + $0x8] sm:$0x3] %v578_v17 }
 0x117   : > { %590 = vst [vmem:[#allocation2 + $0x18] sm:$0xc0] %v588_v19  ;;  %v646_v31 = vrot.slane %v642_v25, 2  ;;  %v656_v32 = vrot.slane %v640_v24, 6  ;;  %604 = vst [vmem:[#allocation2 + $0x8] sm:$0xc] %v602_v26  ;;  %v626_v34 = vsel %vm3698_vm1, %v616_v13, %v622_v23  ;;  %v636_v35 = vsel %vm3698_vm1, %v618_v15, %v632_v30 }
 0x118   : > { %614 = vst [vmem:[#allocation2 + $0x18] sm:$0x30] %v612_v33  ;;  %628 = vst [vmem:[#allocation2 + $0x8] sm:$0x30] %v626_v34  ;;  %v671_v41 = vld [vmem:[%s4383_s3] sm:$0x3] }
 0x119   : > { %v650_v36 = vsel %vm3698_vm1, %v640_v24, %v646_v31  ;;  %v660_v37 = vsel %vm3698_vm1, %v642_v25, %v656_v32  ;;  %638 = vst [vmem:[#allocation2 + $0x18] sm:$0xc] %v636_v35  ;;  %v3743_v42 = vrot.slane %v671_v41, %v3737_v38  ;;  %v3752_v50 = vrot.slane %v671_v41, %v3749_v47 }
 0x11a   : > { %652 = vst [vmem:[#allocation2 + $0x8] sm:$0xc0] %v650_v36  ;;  %662 = vst [vmem:[#allocation2 + $0x18] sm:$0x3] %v660_v37  ;;  %v683_v49 = vld [vmem:[#allocation2] sm:$0x3] }
 0x11b   : > { %v770_v51 = vadd.f32 %v3688_v28, %v683_v49  ;;  %v807_v21 = vld [vmem:[#allocation2] sm:$0xc] }
 0x11d   : > { %v684_v43 = vld [vmem:[#allocation2 + $0x8] sm:$0x3]  ;;  %v772_v52 = vadd.f32 %v770_v51, %v3752_v50 }
 0x11e   : > { %v771_v44 = vadd.f32 %v3690_v29, %v684_v43  ;;  %v808_v8 = vld [vmem:[#allocation2 + $0x8] sm:$0xc] }
 0x11f   : > { %v2907_v53 = vmul.f32 -1.442695, %v772_v52 }
 0x120   : > { %v773_v45 = vadd.f32 %v771_v44, %v3743_v42 }
 0x122   : > { %3189 = vtanh.f32 %v773_v45  ;;  %v2908_v28 = vmul.f32 -1.442695, %v773_v45 }
 0x123   : > { %3191 = vpow2.f32 %v2907_v53 }
 0x12c   : > { %v3190_v46 = vpop.eup %3189 }
 0x12d   : > { %789 = vrot.lane.b32.xlu0 %v3190_v46, %s3446_s30  ;;  %v3192_v29 = vpop.eup %3191 }
 0x12e   : > { %v780_v54 = vadd.f32 1.0, %v3192_v29 }
 0x130   : > { %3193 = vrcp.f32 %v780_v54 }
 0x13a   : > { %v3194_v55 = vpop.eup %3193 }
 0x13b   : > { %v787_v48 = vmul.f32 0.0, %v3194_v55 }
 0x19f   : > { %v790_v56 = vpop.permute.xlu0 %789 }
 0x1a0   : > { %v792_v57 = vmul.f32 %v3194_v55, %v790_v56 }
 0x1a2   : > { %794 = vrot.lane.b32.xlu0 %v792_v57, %s3446_s30  ;;  %v900_v57 = vld [vmem:[#allocation2 + $0x8] sm:$0x30] }
 0x214   : > { %v795_v58 = vpop.permute.xlu0 %794 }
 0x215   : > { %v797_v59 = vadd.f32 %v795_v58, %v787_v48 }
 0x217   : > { %3195 = vtanh.f32 %v797_v59  ;;  %v877_v34 = vrot.slane %v797_v59, 6 }
 0x218   : > { %3197 = vpow2.f32 %v2908_v28 }
 0x221   : > { %v3196_v60 = vpop.eup %3195 }
 0x222   : > { %800 = vrot.lane.b32.xlu1 %v3196_v60, %s3446_s30  ;;  %v3198_v61 = vpop.eup %3197 }
 0x223   : > { %v781_v62 = vadd.f32 1.0, %v3198_v61  ;;  %v899_v61 = vld [vmem:[#allocation2] sm:$0x30] }
 0x225   : > { %3199 = vrcp.f32 %v781_v62 }
 0x22f   : > { %v3200_v63 = vpop.eup %3199 }
 0x294   : > { %v801_v0 = vpop.permute.xlu1 %800 }
 0x295   : > { %v803_v1 = vmul.f32 %v3200_v63, %v801_v0 }
 0x297   : > { %v804_v3 = vpack.c.bf16 %v803_v1, %v803_v1 }
 0x299   : > { %806 = vst.msk [vmem:[#allocation3] sm:$0x1] %vm805_vm2, %v804_v3  ;;  %2909 = vmatmul.mubr.msk.bf16.vlgmr.msra.gmra.mrb[4].mxu1 %vm725_vm3, %v804_v3 }
 0x29a   : > { %1001 = vmatpush1.bf16.msra.mxu1 %v3603_v11  ;;  %1032 = vmatprep.mubr.bf16.mxu1 %v3445_v2 }
 0x29b   : > { %1002 = vmatprep.subr.bf16.mxu1 %v3608_v12 }
 0x29e   : > { %1003 = vmatpush1.bf16.msra.mxu1 %v3618_v14 }
 0x29f   : > { %1004 = vmatprep.subr.bf16.mxu1 %v3627_v16 }
 0x2a2   : > { %1005 = vmatpush1.bf16.msra.mxu1 %v3635_v18 }
 0x2a3   : > { %1006 = vmatprep.subr.bf16.mxu1 %v3643_v20 }
 0x2a6   : > { %1007 = vmatpush1.bf16.msra.mxu1 %v3654_v22 }
 0x2a7   : > { %1183 = vmatprep.subr.bf16.mxu1 %v3598_v10 }
 0x36c   : > { %v846_v4 = vpop.f32.mrb[4].mxu1 }
 0x36d   : > { %v848_v5 = vpop.f32.mrb[5].mxu1  ;;  %v855_v19 = vrot.slane %v846_v4, 6 }
 0x36e   : > { %v856_v6 = vrot.slane %v848_v5, 6  ;;  %v850_v7 = vpop.f32.mrb[6].mxu1 }
 0x36f   : > { %v851_v9 = vpop.f32.mrb[7].mxu1  ;;  %v859_v23 = vadd.f32 %v855_v19, %v807_v21 }
 0x370   : > { %v860_v13 = vadd.f32 %v856_v6, %v808_v8 }
 0x371   : > { %v861_v24 = vadd.f32 %v859_v23, %v3752_v50 }
 0x372   : > { %v862_v15 = vadd.f32 %v860_v13, %v3743_v42 }
 0x373   : > { %v2910_v25 = vmul.f32 -1.442695, %v861_v24 }
 0x374   : > { %3201 = vtanh.f32 %v862_v15  ;;  %v2911_v43 = vmul.f32 -1.442695, %v862_v15 }
 0x375   : > { %3203 = vpow2.f32 %v2910_v25 }
 0x37e   : > { %v3202_v17 = vpop.eup %3201 }
 0x37f   : > { %881 = vrot.lane.b32.xlu1 %v3202_v17, %s3446_s30  ;;  %v3204_v26 = vpop.eup %3203 }
 0x380   : > { %v869_v30 = vadd.f32 1.0, %v3204_v26 }
 0x382   : > { %3205 = vrcp.f32 %v869_v30 }
 0x38c   : > { %v3206_v31 = vpop.eup %3205 }
 0x38d   : > { %v879_v35 = vmul.f32 %v3206_v31, %v877_v34 }
 0x3f1   : > { %v882_v32 = vpop.permute.xlu1 %881 }
 0x3f2   : > { %v884_v33 = vmul.f32 %v3206_v31, %v882_v32 }
 0x3f4   : > { %886 = vrot.lane.b32.xlu0 %v884_v33, %s3446_s30 }
 0x466   : > { %v887_v36 = vpop.permute.xlu0 %886 }
 0x467   : > { %v889_v37 = vadd.f32 %v887_v36, %v879_v35  ;;  %v994_v35 = vld [vmem:[#allocation2 + $0x8] sm:$0xc0] }
 0x469   : > { %3207 = vtanh.f32 %v889_v37  ;;  %v971_v7 = vrot.slane %v889_v37, 6 }
 0x46a   : > { %3209 = vpow2.f32 %v2911_v43 }
 0x473   : > { %v3208_v41 = vpop.eup %3207 }
 0x474   : > { %892 = vrot.lane.b32.xlu1 %v3208_v41, %s3446_s30  ;;  %v3210_v44 = vpop.eup %3209 }
 0x475   : > { %v870_v45 = vadd.f32 1.0, %v3210_v44 }
 0x477   : > { %3211 = vrcp.f32 %v870_v45  ;;  %v993_v45 = vld [vmem:[#allocation2] sm:$0xc0] }
 0x481   : > { %v3212_v46 = vpop.eup %3211 }
 0x4e6   : > { %v893_v49 = vpop.permute.xlu1 %892 }
 0x4e7   : > { %v895_v51 = vmul.f32 %v3212_v46, %v893_v49 }
 0x4e9   : > { %v896_v52 = vpack.c.bf16 %v895_v51, %v895_v51 }
 0x4eb   : > { %898 = vst.msk [vmem:[#allocation3] sm:$0x2] %vm897_vm4, %v896_v52  ;;  %v902_v53 = vrot.slane %v896_v52, 1 }
 0x4ed   : > { %2912 = vmatmul.mubr.msk.bf16.vlgmr.msra.gmra.mrb[4].mxu0 %vm725_vm3, %v902_v53 }
 0x4ee   : > { %1095 = vmatpush1.bf16.msra.mxu0 %v3603_v11  ;;  %1126 = vmatprep.mubr.bf16.mxu0 %v3445_v2 }
 0x4ef   : > { %1096 = vmatprep.subr.bf16.mxu0 %v3608_v12 }
 0x4f2   : > { %1097 = vmatpush1.bf16.msra.mxu0 %v3618_v14 }
 0x4f3   : > { %1098 = vmatprep.subr.bf16.mxu0 %v3627_v16 }
 0x4f6   : > { %1099 = vmatpush1.bf16.msra.mxu0 %v3635_v18 }
 0x4f7   : > { %1100 = vmatprep.subr.bf16.mxu0 %v3643_v20 }
 0x4fa   : > { %1101 = vmatpush1.bf16.msra.mxu0 %v3654_v22 }
 0x4fb   : > { %1279 = vmatprep.subr.bf16.mxu0 %v3598_v10 }
 0x5c0   : > { %v940_v29 = vpop.f32.mrb[4].mxu0 }
 0x5c1   : > { %v942_v54 = vpop.f32.mrb[5].mxu0  ;;  %v949_v28 = vrot.slane %v940_v29, 4 }
 0x5c2   : > { %v950_v55 = vrot.slane %v942_v54, 4  ;;  %v944_v56 = vpop.f32.mrb[6].mxu0 }
 0x5c3   : > { %v945_v48 = vpop.f32.mrb[7].mxu0  ;;  %v953_v62 = vadd.f32 %v949_v28, %v899_v61 }
 0x5c4   : > { %v954_v58 = vadd.f32 %v950_v55, %v900_v57 }
 0x5c5   : > { %v955_v63 = vadd.f32 %v953_v62, %v3752_v50 }
 0x5c6   : > { %v956_v59 = vadd.f32 %v954_v58, %v3743_v42 }
 0x5c7   : > { %v2913_v0 = vmul.f32 -1.442695, %v955_v63 }
 0x5c8   : > { %3213 = vtanh.f32 %v956_v59  ;;  %v2914_v17 = vmul.f32 -1.442695, %v956_v59 }
 0x5c9   : > { %3215 = vpow2.f32 %v2913_v0 }
 0x5d2   : > { %v3214_v60 = vpop.eup %3213 }
 0x5d3   : > { %975 = vrot.lane.b32.xlu0 %v3214_v60, %s3446_s30  ;;  %v3216_v1 = vpop.eup %3215 }
 0x5d4   : > { %v963_v3 = vadd.f32 1.0, %v3216_v1 }
 0x5d6   : > { %3217 = vrcp.f32 %v963_v3 }
 0x5e0   : > { %v3218_v4 = vpop.eup %3217 }
 0x5e1   : > { %v973_v8 = vmul.f32 %v3218_v4, %v971_v7 }
 0x645   : > { %v976_v5 = vpop.permute.xlu0 %975 }
 0x646   : > { %v978_v6 = vmul.f32 %v3218_v4, %v976_v5  ;;  %v1088_v4 = vld [vmem:[#allocation2 + $0x18] sm:$0x3] }
 0x648   : > { %980 = vrot.lane.b32.xlu1 %v978_v6, %s3446_s30 }
 0x6ba   : > { %v981_v9 = vpop.permute.xlu1 %980 }
 0x6bb   : > { %v983_v13 = vadd.f32 %v981_v9, %v973_v8 }
 0x6bd   : > { %3219 = vtanh.f32 %v983_v13  ;;  %v1065_v55 = vrot.slane %v983_v13, 6 }
 0x6be   : > { %3221 = vpow2.f32 %v2914_v17 }
 0x6c7   : > { %v3220_v15 = vpop.eup %3219 }
 0x6c8   : > { %986 = vrot.lane.b32.xlu0 %v3220_v15, %s3446_s30  ;;  %v3222_v19 = vpop.eup %3221  ;;  %v1087_v15 = vld [vmem:[#allocation2 + $0x10] sm:$0x3] }
 0x6c9   : > { %v964_v21 = vadd.f32 1.0, %v3222_v19 }
 0x6cb   : > { %3223 = vrcp.f32 %v964_v21 }
 0x6d5   : > { %v3224_v23 = vpop.eup %3223 }
 0x73a   : > { %v987_v24 = vpop.permute.xlu0 %986 }
 0x73b   : > { %v989_v25 = vmul.f32 %v3224_v23, %v987_v24 }
 0x73d   : > { %v990_v26 = vpack.c.bf16 %v989_v25, %v989_v25 }
 0x73f   : > { %992 = vst.msk [vmem:[#allocation3] sm:$0x4] %vm991_vm5, %v990_v26  ;;  %v996_v30 = vrot.slane %v990_v26, 2 }
 0x741   : > { %2915 = vmatmul.mubr.msk.bf16.vlgmr.msra.gmra.mrb[8].mxu1 %vm725_vm3, %v996_v30 }
 0x742   : > { %1184 = vmatpush1.bf16.msra.mxu1 %v3603_v11  ;;  %1215 = vmatprep.mubr.bf16.mxu1 %v3445_v2 }
 0x743   : > { %1185 = vmatprep.subr.bf16.mxu1 %v3608_v12 }
 0x746   : > { %1186 = vmatpush1.bf16.msra.mxu1 %v3618_v14 }
 0x747   : > { %1187 = vmatprep.subr.bf16.mxu1 %v3627_v16 }
 0x74a   : > { %1188 = vmatpush1.bf16.msra.mxu1 %v3635_v18 }
 0x74b   : > { %1189 = vmatprep.subr.bf16.mxu1 %v3643_v20 }
 0x74e   : > { %1190 = vmatpush1.bf16.msra.mxu1 %v3654_v22 }
 0x74f   : > { %1375 = vmatprep.subr.bf16.mxu1 %v3598_v10 }
 0x814   : > { %v1034_v31 = vpop.f32.mrb[8].mxu1 }
 0x815   : > { %v1036_v32 = vpop.f32.mrb[9].mxu1  ;;  %v1043_v44 = vrot.slane %v1034_v31, 2 }
 0x816   : > { %v1044_v33 = vrot.slane %v1036_v32, 2  ;;  %v1038_v34 = vpop.f32.mrb[10].mxu1 }
 0x817   : > { %v1039_v36 = vpop.f32.mrb[11].mxu1  ;;  %v1047_v46 = vadd.f32 %v1043_v44, %v993_v45 }
 0x818   : > { %v1048_v37 = vadd.f32 %v1044_v33, %v994_v35 }
 0x819   : > { %v1049_v49 = vadd.f32 %v1047_v46, %v3752_v50 }
 0x81a   : > { %v1050_v41 = vadd.f32 %v1048_v37, %v3743_v42 }
 0x81b   : > { %v2916_v51 = vmul.f32 -1.442695, %v1049_v49 }
 0x81c   : > { %3225 = vtanh.f32 %v1050_v41  ;;  %v2917_v59 = vmul.f32 -1.442695, %v1050_v41 }
 0x81d   : > { %3227 = vpow2.f32 %v2916_v51 }
 0x826   : > { %v3226_v43 = vpop.eup %3225 }
 0x827   : > { %1069 = vrot.lane.b32.xlu1 %v3226_v43, %s3446_s30  ;;  %v3228_v10 = vpop.eup %3227 }
 0x828   : > { %v1057_v52 = vadd.f32 1.0, %v3228_v10 }
 0x82a   : > { %3229 = vrcp.f32 %v1057_v52 }
 0x834   : > { %v3230_v53 = vpop.eup %3229 }
 0x835   : > { %v1067_v56 = vmul.f32 %v3230_v53, %v1065_v55 }
 0x899   : > { %v1070_v29 = vpop.permute.xlu1 %1069 }
 0x89a   : > { %v1072_v54 = vmul.f32 %v3230_v53, %v1070_v29 }
 0x89c   : > { %1074 = vrot.lane.b32.xlu0 %v1072_v54, %s3446_s30 }
 0x90e   : > { %v1075_v57 = vpop.permute.xlu0 %1074 }
 0x90f   : > { %v1077_v48 = vadd.f32 %v1075_v57, %v1067_v56  ;;  %v1179_v56 = vld [vmem:[#allocation2 + $0x18] sm:$0xc] }
 0x911   : > { %3231 = vtanh.f32 %v1077_v48  ;;  %v1153_v31 = vrot.slane %v1077_v48, 6 }
 0x912   : > { %3233 = vpow2.f32 %v2917_v59 }
 0x91b   : > { %v3232_v58 = vpop.eup %3231 }
 0x91c   : > { %1080 = vrot.lane.b32.xlu1 %v3232_v58, %s3446_s30  ;;  %v3234_v60 = vpop.eup %3233 }
 0x91d   : > { %v1058_v28 = vadd.f32 1.0, %v3234_v60  ;;  %v1178_v60 = vld [vmem:[#allocation2 + $0x10] sm:$0xc] }
 0x91f   : > { %3235 = vrcp.f32 %v1058_v28 }
 0x929   : > { %v3236_v61 = vpop.eup %3235 }
 0x98e   : > { %v1081_v62 = vpop.permute.xlu1 %1080 }
 0x98f   : > { %v1083_v63 = vmul.f32 %v3236_v61, %v1081_v62 }
 0x991   : > { %v1084_v0 = vpack.c.bf16 %v1083_v63, %v1083_v63 }
 0x993   : > { %1086 = vst.msk [vmem:[#allocation3] sm:$0x8] %vm1085_vm6, %v1084_v0  ;;  %v1090_v1 = vrot.slane %v1084_v0, 3 }
 0x995   : > { %2918 = vmatmul.mubr.msk.bf16.vlgmr.msra.gmra.mrb[8].mxu0 %vm725_vm3, %v1090_v1 }
 0x996   : > { %1280 = vmatpush1.bf16.msra.mxu0 %v3603_v11  ;;  %1311 = vmatprep.mubr.bf16.mxu0 %v3445_v2 }
 0x997   : > { %1281 = vmatprep.subr.bf16.mxu0 %v3608_v12 }
 0x99a   : > { %1282 = vmatpush1.bf16.msra.mxu0 %v3618_v14  ;;  %v1520_v51 = vld [vmem:[#allocation3] sm:$0x8] }
 0x99b   : > { %1283 = vmatprep.subr.bf16.mxu0 %v3627_v16  ;;  %v1523_v52 = vrot.slane %v1520_v51, 7 }
 0x99e   : > { %1284 = vmatpush1.bf16.msra.mxu0 %v3635_v18 }
 0x99f   : > { %1285 = vmatprep.subr.bf16.mxu0 %v3643_v20 }
 0x9a2   : > { %1286 = vmatpush1.bf16.msra.mxu0 %v3654_v22 }
 0xa68   : > { %v1128_v3 = vpop.f32.mrb[8].mxu0 }
 0xa69   : > { %v1130_v5 = vpop.f32.mrb[9].mxu0  ;;  %v1135_v17 = vadd.f32 %v1128_v3, %v1087_v15 }
 0xa6a   : > { %v1136_v6 = vadd.f32 %v1130_v5, %v1088_v4  ;;  %v1132_v7 = vpop.f32.mrb[10].mxu0 }
 0xa6b   : > { %v1133_v8 = vpop.f32.mrb[11].mxu0  ;;  %v1137_v19 = vadd.f32 %v1135_v17, %v3752_v50 }
 0xa6c   : > { %v1138_v9 = vadd.f32 %v1136_v6, %v3743_v42 }
 0xa6d   : > { %v2919_v21 = vmul.f32 -1.442695, %v1137_v19 }
 0xa6e   : > { %3237 = vtanh.f32 %v1138_v9  ;;  %v2920_v36 = vmul.f32 -1.442695, %v1138_v9 }
 0xa6f   : > { %3239 = vpow2.f32 %v2919_v21 }
 0xa78   : > { %v3238_v13 = vpop.eup %3237 }
 0xa79   : > { %1157 = vrot.lane.b32.xlu0 %v3238_v13, %s3446_s30  ;;  %v3240_v23 = vpop.eup %3239 }
 0xa7a   : > { %v1145_v24 = vadd.f32 1.0, %v3240_v23 }
 0xa7c   : > { %3241 = vrcp.f32 %v1145_v24 }
 0xa86   : > { %v3242_v25 = vpop.eup %3241 }
 0xa87   : > { %v1155_v32 = vmul.f32 %v3242_v25, %v1153_v31 }
 0xaeb   : > { %v1158_v26 = vpop.permute.xlu0 %1157 }
 0xaec   : > { %v1160_v30 = vmul.f32 %v3242_v25, %v1158_v26  ;;  %v1502_v26 = vld [vmem:[#allocation3] sm:$0x4] }
 0xaee   : > { %1162 = vrot.lane.b32.xlu1 %v1160_v30, %s3446_s30  ;;  %v1505_v30 = vrot.slane %v1502_v26, 5 }
 0xb60   : > { %v1163_v33 = vpop.permute.xlu1 %1162 }
 0xb61   : > { %v3820_v34 = vadd.f32 %v1163_v33, %v1155_v32 }
 0xb63   : > { %3243 = vtanh.f32 %v3820_v34  ;;  %v1248_v4 = vrot.slane %v3820_v34, 6 }
 0xb64   : > { %3245 = vpow2.f32 %v2920_v36 }
 0xb6d   : > { %v3244_v35 = vpop.eup %3243 }
 0xb6e   : > { %1168 = vrot.lane.b32.xlu0 %v3244_v35, %s3446_s30  ;;  %v3246_v37 = vpop.eup %3245 }
 0xb6f   : > { %v1146_v41 = vadd.f32 1.0, %v3246_v37 }
 0xb71   : > { %3247 = vrcp.f32 %v1146_v41 }
 0xb7b   : > { %v3248_v43 = vpop.eup %3247 }
 0xbe0   : > { %v1169_v44 = vpop.permute.xlu0 %1168 }
 0xbe1   : > { %v1171_v45 = vmul.f32 %v3248_v43, %v1169_v44 }
 0xbe3   : > { %v1172_v46 = vpack.c.bf16 %v1171_v45, %v1171_v45  ;;  %v1274_v45 = vld [vmem:[#allocation2 + $0x18] sm:$0x30] }
 0xbe5   : > { %v1174_v49 = vrot.slane %v1172_v46, 4  ;;  %2921 = vmatmul.mubr.msk.bf16.vlgmr.msra.gmra.mrb[12].mxu1 %vm725_vm3, %v1172_v46 }
 0xbe6   : > { %1376 = vmatpush1.bf16.msra.mxu1 %v3603_v11  ;;  %1407 = vmatprep.mubr.bf16.mxu1 %v3445_v2 }
 0xbe7   : > { %1177 = vst.msk [vmem:[#allocation3] sm:$0x10] %vm1176_vm7, %v1174_v49  ;;  %1377 = vmatprep.subr.bf16.mxu1 %v3608_v12 }
 0xbea   : > { %1378 = vmatpush1.bf16.msra.mxu1 %v3618_v14 }
 0xbeb   : > { %1379 = vmatprep.subr.bf16.mxu1 %v3627_v16 }
 0xbee   : > { %v1521_v53 = vld [vmem:[#allocation3] sm:$0x10]  ;;  %1380 = vmatpush1.bf16.msra.mxu1 %v3635_v18 }
 0xbef   : > { %v1525_v11 = vsel %vm3832_vm9, %v1521_v53, %v1523_v52  ;;  %v1531_v29 = vrot.slane %v1521_v53, 1  ;;  %1381 = vmatprep.subr.bf16.mxu1 %v3643_v20 }
 0xbf0   : > { %v1527_v12 = vrot.slane %v1525_v11, 1  ;;  %v1273_v11 = vld [vmem:[#allocation2 + $0x10] sm:$0x30] }
 0xbf1   : > { %v1533_v14 = vsel %vm3832_vm9, %v1520_v51, %v1531_v29 }
 0xbf2   : > { %1529 = vst.msk [vmem:[#allocation3] sm:$0x8] %vm1085_vm6, %v1527_v12  ;;  %v1535_v16 = vrot.slane %v1533_v14, 7  ;;  %1382 = vmatpush1.bf16.msra.mxu1 %v3654_v22 }
 0xbf4   : > { %1537 = vst.msk [vmem:[#allocation3] sm:$0x10] %vm1176_vm7, %v1535_v16 }
 0xcb8   : > { %v1217_v27 = vpop.f32.mrb[12].mxu1 }
 0xcb9   : > { %v1219_v54 = vpop.f32.mrb[13].mxu1  ;;  %v1226_v59 = vrot.slane %v1217_v27, 6 }
 0xcba   : > { %v1227_v18 = vrot.slane %v1219_v54, 6  ;;  %v1221_v55 = vpop.f32.mrb[14].mxu1 }
 0xcbb   : > { %v1222_v57 = vpop.f32.mrb[15].mxu1  ;;  %v1230_v28 = vadd.f32 %v1226_v59, %v1178_v60 }
 0xcbc   : > { %v1231_v48 = vadd.f32 %v1227_v18, %v1179_v56 }
 0xcbd   : > { %v1232_v22 = vadd.f32 %v1230_v28, %v3752_v50 }
 0xcbe   : > { %v1233_v20 = vadd.f32 %v1231_v48, %v3743_v42 }
 0xcbf   : > { %v2922_v61 = vmul.f32 -1.442695, %v1232_v22 }
 0xcc0   : > { %3249 = vtanh.f32 %v1233_v20  ;;  %v2923_v9 = vmul.f32 -1.442695, %v1233_v20 }
 0xcc1   : > { %3251 = vpow2.f32 %v2922_v61 }
 0xcca   : > { %v3250_v58 = vpop.eup %3249 }
 0xccb   : > { %1252 = vrot.lane.b32.xlu1 %v3250_v58, %s3446_s30  ;;  %v3252_v62 = vpop.eup %3251 }
 0xccc   : > { %v1240_v63 = vadd.f32 1.0, %v3252_v62 }
 0xcce   : > { %3253 = vrcp.f32 %v1240_v63 }
 0xcd8   : > { %v3254_v0 = vpop.eup %3253 }
 0xcd9   : > { %v1250_v5 = vmul.f32 %v3254_v0, %v1248_v4 }
 0xd3d   : > { %v1253_v1 = vpop.permute.xlu1 %1252 }
 0xd3e   : > { %v1255_v3 = vmul.f32 %v3254_v0, %v1253_v1 }
 0xd40   : > { %1257 = vrot.lane.b32.xlu0 %v1255_v3, %s3446_s30  ;;  %v1484_v3 = vld [vmem:[#allocation3] sm:$0x2] }
 0xd41   : > { %v1487_v4 = vrot.slane %v1484_v3, 3 }
 0xdb2   : > { %v1258_v6 = vpop.permute.xlu0 %1257 }
 0xdb3   : > { %v1260_v7 = vadd.f32 %v1258_v6, %v1250_v5 }
 0xdb5   : > { %3255 = vtanh.f32 %v1260_v7  ;;  %v1344_v56 = vrot.slane %v1260_v7, 6 }
 0xdb6   : > { %3257 = vpow2.f32 %v2923_v9 }
 0xdbf   : > { %v3256_v8 = vpop.eup %3255 }
 0xdc0   : > { %1263 = vrot.lane.b32.xlu1 %v3256_v8, %s3446_s30  ;;  %v3258_v13 = vpop.eup %3257 }
 0xdc1   : > { %v1241_v15 = vadd.f32 1.0, %v3258_v13 }
 0xdc3   : > { %3259 = vrcp.f32 %v1241_v15 }
 0xdcd   : > { %v3260_v17 = vpop.eup %3259 }
 0xe32   : > { %v1264_v19 = vpop.permute.xlu1 %1263 }
 0xe33   : > { %v1266_v21 = vmul.f32 %v3260_v17, %v1264_v19 }
 0xe35   : > { %v1267_v23 = vpack.c.bf16 %v1266_v21, %v1266_v21 }
 0xe37   : > { %v1269_v24 = vrot.slane %v1267_v23, 4  ;;  %v1275_v25 = vrot.slane %v1267_v23, 1  ;;  %v1370_v23 = vld [vmem:[#allocation2 + $0x18] sm:$0xc0] }
 0xe39   : > { %1272 = vst.msk [vmem:[#allocation3] sm:$0x20] %vm1271_vm10, %v1269_v24  ;;  %2924 = vmatmul.mubr.msk.bf16.vlgmr.msra.gmra.mrb[12].mxu0 %vm725_vm3, %v1275_v25 }
 0xe3a   : > { %1622 = vmatprep.mubr.bf16.mxu0 %v3445_v2 }
 0xe40   : > { %v1503_v31 = vld [vmem:[#allocation3] sm:$0x20] }
 0xe41   : > { %v1507_v32 = vsel %vm3832_vm9, %v1503_v31, %v1505_v30  ;;  %v1513_v33 = vrot.slane %v1503_v31, 3 }
 0xe42   : > { %v1509_v34 = vrot.slane %v1507_v32, 3  ;;  %v1369_v32 = vld [vmem:[#allocation2 + $0x10] sm:$0xc0] }
 0xe43   : > { %v1515_v35 = vsel %vm3832_vm9, %v1502_v26, %v1513_v33 }
 0xe44   : > { %1511 = vst.msk [vmem:[#allocation3] sm:$0x4] %vm991_vm5, %v1509_v34  ;;  %v1517_v36 = vrot.slane %v1515_v35, 5 }
 0xe46   : > { %1519 = vst.msk [vmem:[#allocation3] sm:$0x20] %vm1271_vm10, %v1517_v36 }
 0xf0c   : > { %v1313_v37 = vpop.f32.mrb[12].mxu0 }
 0xf0d   : > { %v1315_v41 = vpop.f32.mrb[13].mxu0  ;;  %v1322_v53 = vrot.slane %v1313_v37, 4 }
 0xf0e   : > { %v1323_v43 = vrot.slane %v1315_v41, 4  ;;  %v1317_v44 = vpop.f32.mrb[14].mxu0 }
 0xf0f   : > { %v1318_v46 = vpop.f32.mrb[15].mxu0  ;;  %v1326_v29 = vadd.f32 %v1322_v53, %v1273_v11  ;;  %v3170_v53 = vld [vmem:[%s4384_s4 + $0x14] ss:$8 sps:$4 sm:$0xff]   ;;  %v3168_v11 = vld [vmem:[%s4384_s4 + $0x10] ss:$8 sps:$4 sm:$0xff]  }
 0xf10   : > { %v1327_v49 = vadd.f32 %v1323_v43, %v1274_v45 }
 0xf11   : > { %v1328_v12 = vadd.f32 %v1326_v29, %v3752_v50  ;;  %v3173_v29 = vld [vmem:[%s4384_s4 + $0x24] ss:$8 sps:$4 sm:$0xff]  }
 0xf12   : > { %v1329_v51 = vadd.f32 %v1327_v49, %v3743_v42 }
 0xf13   : > { %v2925_v14 = vmul.f32 -1.442695, %v1328_v12  ;;  %v3171_v12 = vld [vmem:[%s4384_s4 + $0x20] ss:$8 sps:$4 sm:$0xff]  }
 0xf14   : > { %3261 = vtanh.f32 %v1329_v51  ;;  %v2926_v59 = vmul.f32 -1.442695, %v1329_v51 }
 0xf15   : > { %3263 = vpow2.f32 %v2925_v14  ;;  %v3176_v14 = vld [vmem:[%s4384_s4 + $0x34] ss:$8 sps:$4 sm:$0xff]  }
 0xf1e   : > { %v3262_v52 = vpop.eup %3261 }
 0xf1f   : > { %1348 = vrot.lane.b32.xlu0 %v3262_v52, %s3446_s30  ;;  %v3264_v16 = vpop.eup %3263  ;;  %v3165_v52 = vld [vmem:[%s4384_s4] ss:$8 sps:$4 sm:$0xff]  }
 0xf20   : > { %v1336_v27 = vadd.f32 1.0, %v3264_v16  ;;  %v3174_v16 = vld [vmem:[%s4384_s4 + $0x30] ss:$8 sps:$4 sm:$0xff]  }
 0xf22   : > { %3265 = vrcp.f32 %v1336_v27  ;;  %v3909_v27 = vld [vmem:[%s4385_s5 + $0x4] ss:$8 sps:$4 sm:$0xff]  }
 0xf23   : > { %1795 = vmatprep.subr.bf16.mxu1 %v3909_v27 }
 0xf2c   : > { %v3266_v54 = vpop.eup %3265 }
 0xf2d   : > { %v1346_v57 = vmul.f32 %v3266_v54, %v1344_v56  ;;  %v3933_v56 = vld [vmem:[%s4385_s5 + $0x24] ss:$8 sps:$4 sm:$0xff]  }
 0xf91   : > { %v1349_v18 = vpop.permute.xlu0 %1348 }
 0xf92   : > { %v1351_v55 = vmul.f32 %v3266_v54, %v1349_v18  ;;  %v3914_v54 = vld [vmem:[%s4385_s5] ss:$8 sps:$4 sm:$0xff]   ;;  %v3919_v18 = vld [vmem:[%s4385_s5 + $0x14] ss:$8 sps:$4 sm:$0xff]  }
 0xf94   : > { %1353 = vrot.lane.b32.xlu1 %v1351_v55, %s3446_s30  ;;  %v3926_v55 = vld [vmem:[%s4385_s5 + $0x10] ss:$8 sps:$4 sm:$0xff]  }
0x1006   : > { %v1354_v48 = vpop.permute.xlu1 %1353 }
0x1007   : > { %v1356_v20 = vadd.f32 %v1354_v48, %v1346_v57  ;;  %v3939_v57 = vld [vmem:[%s4385_s5 + $0x20] ss:$8 sps:$4 sm:$0xff]   ;;  %v3945_v48 = vld [vmem:[%s4385_s5 + $0x34] ss:$8 sps:$4 sm:$0xff]  }
0x1009   : > { %3267 = vtanh.f32 %v1356_v20 }
0x100a   : > { %3269 = vpow2.f32 %v2926_v59 }
0x1013   : > { %v3268_v58 = vpop.eup %3267 }
0x1014   : > { %1359 = vrot.lane.b32.xlu0 %v3268_v58, %s3446_s30  ;;  %v3270_v60 = vpop.eup %3269 }
0x1015   : > { %v1337_v28 = vadd.f32 1.0, %v3270_v60 }
0x1017   : > { %3271 = vrcp.f32 %v1337_v28 }
0x1021   : > { %v3272_v22 = vpop.eup %3271 }
0x1086   : > { %v1360_v61 = vpop.permute.xlu0 %1359 }
0x1087   : > { %v1362_v62 = vmul.f32 %v3272_v22, %v1360_v61 }
0x1089   : > { %v1363_v63 = vpack.c.bf16 %v1362_v62, %v1362_v62 }
0x108b   : > { %v1365_v0 = vrot.slane %v1363_v63, 4  ;;  %v1371_v1 = vrot.slane %v1363_v63, 2 }
0x108d   : > { %1368 = vst.msk [vmem:[#allocation3] sm:$0x40] %vm1367_vm11, %v1365_v0  ;;  %2927 = vmatmul.mubr.msk.bf16.vlgmr.msra.gmra.mrb[16].mxu1 %vm725_vm3, %v1371_v1  ;;  %v1465_v0 = vld [vmem:[#allocation3] sm:$0x1] }
0x108e   : > { %1827 = vmatprep.mubr.bf16.mxu1 %v3445_v2  ;;  %1796 = vmatpush1.bf16.msra.mxu1 %v3914_v54  ;;  %v1469_v1 = vrot.slane %v1465_v0, 1 }
0x108f   : > { %1797 = vmatprep.subr.bf16.mxu1 %v3919_v18 }
0x1092   : > { %1798 = vmatpush1.bf16.msra.mxu1 %v3926_v55 }
0x1093   : > { %1799 = vmatprep.subr.bf16.mxu1 %v3933_v56 }
0x1094   : > { %v1485_v5 = vld [vmem:[#allocation3] sm:$0x40] }
0x1095   : > { %v1489_v6 = vsel %vm3832_vm9, %v1485_v5, %v1487_v4  ;;  %v1495_v7 = vrot.slane %v1485_v5, 5 }
0x1096   : > { %v1491_v8 = vrot.slane %v1489_v6, 5  ;;  %1800 = vmatpush1.bf16.msra.mxu1 %v3939_v57 }
0x1097   : > { %v1497_v9 = vsel %vm3832_vm9, %v1484_v3, %v1495_v7  ;;  %1801 = vmatprep.subr.bf16.mxu1 %v3945_v48 }
0x1098   : > { %1493 = vst.msk [vmem:[#allocation3] sm:$0x2] %vm897_vm4, %v1491_v8  ;;  %v1499_v13 = vrot.slane %v1497_v9, 3 }
0x109a   : > { %1501 = vst.msk [vmem:[#allocation3] sm:$0x40] %vm1367_vm11, %v1499_v13 }
0x1160   : > { %v1409_v15 = vpop.f32.mrb[16].mxu1 }
0x1161   : > { %v1411_v17 = vpop.f32.mrb[17].mxu1  ;;  %v1418_v31 = vrot.slane %v1409_v15, 2 }
0x1162   : > { %v1419_v19 = vrot.slane %v1411_v17, 2  ;;  %v1413_v21 = vpop.f32.mrb[18].mxu1 }
0x1163   : > { %v1414_v24 = vpop.f32.mrb[19].mxu1  ;;  %v1422_v33 = vadd.f32 %v1418_v31, %v1369_v32 }
0x1164   : > { %v1423_v25 = vadd.f32 %v1419_v19, %v1370_v23 }
0x1165   : > { %v1424_v34 = vadd.f32 %v1422_v33, %v3752_v50  ;;  %v3167_v50 = vld [vmem:[%s4384_s4 + $0x4] ss:$8 sps:$4 sm:$0xff]  }
0x1166   : > { %v3875_v26 = vadd.f32 %v1423_v25, %v3743_v42  ;;  %v1440_v42 = vrot.slane %v1356_v20, 6  ;;  %1590 = vmatprep.subr.bf16.mxu0 %v3167_v50  ;;  %v3951_v20 = vld [vmem:[%s4385_s5 + $0x30] ss:$8 sps:$4 sm:$0xff]  }
0x1167   : > { %v2928_v35 = vmul.f32 -1.442695, %v1424_v34  ;;  %1591 = vmatpush1.bf16.msra.mxu0 %v3165_v52  ;;  %1802 = vmatpush1.bf16.msra.mxu1 %v3951_v20 }
0x1168   : > { %3273 = vtanh.f32 %v3875_v26  ;;  %1592 = vmatprep.subr.bf16.mxu0 %v3170_v53  ;;  %1970 = vmatprep.subr.bf16.mxu1 %v3909_v27  ;;  %v2929_v58 = vmul.f32 -1.442695, %v3875_v26 }
0x1169   : > { %3275 = vpow2.f32 %v2928_v35 }
0x116a   : > { %1828 = vmatmul.mubr.bf16.vlgmr.msra.gmra.mrb[20].mxu1 %v3445_v2 }
0x116b   : > { %1593 = vmatpush1.bf16.msra.mxu0 %v3168_v11  ;;  %1971 = vmatpush1.bf16.msra.mxu1 %v3914_v54 }
0x116c   : > { %1594 = vmatprep.subr.bf16.mxu0 %v3173_v29  ;;  %2002 = vmatprep.mubr.bf16.mxu1 %v3445_v2 }
0x116d   : > { %1972 = vmatprep.subr.bf16.mxu1 %v3919_v18 }
0x116f   : > { %1595 = vmatpush1.bf16.msra.mxu0 %v3171_v12  ;;  %1973 = vmatpush1.bf16.msra.mxu1 %v3926_v55 }
0x1170   : > { %1596 = vmatprep.subr.bf16.mxu0 %v3176_v14  ;;  %1974 = vmatprep.subr.bf16.mxu1 %v3933_v56 }
0x1172   : > { %v3274_v30 = vpop.eup %3273 }
0x1173   : > { %1444 = vrot.lane.b32.xlu1 %v3274_v30, %s3446_s30  ;;  %v3276_v36 = vpop.eup %3275  ;;  %1597 = vmatpush1.bf16.msra.mxu0 %v3174_v16 }
0x1174   : > { %v1432_v37 = vadd.f32 1.0, %v3276_v36  ;;  %1877 = vmatprep.subr.bf16.mxu0 %v3909_v27  ;;  %1975 = vmatpush1.bf16.msra.mxu1 %v3939_v57 }
0x1175   : > { %1976 = vmatprep.subr.bf16.mxu1 %v3945_v48 }
0x1176   : > { %3277 = vrcp.f32 %v1432_v37 }
0x1178   : > { %1977 = vmatpush1.bf16.msra.mxu1 %v3951_v20 }
0x1179   : > { %2156 = vmatprep.subr.bf16.mxu1 %v3909_v27 }
0x1180   : > { %v3278_v41 = vpop.eup %3277 }
0x1181   : > { %v1442_v45 = vmul.f32 %v3278_v41, %v1440_v42 }
0x11e5   : > { %v1445_v43 = vpop.permute.xlu1 %1444 }
0x11e6   : > { %v1447_v44 = vmul.f32 %v3278_v41, %v1445_v43 }
0x11e8   : > { %1449 = vrot.lane.b32.xlu0 %v1447_v44, %s3446_s30 }
0x123d   : > { %v3984_v10 = vpop.f32.mrb[20].mxu1 }
0x123e   : > { %v3986_v13 = vpop.f32.mrb[21].mxu1 }
0x123f   : > { %v1833_v15 = vpop.f32.mrb[22].mxu1 }
0x1240   : > { %v1834_v17 = vpop.f32.mrb[23].mxu1 }
0x125a   : > { %v1450_v46 = vpop.permute.xlu0 %1449 }
0x125b   : > { %v1452_v49 = vadd.f32 %v1450_v46, %v1442_v45 }
0x125d   : > { %3279 = vtanh.f32 %v1452_v49 }
0x125e   : > { %3281 = vpow2.f32 %v2929_v58 }
0x1267   : > { %v3280_v51 = vpop.eup %3279 }
0x1268   : > { %1455 = vrot.lane.b32.xlu1 %v3280_v51, %s3446_s30  ;;  %v3282_v59 = vpop.eup %3281 }
0x1269   : > { %v1433_v60 = vadd.f32 1.0, %v3282_v59 }
0x126b   : > { %3283 = vrcp.f32 %v1433_v60 }
0x1275   : > { %v3284_v28 = vpop.eup %3283 }
0x12da   : > { %v1456_v22 = vpop.permute.xlu1 %1455 }
0x12db   : > { %v1458_v61 = vmul.f32 %v3284_v28, %v1456_v22 }
0x12dd   : > { %v1459_v62 = vpack.c.bf16 %v1458_v61, %v1458_v61 }
0x12df   : > { %v1461_v63 = vrot.slane %v1459_v62, 4 }
0x12e1   : > { %1464 = vst.msk [vmem:[#allocation3] sm:$0x80] %vm1463_vm12, %v1461_v63 }
0x12e8   : > { %v1466_v3 = vld [vmem:[#allocation3] sm:$0x80] }
0x12e9   : > { %v1471_v4 = vsel %vm3832_vm9, %v1466_v3, %v1469_v1  ;;  %v1477_v5 = vrot.slane %v1466_v3, 7 }
0x12ea   : > { %v1473_v6 = vrot.slane %v1471_v4, 7 }
0x12eb   : > { %v1479_v7 = vsel %vm3832_vm9, %v1465_v0, %v1477_v5 }
0x12ec   : > { %1475 = vst.msk [vmem:[#allocation3] sm:$0x1] %vm805_vm2, %v1473_v6  ;;  %v1481_v8 = vrot.slane %v1479_v7, 1 }
0x12ee   : > { %1483 = vst.msk [vmem:[#allocation3] sm:$0x80] %vm1463_vm12, %v1481_v8 }
0x12f5   : > { %v1538_v9 = vld [vmem:[#allocation3] sm:$0xff] }
0x12f6   : > { %2938 = vmatmul.mubr.msk.bf16.vlgmr.msra.gmra.mrb[16].mxu0 %vm725_vm3, %v1538_v9 }
0x12f7   : > { %1878 = vmatpush1.bf16.msra.mxu0 %v3914_v54  ;;  %1909 = vmatprep.mubr.bf16.mxu0 %v3445_v2 }
0x12f8   : > { %1879 = vmatprep.subr.bf16.mxu0 %v3919_v18 }
0x12fb   : > { %1880 = vmatpush1.bf16.msra.mxu0 %v3926_v55 }
0x12fc   : > { %1881 = vmatprep.subr.bf16.mxu0 %v3933_v56 }
0x12ff   : > { %1882 = vmatpush1.bf16.msra.mxu0 %v3939_v57 }
0x1300   : > { %1883 = vmatprep.subr.bf16.mxu0 %v3945_v48 }
0x1303   : > { %1884 = vmatpush1.bf16.msra.mxu0 %v3951_v20 }
0x1304   : > { %2063 = vmatprep.subr.bf16.mxu0 %v3909_v27 }
0x13c9   : > { %v1624_v19 = vpop.f32.mrb[16].mxu0 }
0x13ca   : > { %1633 = vst [vmem:[#allocation2] sm:$0xff] %v1624_v19  ;;  %v1626_v21 = vpop.f32.mrb[17].mxu0 }
0x13cb   : > { %1634 = vst [vmem:[#allocation2 + $0x8] sm:$0xff] %v1626_v21  ;;  %v1628_v23 = vpop.f32.mrb[18].mxu0  ;;  %v1741_v21 = vld [vmem:[%s4386_s6] sm:$0x3] }
0x13cc   : > { %1635 = vst [vmem:[#allocation2 + $0x10] sm:$0xff] %v1628_v23  ;;  %v1630_v24 = vpop.f32.mrb[19].mxu0 }
0x13cd   : > { %1636 = vst [vmem:[#allocation2 + $0x18] sm:$0xff] %v1630_v24 }
0x13d1   : > { %v1637_v25 = vld [vmem:[#allocation2] sm:$0x3]  ;;  %v1661_v26 = vld [vmem:[#allocation2] sm:$0xc]  ;;  %v1685_v30 = vld [vmem:[#allocation2] sm:$0x30] }
0x13d2   : > { %v1653_v31 = vrot.slane %v1637_v25, 2  ;;  %v1638_v32 = vld [vmem:[#allocation2 + $0x8] sm:$0x3]  ;;  %v1677_v33 = vrot.slane %v1661_v26, 6  ;;  %v1662_v34 = vld [vmem:[#allocation2 + $0x8] sm:$0xc] }
0x13d3   : > { %v1639_v35 = vld [vmem:[#allocation2 + $0x10] sm:$0xc0]  ;;  %v1654_v36 = vrot.slane %v1638_v32, 2  ;;  %v1663_v37 = vld [vmem:[#allocation2 + $0x10] sm:$0x30]  ;;  %v1678_v41 = vrot.slane %v1662_v34, 6 }
0x13d4   : > { %v1643_v43 = vrot.slane %v1639_v35, 6  ;;  %v1640_v44 = vld [vmem:[#allocation2 + $0x18] sm:$0xc0]  ;;  %v1667_v42 = vrot.slane %v1663_v37, 2  ;;  %v1664_v45 = vld [vmem:[#allocation2 + $0x18] sm:$0x30]  ;;  %v1681_v46 = vsel %vm3694_vm0, %v1663_v37, %v1677_v33  ;;  %v1657_v49 = vsel %vm3694_vm0, %v1639_v35, %v1653_v31 }
0x13d5   : > { %v1644_v51 = vrot.slane %v1640_v44, 6  ;;  %v1668_v50 = vrot.slane %v1664_v45, 2  ;;  %v1687_v52 = vld [vmem:[#allocation2 + $0x10] sm:$0xc]  ;;  %v1701_v53 = vrot.slane %v1685_v30, 2  ;;  %v1682_v11 = vsel %vm3698_vm1, %v1664_v45, %v1678_v41 }
0x13d6   : > { %1683 = vst [vmem:[#allocation2 + $0x10] sm:$0x30] %v1681_v46  ;;  %1659 = vst [vmem:[#allocation2 + $0x10] sm:$0xc0] %v1657_v49  ;;  %v1647_v29 = vsel %vm3694_vm0, %v1637_v25, %v1643_v43  ;;  %v1671_v12 = vsel %vm3694_vm0, %v1661_v26, %v1667_v42  ;;  %v1691_v14 = vrot.slane %v1687_v52, 6  ;;  %v1658_v59 = vsel %vm3698_vm1, %v1640_v44, %v1654_v36 }
0x13d7   : > { %v1686_v16 = vld [vmem:[#allocation2 + $0x8] sm:$0x30]  ;;  %v1688_v58 = vld [vmem:[#allocation2 + $0x18] sm:$0xc]  ;;  %1684 = vst [vmem:[#allocation2 + $0x18] sm:$0x30] %v1682_v11  ;;  %v1648_v60 = vsel %vm3698_vm1, %v1638_v32, %v1644_v51  ;;  %v1672_v28 = vsel %vm3698_vm1, %v1662_v34, %v1668_v50  ;;  %v1705_v6 = vsel %vm3694_vm0, %v1687_v52, %v1701_v53  ;;  %v4024_v25 = vrot.slane %v1741_v21, %v3737_v38 }
0x13d8   : > { %1649 = vst [vmem:[#allocation2] sm:$0x3] %v1647_v29  ;;  %1673 = vst [vmem:[#allocation2] sm:$0xc] %v1671_v12  ;;  %v1692_v22 = vrot.slane %v1688_v58, 6  ;;  %v1702_v61 = vrot.slane %v1686_v16, 2  ;;  %v1695_v0 = vsel %vm3694_vm0, %v1685_v30, %v1691_v14  ;;  %v4030_v33 = vrot.slane %v1741_v21, %v3749_v47 }
0x13d9   : > { %v1709_v62 = vld [vmem:[#allocation2] sm:$0xc0]  ;;  %v1711_v63 = vld [vmem:[#allocation2 + $0x10] sm:$0x3]  ;;  %1660 = vst [vmem:[#allocation2 + $0x18] sm:$0xc0] %v1658_v59 }
0x13da   : > { %1650 = vst [vmem:[#allocation2 + $0x8] sm:$0x3] %v1648_v60  ;;  %1674 = vst [vmem:[#allocation2 + $0x8] sm:$0xc] %v1672_v28  ;;  %v1715_v1 = vrot.slane %v1711_v63, 2  ;;  %v1725_v5 = vrot.slane %v1709_v62, 6  ;;  %v1696_v7 = vsel %vm3698_vm1, %v1686_v16, %v1692_v22  ;;  %v1706_v15 = vsel %vm3698_vm1, %v1688_v58, %v1702_v61 }
0x13db   : > { %v1710_v3 = vld [vmem:[#allocation2 + $0x8] sm:$0xc0]  ;;  %v1712_v4 = vld [vmem:[#allocation2 + $0x18] sm:$0x3]  ;;  %1697 = vst [vmem:[#allocation2] sm:$0x30] %v1695_v0 }
0x13dc   : > { %v1716_v8 = vrot.slane %v1712_v4, 2  ;;  %v1726_v9 = vrot.slane %v1710_v3, 6  ;;  %1707 = vst [vmem:[#allocation2 + $0x10] sm:$0xc] %v1705_v6  ;;  %1698 = vst [vmem:[#allocation2 + $0x8] sm:$0x30] %v1696_v7  ;;  %v1719_v17 = vsel %vm3694_vm0, %v1709_v62, %v1715_v1  ;;  %v1729_v19 = vsel %vm3694_vm0, %v1711_v63, %v1725_v5 }
0x13dd   : > { %1708 = vst [vmem:[#allocation2 + $0x18] sm:$0xc] %v1706_v15  ;;  %1721 = vst [vmem:[#allocation2] sm:$0xc0] %v1719_v17 }
0x13de   : > { %v1720_v23 = vsel %vm3698_vm1, %v1710_v3, %v1716_v8  ;;  %1731 = vst [vmem:[#allocation2 + $0x10] sm:$0x3] %v1729_v19  ;;  %v1730_v24 = vsel %vm3698_vm1, %v1712_v4, %v1726_v9 }
0x13df   : > { %1722 = vst [vmem:[#allocation2 + $0x8] sm:$0xc0] %v1720_v23  ;;  %1732 = vst [vmem:[#allocation2 + $0x18] sm:$0x3] %v1730_v24  ;;  %v1753_v32 = vld [vmem:[#allocation2] sm:$0x3] }
0x13e0   : > { %v1836_v40 = vadd.f32 %v3984_v10, %v1753_v32  ;;  %v1872_v62 = vld [vmem:[#allocation2] sm:$0xc] }
0x13e1   : > { %v1754_v39 = vld [vmem:[#allocation2 + $0x8] sm:$0x3]  ;;  %v1873_v58 = vld [vmem:[#allocation2 + $0x8] sm:$0xc] }
0x13e2   : > { %v1837_v26 = vadd.f32 %v3986_v13, %v1754_v39  ;;  %v1838_v34 = vadd.f32 %v1836_v40, %v4030_v33 }
0x13e4   : > { %v1839_v30 = vadd.f32 %v1837_v26, %v4024_v25  ;;  %v2947_v35 = vmul.f32 -1.442695, %v1838_v34 }
0x13e6   : > { %3285 = vtanh.f32 %v1839_v30  ;;  %v2948_v10 = vmul.f32 -1.442695, %v1839_v30 }
0x13e7   : > { %3287 = vpow2.f32 %v2947_v35 }
0x13f0   : > { %v3286_v31 = vpop.eup %3285 }
0x13f1   : > { %1855 = vrot.lane.b32.xlu0 %v3286_v31, %s3446_s30  ;;  %v3288_v36 = vpop.eup %3287 }
0x13f2   : > { %v1846_v37 = vadd.f32 1.0, %v3288_v36 }
0x13f4   : > { %3289 = vrcp.f32 %v1846_v37 }
0x13fe   : > { %v3290_v13 = vpop.eup %3289 }
0x13ff   : > { %v1853_v44 = vmul.f32 0.0, %v3290_v13 }
0x1463   : > { %v1856_v41 = vpop.permute.xlu0 %1855 }
0x1464   : > { %v1858_v43 = vmul.f32 %v3290_v13, %v1856_v41 }
0x1466   : > { %1860 = vrot.lane.b32.xlu1 %v1858_v43, %s3446_s30 }
0x14d8   : > { %v1861_v42 = vpop.permute.xlu1 %1860 }
0x14d9   : > { %v1863_v45 = vadd.f32 %v1861_v42, %v1853_v44 }
0x14db   : > { %3291 = vtanh.f32 %v1863_v45  ;;  %v1942_v8 = vrot.slane %v1863_v45, 6  ;;  %v1964_v45 = vld [vmem:[#allocation2 + $0x8] sm:$0x30] }
0x14dc   : > { %3293 = vpow2.f32 %v2948_v10 }
0x14e5   : > { %v3292_v46 = vpop.eup %3291 }
0x14e6   : > { %1866 = vrot.lane.b32.xlu0 %v3292_v46, %s3446_s30  ;;  %v3294_v49 = vpop.eup %3293 }
0x14e7   : > { %v1847_v51 = vadd.f32 1.0, %v3294_v49 }
0x14e9   : > { %3295 = vrcp.f32 %v1847_v51 }
0x14f3   : > { %v3296_v50 = vpop.eup %3295 }
0x1558   : > { %v1867_v52 = vpop.permute.xlu0 %1866 }
0x1559   : > { %v1869_v53 = vmul.f32 %v3296_v50, %v1867_v52  ;;  %v1963_v52 = vld [vmem:[#allocation2] sm:$0x30] }
0x155b   : > { %v1870_v11 = vpack.c.bf16 %v1869_v53, %v1869_v53 }
0x155d   : > { %1871 = vst.msk [vmem:[#allocation4] sm:$0x1] %vm805_vm2, %v1870_v11  ;;  %2949 = vmatmul.mubr.msk.bf16.vlgmr.msra.gmra.mrb[20].mxu0 %vm725_vm3, %v1870_v11 }
0x155e   : > { %2064 = vmatpush1.bf16.msra.mxu0 %v3914_v54  ;;  %2095 = vmatprep.mubr.bf16.mxu0 %v3445_v2 }
0x155f   : > { %2065 = vmatprep.subr.bf16.mxu0 %v3919_v18 }
0x1562   : > { %2066 = vmatpush1.bf16.msra.mxu0 %v3926_v55 }
0x1563   : > { %2067 = vmatprep.subr.bf16.mxu0 %v3933_v56 }
0x1564   : > { %v4058_v40 = vld [vmem:[#allocation4] sm:$0x1] }
0x1565   : > { %v2524_v36 = vunpack.c.l.bf16 %v4058_v40  ;;  %v2710_v40 = vld [vmem:[%s4389_s9 + $0x10] sm:$0xff] }
0x1566   : > { %2068 = vmatpush1.bf16.msra.mxu0 %v3939_v57 }
0x1567   : > { %2069 = vmatprep.subr.bf16.mxu0 %v3945_v48 }
0x156a   : > { %2070 = vmatpush1.bf16.msra.mxu0 %v3951_v20 }
0x156b   : > { %2244 = vmatprep.subr.bf16.mxu0 %v3909_v27 }
0x1630   : > { %v1911_v29 = vpop.f32.mrb[20].mxu0 }
0x1631   : > { %v1913_v12 = vpop.f32.mrb[21].mxu0  ;;  %v1920_v61 = vrot.slane %v1911_v29, 6 }
0x1632   : > { %v1921_v14 = vrot.slane %v1913_v12, 6  ;;  %v1915_v16 = vpop.f32.mrb[22].mxu0 }
0x1633   : > { %v1916_v59 = vpop.f32.mrb[23].mxu0  ;;  %v1924_v63 = vadd.f32 %v1920_v61, %v1872_v62 }
0x1634   : > { %v1925_v60 = vadd.f32 %v1921_v14, %v1873_v58 }
0x1635   : > { %v1926_v0 = vadd.f32 %v1924_v63, %v4030_v33 }
0x1636   : > { %v1927_v28 = vadd.f32 %v1925_v60, %v4024_v25 }
0x1637   : > { %v2950_v1 = vmul.f32 -1.442695, %v1926_v0 }
0x1638   : > { %3297 = vtanh.f32 %v1927_v28  ;;  %v2951_v21 = vmul.f32 -1.442695, %v1927_v28 }
0x1639   : > { %3299 = vpow2.f32 %v2950_v1 }
0x1642   : > { %v3298_v22 = vpop.eup %3297 }
0x1643   : > { %1946 = vrot.lane.b32.xlu1 %v3298_v22, %s3446_s30  ;;  %v3300_v3 = vpop.eup %3299 }
0x1644   : > { %v1934_v4 = vadd.f32 1.0, %v3300_v3 }
0x1646   : > { %3301 = vrcp.f32 %v1934_v4 }
0x1650   : > { %v3302_v5 = vpop.eup %3301 }
0x1651   : > { %v1944_v9 = vmul.f32 %v3302_v5, %v1942_v8 }
0x16b5   : > { %v1947_v6 = vpop.permute.xlu1 %1946 }
0x16b6   : > { %v1949_v7 = vmul.f32 %v3302_v5, %v1947_v6 }
0x16b8   : > { %1951 = vrot.lane.b32.xlu0 %v1949_v7, %s3446_s30 }
0x172a   : > { %v1952_v15 = vpop.permute.xlu0 %1951 }
0x172b   : > { %v1954_v17 = vadd.f32 %v1952_v15, %v1944_v9 }
0x172d   : > { %3303 = vtanh.f32 %v1954_v17  ;;  %v2035_v60 = vrot.slane %v1954_v17, 6 }
0x172e   : > { %3305 = vpow2.f32 %v2951_v21 }
0x1737   : > { %v3304_v19 = vpop.eup %3303 }
0x1738   : > { %1957 = vrot.lane.b32.xlu1 %v3304_v19, %s3446_s30  ;;  %v3306_v23 = vpop.eup %3305 }
0x1739   : > { %v1935_v24 = vadd.f32 1.0, %v3306_v23 }
0x173b   : > { %3307 = vrcp.f32 %v1935_v24 }
0x1745   : > { %v3308_v39 = vpop.eup %3307 }
0x17aa   : > { %v1958_v26 = vpop.permute.xlu1 %1957 }
0x17ab   : > { %v1960_v30 = vmul.f32 %v3308_v39, %v1958_v26  ;;  %v2057_v39 = vld [vmem:[#allocation2 + $0x8] sm:$0xc0] }
0x17ad   : > { %v1961_v31 = vpack.c.bf16 %v1960_v30, %v1960_v30 }
0x17af   : > { %1962 = vst.msk [vmem:[#allocation4] sm:$0x2] %vm897_vm4, %v1961_v31  ;;  %v1966_v32 = vrot.slane %v1961_v31, 1 }
0x17b1   : > { %2952 = vmatmul.mubr.msk.bf16.vlgmr.msra.gmra.mrb[24].mxu1 %vm725_vm3, %v1966_v32 }
0x17b2   : > { %2157 = vmatpush1.bf16.msra.mxu1 %v3914_v54  ;;  %2188 = vmatprep.mubr.bf16.mxu1 %v3445_v2 }
0x17b3   : > { %2158 = vmatprep.subr.bf16.mxu1 %v3919_v18 }
0x17b6   : > { %2159 = vmatpush1.bf16.msra.mxu1 %v3926_v55  ;;  %v2525_v34 = vld [vmem:[#allocation4] sm:$0x2] }
0x17b7   : > { %2160 = vmatprep.subr.bf16.mxu1 %v3933_v56  ;;  %v2526_v35 = vunpack.c.l.bf16 %v2525_v34 }
0x17b9   : > { %v4062_v37 = vrot.slane %v2526_v35, 2  ;;  %v2056_v35 = vld [vmem:[#allocation2] sm:$0xc0] }
0x17ba   : > { %2161 = vmatpush1.bf16.msra.mxu1 %v3939_v57 }
0x17bb   : > { %2162 = vmatprep.subr.bf16.mxu1 %v3945_v48  ;;  %v4069_v13 = vmax.f32 %v2524_v36, %v4062_v37 }
0x17be   : > { %2163 = vmatpush1.bf16.msra.mxu1 %v3951_v20 }
0x17bf   : > { %2339 = vmatprep.subr.bf16.mxu1 %v3909_v27 }
0x1884   : > { %v2004_v41 = vpop.f32.mrb[24].mxu1 }
0x1885   : > { %v2006_v43 = vpop.f32.mrb[25].mxu1  ;;  %v2013_v50 = vrot.slane %v2004_v41, 4 }
0x1886   : > { %v2014_v44 = vrot.slane %v2006_v43, 4  ;;  %v2008_v42 = vpop.f32.mrb[26].mxu1 }
0x1887   : > { %v2009_v46 = vpop.f32.mrb[27].mxu1  ;;  %v2017_v53 = vadd.f32 %v2013_v50, %v1963_v52 }
0x1888   : > { %v2018_v10 = vadd.f32 %v2014_v44, %v1964_v45 }
0x1889   : > { %v2019_v11 = vadd.f32 %v2017_v53, %v4030_v33 }
0x188a   : > { %v2020_v49 = vadd.f32 %v2018_v10, %v4024_v25 }
0x188b   : > { %v2953_v29 = vmul.f32 -1.442695, %v2019_v11 }
0x188c   : > { %3309 = vtanh.f32 %v2020_v49  ;;  %v2954_v63 = vmul.f32 -1.442695, %v2020_v49 }
0x188d   : > { %3311 = vpow2.f32 %v2953_v29 }
0x1896   : > { %v3310_v51 = vpop.eup %3309 }
0x1897   : > { %2039 = vrot.lane.b32.xlu0 %v3310_v51, %s3446_s30  ;;  %v3312_v12 = vpop.eup %3311 }
0x1898   : > { %v2027_v14 = vadd.f32 1.0, %v3312_v12 }
0x189a   : > { %3313 = vrcp.f32 %v2027_v14 }
0x18a4   : > { %v3314_v16 = vpop.eup %3313 }
0x18a5   : > { %v2037_v28 = vmul.f32 %v3314_v16, %v2035_v60 }
0x1909   : > { %v2040_v58 = vpop.permute.xlu0 %2039 }
0x190a   : > { %v2042_v59 = vmul.f32 %v3314_v16, %v2040_v58 }
0x190c   : > { %2044 = vrot.lane.b32.xlu1 %v2042_v59, %s3446_s30 }
0x197e   : > { %v2045_v22 = vpop.permute.xlu1 %2044 }
0x197f   : > { %v2047_v61 = vadd.f32 %v2045_v22, %v2037_v28 }
0x1981   : > { %3315 = vtanh.f32 %v2047_v61  ;;  %v2128_v10 = vrot.slane %v2047_v61, 6 }
0x1982   : > { %3317 = vpow2.f32 %v2954_v63  ;;  %v2150_v63 = vld [vmem:[#allocation2 + $0x18] sm:$0x3] }
0x198b   : > { %v3316_v62 = vpop.eup %3315 }
0x198c   : > { %2050 = vrot.lane.b32.xlu0 %v3316_v62, %s3446_s30  ;;  %v3318_v0 = vpop.eup %3317 }
0x198d   : > { %v2028_v1 = vadd.f32 1.0, %v3318_v0 }
0x198f   : > { %3319 = vrcp.f32 %v2028_v1 }
0x1999   : > { %v3320_v3 = vpop.eup %3319 }
0x19fe   : > { %v2051_v4 = vpop.permute.xlu0 %2050 }
0x19ff   : > { %v2053_v5 = vmul.f32 %v3320_v3, %v2051_v4 }
0x1a01   : > { %v2054_v6 = vpack.c.bf16 %v2053_v5, %v2053_v5 }
0x1a03   : > { %2055 = vst.msk [vmem:[#allocation4] sm:$0x4] %vm991_vm5, %v2054_v6  ;;  %v2059_v7 = vrot.slane %v2054_v6, 2 }
0x1a05   : > { %2955 = vmatmul.mubr.msk.bf16.vlgmr.msra.gmra.mrb[24].mxu0 %vm725_vm3, %v2059_v7  ;;  %v2149_v7 = vld [vmem:[#allocation2 + $0x10] sm:$0x3] }
0x1a06   : > { %2245 = vmatpush1.bf16.msra.mxu0 %v3914_v54  ;;  %2276 = vmatprep.mubr.bf16.mxu0 %v3445_v2 }
0x1a07   : > { %2246 = vmatprep.subr.bf16.mxu0 %v3919_v18 }
0x1a0a   : > { %2247 = vmatpush1.bf16.msra.mxu0 %v3926_v55  ;;  %v2532_v8 = vld [vmem:[#allocation4] sm:$0x4] }
0x1a0b   : > { %2248 = vmatprep.subr.bf16.mxu0 %v3933_v56  ;;  %v2533_v9 = vunpack.c.l.bf16 %v2532_v8 }
0x1a0d   : > { %v4085_v15 = vrot.slane %v2533_v9, 4 }
0x1a0e   : > { %2249 = vmatpush1.bf16.msra.mxu0 %v3939_v57 }
0x1a0f   : > { %2250 = vmatprep.subr.bf16.mxu0 %v3945_v48  ;;  %v2538_v17 = vmax.f32 %v4069_v13, %v4085_v15 }
0x1a12   : > { %2251 = vmatpush1.bf16.msra.mxu0 %v3951_v20 }
0x1a13   : > { %2434 = vmatprep.subr.bf16.mxu0 %v3909_v27 }
0x1ad8   : > { %v2097_v19 = vpop.f32.mrb[24].mxu0 }
0x1ad9   : > { %v2099_v21 = vpop.f32.mrb[25].mxu0  ;;  %v2106_v34 = vrot.slane %v2097_v19, 2 }
0x1ada   : > { %v2107_v23 = vrot.slane %v2099_v21, 2  ;;  %v2101_v24 = vpop.f32.mrb[26].mxu0 }
0x1adb   : > { %v2102_v26 = vpop.f32.mrb[27].mxu0  ;;  %v2110_v13 = vadd.f32 %v2106_v34, %v2056_v35 }
0x1adc   : > { %v2111_v30 = vadd.f32 %v2107_v23, %v2057_v39 }
0x1add   : > { %v2112_v41 = vadd.f32 %v2110_v13, %v4030_v33 }
0x1ade   : > { %v2113_v31 = vadd.f32 %v2111_v30, %v4024_v25 }
0x1adf   : > { %v2956_v43 = vmul.f32 -1.442695, %v2112_v41 }
0x1ae0   : > { %3321 = vtanh.f32 %v2113_v31  ;;  %v2957_v53 = vmul.f32 -1.442695, %v2113_v31 }
0x1ae1   : > { %3323 = vpow2.f32 %v2956_v43 }
0x1aea   : > { %v3322_v32 = vpop.eup %3321 }
0x1aeb   : > { %2132 = vrot.lane.b32.xlu1 %v3322_v32, %s3446_s30  ;;  %v3324_v27 = vpop.eup %3323 }
0x1aec   : > { %v2120_v44 = vadd.f32 1.0, %v3324_v27 }
0x1aee   : > { %3325 = vrcp.f32 %v2120_v44 }
0x1af8   : > { %v3326_v42 = vpop.eup %3325 }
0x1af9   : > { %v2130_v49 = vmul.f32 %v3326_v42, %v2128_v10 }
0x1b5d   : > { %v2133_v45 = vpop.permute.xlu1 %2132 }
0x1b5e   : > { %v2135_v46 = vmul.f32 %v3326_v42, %v2133_v45 }
0x1b60   : > { %2137 = vrot.lane.b32.xlu0 %v2135_v46, %s3446_s30 }
0x1bd2   : > { %v2138_v51 = vpop.permute.xlu0 %2137 }
0x1bd3   : > { %v2140_v50 = vadd.f32 %v2138_v51, %v2130_v49 }
0x1bd5   : > { %3327 = vtanh.f32 %v2140_v50  ;;  %v2215_v26 = vrot.slane %v2140_v50, 6 }
0x1bd6   : > { %3329 = vpow2.f32 %v2957_v53 }
0x1bdf   : > { %v3328_v52 = vpop.eup %3327 }
0x1be0   : > { %2143 = vrot.lane.b32.xlu1 %v3328_v52, %s3446_s30  ;;  %v3330_v11 = vpop.eup %3329 }
0x1be1   : > { %v2121_v29 = vadd.f32 1.0, %v3330_v11  ;;  %v2239_v11 = vld [vmem:[#allocation2 + $0x10] sm:$0xc] }
0x1be3   : > { %3331 = vrcp.f32 %v2121_v29 }
0x1bed   : > { %v3332_v12 = vpop.eup %3331 }
0x1c52   : > { %v2144_v14 = vpop.permute.xlu1 %2143 }
0x1c53   : > { %v2146_v16 = vmul.f32 %v3332_v12, %v2144_v14 }
0x1c55   : > { %v2147_v58 = vpack.c.bf16 %v2146_v16, %v2146_v16 }
0x1c57   : > { %2148 = vst.msk [vmem:[#allocation4] sm:$0x8] %vm1085_vm6, %v2147_v58  ;;  %v2152_v59 = vrot.slane %v2147_v58, 3 }
0x1c59   : > { %2958 = vmatmul.mubr.msk.bf16.vlgmr.msra.gmra.mrb[28].mxu1 %vm725_vm3, %v2152_v59 }
0x1c5a   : > { %2340 = vmatpush1.bf16.msra.mxu1 %v3914_v54  ;;  %2371 = vmatprep.mubr.bf16.mxu1 %v3445_v2 }
0x1c5b   : > { %2341 = vmatprep.subr.bf16.mxu1 %v3919_v18 }
0x1c5e   : > { %2342 = vmatpush1.bf16.msra.mxu1 %v3926_v55  ;;  %v2539_v60 = vld [vmem:[#allocation4] sm:$0x8] }
0x1c5f   : > { %2343 = vmatprep.subr.bf16.mxu1 %v3933_v56  ;;  %v2540_v28 = vunpack.c.l.bf16 %v2539_v60 }
0x1c61   : > { %v4105_v22 = vrot.slane %v2540_v28, 6 }
0x1c62   : > { %2344 = vmatpush1.bf16.msra.mxu1 %v3939_v57 }
0x1c63   : > { %2345 = vmatprep.subr.bf16.mxu1 %v3945_v48  ;;  %v4110_v61 = vmax.f32 %v2538_v17, %v4105_v22 }
0x1c66   : > { %2346 = vmatpush1.bf16.msra.mxu1 %v3951_v20 }
0x1d2c   : > { %v2190_v62 = vpop.f32.mrb[28].mxu1 }
0x1d2d   : > { %v2192_v0 = vpop.f32.mrb[29].mxu1  ;;  %v2197_v8 = vadd.f32 %v2190_v62, %v2149_v7 }
0x1d2e   : > { %v2198_v1 = vadd.f32 %v2192_v0, %v2150_v63  ;;  %v2194_v3 = vpop.f32.mrb[30].mxu1 }
0x1d2f   : > { %v2195_v4 = vpop.f32.mrb[31].mxu1  ;;  %v2199_v9 = vadd.f32 %v2197_v8, %v4030_v33 }
0x1d30   : > { %v2200_v5 = vadd.f32 %v2198_v1, %v4024_v25 }
0x1d31   : > { %v2959_v17 = vmul.f32 -1.442695, %v2199_v9 }
0x1d32   : > { %3333 = vtanh.f32 %v2200_v5  ;;  %v2960_v35 = vmul.f32 -1.442695, %v2200_v5 }
0x1d33   : > { %3335 = vpow2.f32 %v2959_v17 }
0x1d3c   : > { %v3334_v6 = vpop.eup %3333 }
0x1d3d   : > { %2219 = vrot.lane.b32.xlu0 %v3334_v6, %s3446_s30  ;;  %v3336_v19 = vpop.eup %3335 }
0x1d3e   : > { %v2207_v21 = vadd.f32 1.0, %v3336_v19 }
0x1d40   : > { %3337 = vrcp.f32 %v2207_v21 }
0x1d4a   : > { %v3338_v23 = vpop.eup %3337 }
0x1d4b   : > { %v2217_v30 = vmul.f32 %v3338_v23, %v2215_v26 }
0x1daf   : > { %v2220_v24 = vpop.permute.xlu0 %2219 }
0x1db0   : > { %v2222_v39 = vmul.f32 %v3338_v23, %v2220_v24 }
0x1db2   : > { %2224 = vrot.lane.b32.xlu1 %v2222_v39, %s3446_s30 }
0x1e24   : > { %v2225_v31 = vpop.permute.xlu1 %2224 }
0x1e25   : > { %v2227_v32 = vadd.f32 %v2225_v31, %v2217_v30 }
0x1e27   : > { %3339 = vtanh.f32 %v2227_v32  ;;  %v2309_v28 = vrot.slane %v2227_v32, 6 }
0x1e28   : > { %3341 = vpow2.f32 %v2960_v35 }
0x1e31   : > { %v3340_v34 = vpop.eup %3339 }
0x1e32   : > { %2230 = vrot.lane.b32.xlu0 %v3340_v34, %s3446_s30  ;;  %v3342_v13 = vpop.eup %3341  ;;  %v2334_v34 = vld [vmem:[#allocation2 + $0x18] sm:$0x30] }
0x1e33   : > { %v2208_v41 = vadd.f32 1.0, %v3342_v13 }
0x1e35   : > { %3343 = vrcp.f32 %v2208_v41 }
0x1e3f   : > { %v3344_v43 = vpop.eup %3343 }
0x1ea4   : > { %v2231_v27 = vpop.permute.xlu0 %2230 }
0x1ea5   : > { %v2233_v44 = vmul.f32 %v3344_v43, %v2231_v27 }
0x1ea7   : > { %v2234_v42 = vpack.c.bf16 %v2233_v44, %v2233_v44  ;;  %v2333_v44 = vld [vmem:[#allocation2 + $0x10] sm:$0x30] }
0x1ea9   : > { %v2236_v45 = vrot.slane %v2234_v42, 4  ;;  %2961 = vmatmul.mubr.msk.bf16.vlgmr.msra.gmra.mrb[28].mxu0 %vm725_vm3, %v2234_v42 }
0x1eaa   : > { %2435 = vmatpush1.bf16.msra.mxu0 %v3914_v54  ;;  %2466 = vmatprep.mubr.bf16.mxu0 %v3445_v2 }
0x1eab   : > { %2238 = vst.msk [vmem:[#allocation4] sm:$0x10] %vm1176_vm7, %v2236_v45  ;;  %2436 = vmatprep.subr.bf16.mxu0 %v3919_v18 }
0x1eae   : > { %2437 = vmatpush1.bf16.msra.mxu0 %v3926_v55  ;;  %v2240_v55 = vld [vmem:[#allocation2 + $0x18] sm:$0xc] }
0x1eaf   : > { %2438 = vmatprep.subr.bf16.mxu0 %v3933_v56 }
0x1eb2   : > { %2439 = vmatpush1.bf16.msra.mxu0 %v3939_v57  ;;  %v2546_v46 = vld [vmem:[#allocation4] sm:$0x10] }
0x1eb3   : > { %2440 = vmatprep.subr.bf16.mxu0 %v3945_v48  ;;  %v2548_v10 = vrot.slane %v2546_v46, 4 }
0x1eb5   : > { %v4127_v49 = vunpack.c.l.bf16 %v2548_v10 }
0x1eb6   : > { %2441 = vmatpush1.bf16.msra.mxu0 %v3951_v20 }
0x1eb7   : > { %v2552_v2 = vmax.f32 %v4110_v61, %v4127_v49 }
0x1f7c   : > { %v2278_v54 = vpop.f32.mrb[28].mxu0 }
0x1f7d   : > { %v2280_v51 = vpop.f32.mrb[29].mxu0  ;;  %v2287_v48 = vrot.slane %v2278_v54, 6 }
0x1f7e   : > { %v2288_v18 = vrot.slane %v2280_v51, 6  ;;  %v2282_v50 = vpop.f32.mrb[30].mxu0 }
0x1f7f   : > { %v2283_v52 = vpop.f32.mrb[31].mxu0  ;;  %v2291_v29 = vadd.f32 %v2287_v48, %v2239_v11 }
0x1f80   : > { %v2292_v56 = vadd.f32 %v2288_v18, %v2240_v55 }
0x1f81   : > { %v2293_v20 = vadd.f32 %v2291_v29, %v4030_v33 }
0x1f82   : > { %v2294_v57 = vadd.f32 %v2292_v56, %v4024_v25 }
0x1f83   : > { %v2962_v12 = vmul.f32 -1.442695, %v2293_v20 }
0x1f84   : > { %3345 = vtanh.f32 %v2294_v57  ;;  %v2963_v1 = vmul.f32 -1.442695, %v2294_v57 }
0x1f85   : > { %3347 = vpow2.f32 %v2962_v12 }
0x1f8e   : > { %v3346_v53 = vpop.eup %3345 }
0x1f8f   : > { %2313 = vrot.lane.b32.xlu1 %v3346_v53, %s3446_s30  ;;  %v3348_v14 = vpop.eup %3347 }
0x1f90   : > { %v2301_v16 = vadd.f32 1.0, %v3348_v14 }
0x1f92   : > { %3349 = vrcp.f32 %v2301_v16 }
0x1f9c   : > { %v3350_v58 = vpop.eup %3349 }
0x1f9d   : > { %v2311_v61 = vmul.f32 %v3350_v58, %v2309_v28 }
0x2001   : > { %v2314_v59 = vpop.permute.xlu1 %2313 }
0x2002   : > { %v2316_v60 = vmul.f32 %v3350_v58, %v2314_v59 }
0x2004   : > { %2318 = vrot.lane.b32.xlu0 %v2316_v60, %s3446_s30 }
0x2076   : > { %v2319_v62 = vpop.permute.xlu0 %2318 }
0x2077   : > { %v2321_v63 = vadd.f32 %v2319_v62, %v2311_v61 }
0x2079   : > { %3351 = vtanh.f32 %v2321_v63  ;;  %v2404_v50 = vrot.slane %v2321_v63, 6 }
0x207a   : > { %3353 = vpow2.f32 %v2963_v1 }
0x2083   : > { %v3352_v0 = vpop.eup %3351 }
0x2084   : > { %2324 = vrot.lane.b32.xlu1 %v3352_v0, %s3446_s30  ;;  %v3354_v3 = vpop.eup %3353 }
0x2085   : > { %v2302_v4 = vadd.f32 1.0, %v3354_v3 }
0x2087   : > { %3355 = vrcp.f32 %v2302_v4  ;;  %v2429_v4 = vld [vmem:[#allocation2 + $0x18] sm:$0xc0] }
0x2091   : > { %v3356_v5 = vpop.eup %3355 }
0x20f6   : > { %v2325_v6 = vpop.permute.xlu1 %2324 }
0x20f7   : > { %v2327_v7 = vmul.f32 %v3356_v5, %v2325_v6 }
0x20f9   : > { %v2328_v8 = vpack.c.bf16 %v2327_v7, %v2327_v7 }
0x20fb   : > { %v2330_v9 = vrot.slane %v2328_v8, 4  ;;  %v2335_v17 = vrot.slane %v2328_v8, 1 }
0x20fd   : > { %2332 = vst.msk [vmem:[#allocation4] sm:$0x20] %vm1271_vm10, %v2330_v9  ;;  %2964 = vmatmul.mubr.msk.bf16.vlgmr.msra.gmra.mrb[32].mxu1 %vm725_vm3, %v2335_v17  ;;  %v2428_v17 = vld [vmem:[#allocation2 + $0x10] sm:$0xc0] }
0x2104   : > { %v2553_v19 = vld [vmem:[#allocation4] sm:$0x20] }
0x2105   : > { %v2555_v21 = vrot.slane %v2553_v19, 4 }
0x2107   : > { %v4139_v23 = vunpack.c.l.bf16 %v2555_v21 }
0x2109   : > { %v2559_v24 = vrot.slane %v4139_v23, 2 }
0x210b   : > { %v2562_v39 = vmax.f32 %v2552_v2, %v2559_v24 }
0x21d0   : > { %v2373_v26 = vpop.f32.mrb[32].mxu1 }
0x21d1   : > { %v2375_v30 = vpop.f32.mrb[33].mxu1  ;;  %v2382_v27 = vrot.slane %v2373_v26, 4 }
0x21d2   : > { %v2383_v31 = vrot.slane %v2375_v30, 4  ;;  %v2377_v32 = vpop.f32.mrb[34].mxu1 }
0x21d3   : > { %v2378_v35 = vpop.f32.mrb[35].mxu1  ;;  %v2386_v42 = vadd.f32 %v2382_v27, %v2333_v44  ;;  %v2592_v27 = vld [vmem:[%s4387_s7 + $0x18] sm:$0xff]  ;;  %v2589_v44 = vld [vmem:[%s4387_s7] sm:$0xff] }
0x21d4   : > { %v2387_v13 = vadd.f32 %v2383_v31, %v2334_v34 }
0x21d5   : > { %v2388_v45 = vadd.f32 %v2386_v42, %v4030_v33 }
0x21d6   : > { %v2389_v41 = vadd.f32 %v2387_v13, %v4024_v25 }
0x21d7   : > { %v2965_v46 = vmul.f32 -1.442695, %v2388_v45  ;;  %v2591_v45 = vld [vmem:[%s4387_s7 + $0x10] sm:$0xff] }
0x21d8   : > { %3357 = vtanh.f32 %v2389_v41  ;;  %v2966_v53 = vmul.f32 -1.442695, %v2389_v41 }
0x21d9   : > { %3359 = vpow2.f32 %v2965_v46  ;;  %v2594_v46 = vld [vmem:[%s4387_s7 + $0x28] sm:$0xff] }
0x21e2   : > { %v3358_v43 = vpop.eup %3357 }
0x21e3   : > { %2408 = vrot.lane.b32.xlu0 %v3358_v43, %s3446_s30  ;;  %v3360_v10 = vpop.eup %3359 }
0x21e4   : > { %v2396_v2 = vadd.f32 1.0, %v3360_v10  ;;  %v2596_v10 = vld [vmem:[%s4387_s7 + $0x38] sm:$0xff] }
0x21e6   : > { %3361 = vrcp.f32 %v2396_v2  ;;  %v3030_v2 = vpack.c.bf16 %v2591_v45, %v2589_v44 }
0x21f0   : > { %v3362_v54 = vpop.eup %3361 }
0x21f1   : > { %v2406_v55 = vmul.f32 %v3362_v54, %v2404_v50  ;;  %v2598_v50 = vld [vmem:[%s4387_s7 + $0x48] sm:$0xff] }
0x2255   : > { %v2409_v51 = vpop.permute.xlu0 %2408 }
0x2256   : > { %v2411_v18 = vmul.f32 %v3362_v54, %v2409_v51  ;;  %v3032_v54 = vpack.c.bf16 %v2596_v10, %v2594_v46  ;;  %v2593_v51 = vld [vmem:[%s4387_s7 + $0x20] sm:$0xff]  ;;  %v2530_v10 = vadd.f32 %v4062_v37, %v2524_v36  ;;  %v3448_v36 = vmov 0.0|0.0  }
0x2257   : > { %3060 = vmatprep.subr.bf16.mxu0 %v3448_v36 }
0x2258   : > { %2413 = vrot.lane.b32.xlu1 %v2411_v18, %s3446_s30  ;;  %v2595_v18 = vld [vmem:[%s4387_s7 + $0x30] sm:$0xff] }
0x22ca   : > { %v2414_v52 = vpop.permute.xlu1 %2413 }
0x22cb   : > { %v2416_v56 = vadd.f32 %v2414_v52, %v2406_v55  ;;  %v2600_v55 = vld [vmem:[%s4387_s7 + $0x58] sm:$0xff]  ;;  %v3034_v52 = vpack.c.bf16 %v2595_v18, %v2593_v51  ;;  %v2708_v51 = vld [vmem:[%s4389_s9] sm:$0xff]  ;;  %v2709_v18 = vld [vmem:[%s4389_s9 + $0x8] sm:$0xff] }
0x22cc   : > { %v3061_v37 = vpack.c.bf16 %v2709_v18, %v2708_v51 }
0x22cd   : > { %3363 = vtanh.f32 %v2416_v56 }
0x22ce   : > { %3365 = vpow2.f32 %v2966_v53  ;;  %v2599_v53 = vld [vmem:[%s4387_s7 + $0x50] sm:$0xff] }
0x22d7   : > { %v3364_v57 = vpop.eup %3363 }
0x22d8   : > { %2419 = vrot.lane.b32.xlu0 %v3364_v57, %s3446_s30  ;;  %v3366_v48 = vpop.eup %3365  ;;  %v2597_v57 = vld [vmem:[%s4387_s7 + $0x40] sm:$0xff] }
0x22d9   : > { %v2397_v11 = vadd.f32 1.0, %v3366_v48  ;;  %v2602_v48 = vld [vmem:[%s4387_s7 + $0x68] sm:$0xff] }
0x22db   : > { %3367 = vrcp.f32 %v2397_v11  ;;  %v2604_v11 = vld [vmem:[%s4387_s7 + $0x78] sm:$0xff] }
0x22e5   : > { %v3368_v29 = vpop.eup %3367 }
0x234a   : > { %v2420_v20 = vpop.permute.xlu0 %2419 }
0x234b   : > { %v2422_v12 = vmul.f32 %v3368_v29, %v2420_v20  ;;  %v3038_v29 = vpack.c.bf16 %v2599_v53, %v2597_v57  ;;  %v3040_v20 = vpack.c.bf16 %v2604_v11, %v2602_v48  ;;  %v2712_v53 = vld [vmem:[%s4389_s9 + $0x20] sm:$0xff]  ;;  %v2713_v48 = vld [vmem:[%s4389_s9 + $0x28] sm:$0xff] }
0x234d   : > { %v2423_v14 = vpack.c.bf16 %v2422_v12, %v2422_v12  ;;  %v2601_v12 = vld [vmem:[%s4387_s7 + $0x60] sm:$0xff] }
0x234f   : > { %v2425_v16 = vrot.slane %v2423_v14, 4  ;;  %v2430_v58 = vrot.slane %v2423_v14, 2  ;;  %v2603_v14 = vld [vmem:[%s4387_s7 + $0x70] sm:$0xff] }
0x2351   : > { %2427 = vst.msk [vmem:[#allocation4] sm:$0x40] %vm1367_vm11, %v2425_v16  ;;  %2967 = vmatmul.mubr.msk.bf16.vlgmr.msra.gmra.mrb[32].mxu0 %vm725_vm3, %v2430_v58  ;;  %v2606_v16 = vld [vmem:[%s4387_s7 + $0x88] sm:$0xff]  ;;  %v2608_v58 = vld [vmem:[%s4387_s7 + $0x98] sm:$0xff] }
0x2352   : > { %3062 = vmatpush3.bf16.msra.mxu0 %v3061_v37 }
0x2353   : > { %3063 = vmatprep.subr.bf16.mxu0 %v3448_v36 }
0x2358   : > { %v2563_v59 = vld [vmem:[#allocation4] sm:$0x40] }
0x2359   : > { %v2565_v60 = vrot.slane %v2563_v59, 4  ;;  %v3042_v59 = vpack.c.bf16 %v2603_v14, %v2601_v12  ;;  %v2715_v12 = vld [vmem:[%s4389_s9 + $0x38] sm:$0xff] }
0x235b   : > { %v4151_v28 = vunpack.c.l.bf16 %v2565_v60  ;;  %v3044_v60 = vpack.c.bf16 %v2608_v58, %v2606_v16  ;;  %v2718_v58 = vld [vmem:[%s4389_s9 + $0x50] sm:$0xff] }
0x235d   : > { %v2569_v61 = vrot.slane %v4151_v28, 4  ;;  %v2716_v28 = vld [vmem:[%s4389_s9 + $0x40] sm:$0xff] }
0x235f   : > { %v4156_v62 = vmax.f32 %v2562_v39, %v2569_v61 }
0x2424   : > { %v2468_v63 = vpop.f32.mrb[32].mxu0 }
0x2425   : > { %v2470_v0 = vpop.f32.mrb[33].mxu0  ;;  %v2477_v9 = vrot.slane %v2468_v63, 2  ;;  %v2605_v63 = vld [vmem:[%s4387_s7 + $0x80] sm:$0xff] }
0x2426   : > { %v2478_v1 = vrot.slane %v2470_v0, 2  ;;  %v2472_v3 = vpop.f32.mrb[34].mxu0  ;;  %v2607_v0 = vld [vmem:[%s4387_s7 + $0x90] sm:$0xff] }
0x2427   : > { %v2473_v5 = vpop.f32.mrb[35].mxu0  ;;  %v2481_v19 = vadd.f32 %v2477_v9, %v2428_v17  ;;  %v2612_v3 = vld [vmem:[%s4387_s7 + $0xb8] sm:$0xff]  ;;  %v2614_v9 = vld [vmem:[%s4387_s7 + $0xc8] sm:$0xff] }
0x2428   : > { %v2482_v6 = vadd.f32 %v2478_v1, %v2429_v4  ;;  %v2610_v1 = vld [vmem:[%s4387_s7 + $0xa8] sm:$0xff]  ;;  %v3046_v4 = vpack.c.bf16 %v2607_v0, %v2605_v63  ;;  %v2616_v17 = vld [vmem:[%s4387_s7 + $0xd8] sm:$0xff] }
0x2429   : > { %v2483_v21 = vadd.f32 %v2481_v19, %v4030_v33  ;;  %v2590_v33 = vld [vmem:[%s4387_s7 + $0x8] sm:$0xff]  ;;  %v3048_v5 = vpack.c.bf16 %v2612_v3, %v2610_v1  ;;  %v2720_v1 = vld [vmem:[%s4389_s9 + $0x60] sm:$0xff] }
0x242a   : > { %v4159_v7 = vadd.f32 %v2482_v6, %v4024_v25  ;;  %v2499_v25 = vrot.slane %v2416_v56, 6  ;;  %v3028_v42 = vpack.c.bf16 %v2592_v27, %v2590_v33  ;;  %v3036_v56 = vpack.c.bf16 %v2600_v55, %v2598_v50  ;;  %v2609_v6 = vld [vmem:[%s4387_s7 + $0xa0] sm:$0xff]  ;;  %v2721_v3 = vld [vmem:[%s4389_s9 + $0x68] sm:$0xff] }
0x242b   : > { %v2968_v39 = vmul.f32 -1.442695, %v2483_v21  ;;  %v3052_v21 = vpack.c.bf16 %v2616_v17, %v2614_v9  ;;  %v2621_v9 = vld [vmem:[%s4388_s8] sm:$0x3] }
0x242c   : > { %3369 = vtanh.f32 %v4159_v7  ;;  %3029 = vmatprep.subr.bf16.mxu1 %v3028_v42  ;;  %v2626_v17 = vrot.slane %v2621_v9, %v3749_v47 }
0x242d   : > { %3371 = vpow2.f32 %v2968_v39  ;;  %3031 = vmatpush1.bf16.msra.mxu1 %v3030_v2  ;;  %v2613_v39 = vld [vmem:[%s4387_s7 + $0xc0] sm:$0xff]  ;;  %v2537_v2 = vadd.f32 %v4085_v15, %v2530_v10  ;;  %v2711_v15 = vld [vmem:[%s4389_s9 + $0x18] sm:$0xff] }
0x242e   : > { %3033 = vmatprep.subr.bf16.mxu1 %v3032_v54 }
0x242f   : > { %v2544_v54 = vadd.f32 %v4105_v22, %v2537_v2 }
0x2431   : > { %3035 = vmatpush1.bf16.msra.mxu1 %v3034_v52  ;;  %v2551_v22 = vadd.f32 %v4127_v49, %v2544_v54  ;;  %v3064_v52 = vpack.c.bf16 %v2711_v15, %v2710_v40 }
0x2432   : > { %3037 = vmatprep.subr.bf16.mxu1 %v3036_v56 }
0x2433   : > { %v2561_v56 = vadd.f32 %v2559_v24, %v2551_v22  ;;  %3065 = vmatpush3.bf16.msra.mxu0 %v3064_v52  ;;  %v2714_v24 = vld [vmem:[%s4389_s9 + $0x30] sm:$0xff] }
0x2434   : > { %3066 = vmatprep.subr.bf16.mxu0 %v3448_v36  ;;  %v3070_v16 = vpack.c.bf16 %v2715_v12, %v2714_v24 }
0x2435   : > { %3039 = vmatpush1.bf16.msra.mxu1 %v3038_v29  ;;  %v2571_v11 = vadd.f32 %v2569_v61, %v2561_v56  ;;  %v3067_v29 = vpack.c.bf16 %v2713_v48, %v2712_v53  ;;  %v2717_v61 = vld [vmem:[%s4389_s9 + $0x48] sm:$0xff] }
0x2436   : > { %v3370_v8 = vpop.eup %3369  ;;  %3041 = vmatprep.subr.bf16.mxu1 %v3040_v20 }
0x2437   : > { %2503 = vrot.lane.b32.xlu1 %v3370_v8, %s3446_s30  ;;  %v3372_v26 = vpop.eup %3371  ;;  %v2611_v8 = vld [vmem:[%s4387_s7 + $0xb0] sm:$0xff]  ;;  %3068 = vmatpush3.bf16.msra.mxu0 %v3067_v29 }
0x2438   : > { %v2491_v30 = vadd.f32 1.0, %v3372_v26  ;;  %v3050_v19 = vpack.c.bf16 %v2611_v8, %v2609_v6  ;;  %v2615_v26 = vld [vmem:[%s4387_s7 + $0xd0] sm:$0xff]  ;;  %3069 = vmatprep.subr.bf16.mxu0 %v3448_v36  ;;  %v2723_v6 = vld [vmem:[%s4389_s9 + $0x78] sm:$0xff] }
0x2439   : > { %3043 = vmatpush1.bf16.msra.mxu1 %v3042_v59  ;;  %v2719_v59 = vld [vmem:[%s4389_s9 + $0x58] sm:$0xff] }
0x243a   : > { %3373 = vrcp.f32 %v2491_v30  ;;  %3045 = vmatprep.subr.bf16.mxu1 %v3044_v60  ;;  %v2618_v30 = vld [vmem:[%s4387_s7 + $0xe8] sm:$0xff]  ;;  %v3076_v60 = vpack.c.bf16 %v2719_v59, %v2718_v58 }
0x243b   : > { %3071 = vmatpush3.bf16.msra.mxu0 %v3070_v16 }
0x243c   : > { %3072 = vmatprep.subr.bf16.mxu0 %v3448_v36 }
0x243d   : > { %3047 = vmatpush1.bf16.msra.mxu1 %v3046_v4  ;;  %v3079_v4 = vpack.c.bf16 %v2721_v3, %v2720_v1 }
0x243e   : > { %3049 = vmatprep.subr.bf16.mxu1 %v3048_v5  ;;  %v2722_v5 = vld [vmem:[%s4389_s9 + $0x70] sm:$0xff] }
0x243f   : > { %v3082_v8 = vpack.c.bf16 %v2723_v6, %v2722_v5 }
0x2441   : > { %3051 = vmatpush1.bf16.msra.mxu1 %v3050_v19  ;;  %v2630_v19 = vrot.slane %v2621_v9, %v3737_v38 }
0x2442   : > { %3053 = vmatprep.subr.bf16.mxu1 %v3052_v21 }
0x2444   : > { %v3374_v31 = vpop.eup %3373 }
0x2445   : > { %v2501_v35 = vmul.f32 %v3374_v31, %v2499_v25  ;;  %v2617_v25 = vld [vmem:[%s4387_s7 + $0xe0] sm:$0xff] }
0x24a9   : > { %v2504_v32 = vpop.permute.xlu1 %2503 }
0x24aa   : > { %v2506_v34 = vmul.f32 %v3374_v31, %v2504_v32  ;;  %v2620_v31 = vld [vmem:[%s4387_s7 + $0xf8] sm:$0xff]  ;;  %v3054_v32 = vpack.c.bf16 %v2615_v26, %v2613_v39 }
0x24ac   : > { %2508 = vrot.lane.b32.xlu0 %v2506_v34, %s3446_s30  ;;  %v3056_v34 = vpack.c.bf16 %v2620_v31, %v2618_v30  ;;  %3055 = vmatpush1.bf16.msra.mxu1 %v3054_v32 }
0x24ae   : > { %3057 = vmatprep.subr.bf16.mxu1 %v3056_v34 }
0x251e   : > { %v2509_v13 = vpop.permute.xlu0 %2508 }
0x251f   : > { %v2511_v41 = vadd.f32 %v2509_v13, %v2501_v35  ;;  %v2619_v35 = vld [vmem:[%s4387_s7 + $0xf0] sm:$0xff] }
0x2520   : > { %v3058_v13 = vpack.c.bf16 %v2619_v35, %v2617_v25  ;;  %v2970_v35 = vld [vmem:[%s4390_s10] ss:$0 sm:$0xff] }
0x2521   : > { %3375 = vtanh.f32 %v2511_v41  ;;  %v2969_v41 = vmul.f32 -1.442695, %v4159_v7  ;;  %v3447_v7 = vmov 0.0  }
0x2522   : > { %3059 = vmatpush1.bf16.msra.mxu1 %v3058_v13  ;;  %2697 = vmatprep.mubr.f32.mxu1 %v3447_v7 }
0x2523   : > { %3377 = vpow2.f32 %v2969_v41  ;;  %3025 = vmatprep.mubr.msk.f32.mxu0 %vm3449_vm13, %v3447_v7 }
0x252b   : > { %v3376_v43 = vpop.eup %3375 }
0x252c   : > { %2514 = vrot.lane.b32.xlu1 %v3376_v43, %s3446_s30 }
0x252d   : > { %v3378_v43 = vpop.eup %3377 }
0x252e   : > { %v2492_v33 = vadd.f32 1.0, %v3378_v43 }
0x2530   : > { %3379 = vrcp.f32 %v2492_v33 }
0x253a   : > { %v3380_v27 = vpop.eup %3379 }
0x259e   : > { %v2515_v44 = vpop.permute.xlu1 %2514 }
0x259f   : > { %v2517_v42 = vmul.f32 %v3380_v27, %v2515_v44 }
0x25a1   : > { %v2518_v45 = vpack.c.bf16 %v2517_v42, %v2517_v42 }
0x25a3   : > { %v2520_v46 = vrot.slane %v2518_v45, 4 }
0x25a5   : > { %2522 = vst.msk [vmem:[#allocation4] sm:$0x80] %vm1463_vm12, %v2520_v46 }
0x25ac   : > { %v2573_v50 = vld [vmem:[#allocation4] sm:$0x80] }
0x25ad   : > { %v2575_v55 = vrot.slane %v2573_v50, 4 }
0x25af   : > { %v2577_v57 = vunpack.c.l.bf16 %v2575_v55 }
0x25b1   : > { %v2579_v49 = vrot.slane %v2577_v57, 6 }
0x25b3   : > { %v2581_v20 = vadd.f32 %v2579_v49, %v2571_v11  ;;  %v2582_v23 = vmax.f32 %v4156_v62, %v2579_v49  ;;  %v3073_v62 = vpack.c.bf16 %v2717_v61, %v2716_v28 }
0x25b5   : > { %v2583_v14 = vmul.f32 0.125, %v2581_v20  ;;  %3074 = vmatpush3.bf16.msra.mxu0 %v3073_v62 }
0x25b6   : > { %3075 = vmatprep.subr.bf16.mxu0 %v3448_v36 }
0x25b7   : > { %2585 = vrot.lane.b32.xlu0 %v2583_v14, %s3446_s30 }
0x25b9   : > { %3077 = vmatpush3.bf16.msra.mxu0 %v3076_v60 }
0x25ba   : > { %3078 = vmatprep.subr.bf16.mxu0 %v3448_v36 }
0x25bd   : > { %3080 = vmatpush3.bf16.msra.mxu0 %v3079_v4 }
0x25be   : > { %3081 = vmatprep.subr.bf16.mxu0 %v3448_v36 }
0x25c1   : > { %3083 = vmatpush3.bf16.msra.mxu0 %v3082_v8 }
0x2629   : > { %v2586_v63 = vpop.permute.xlu0 %2585 }
0x262a   : > { %v2588_v0 = vsel %vm725_vm3, %v2582_v23, %v2586_v63 }
0x262b   : > { %2698 = vmatmul.mubr.f32.vlgmr.msra.gmra.mrb[36].mxu1 %v2588_v0 }
0x26fe   : > { %v2699_v21 = vpop.f32.mrb[36].mxu1 }
0x26ff   : > { %v2700_v39 = vadd.f32 %v2699_v21, %v2626_v17  ;;  %v2701_v26 = vpop.f32.mrb[37].mxu1 }
0x2700   : > { %v2702_v30 = vadd.f32 %v2701_v26, %v2630_v19 }
0x2701   : > { %v2704_v31 = vmax.f32 %v2700_v39, 0.0 }
0x2702   : > { %v2706_v32 = vmax.f32 %v2702_v30, 0.0 }
0x2703   : > { %v2705_v34 = vadd.f32 %v2704_v31, %v2588_v0 }
0x2705   : > { %v2707_v25 = vadd.f32 %v2706_v32, %v2705_v34 }
0x2707   : > { %3026 = vmatmul.mubr.f32.vlgmr.msra.gmra.mrb[36].mxu0 %v2707_v25 }
0x27da   : > { %v2797_v38 = vpop.f32.mrb[36].mxu0 }
0x27db   : > { %v2798_v47 = vadd.f32 %v2970_v35, %v2797_v38  ;;  %v3027_v13 = vpop.f32.mrb[37].mxu0 }
0x27dd   : > { %2801 = vst [vmem:[%s379_s25] sm:$0x3] %v2798_v47 }
0x27de   : > { %3394 = shalt.err (!%p3391_p3)
}
0x27df   : > { %s3395_s23 = scalar_lea.hbm %s4338_s14, 32  ;;  %s3399_s16 = scalar_lea.hbm %s4391_s11, 64 }
0x27e0   : > { %p3396_p4 = scmp.ne.s32.totalorder %s4338_s14, %s3395_s23  ;;  %p3400_p9 = scmp.lt.u32.totalorder %s4338_s14, %s4391_s11 }
0x27e1   : > { %p3401_p10 = scmp.lt.u32.totalorder %s3399_s16, %s3395_s23  ;;  %p3403_p12 = scmp.lt.u32.totalorder %s3395_s23, %s4338_s14 }
0x27e2   : > { %p3397_p7 = pnand %p3396_p4, %p3549_p5 }
0x27e3   : > { %p3402_p11 = por %p3401_p10, %p3400_p9 }
0x27e4   : > { %p3398_p8 = pneg %p3397_p7 }
0x27e5   : > { %p3404_p13 = por %p3403_p12, %p3402_p11 }
0x27e7   : > { %p3405_p0 = pnand %p3404_p13, %p3398_p8 }
0x27e9   : > { %3408 = shalt.err (!%p3405_p0)
}
0x27ea   : > { %3084 = dma.vmem_to_hbm [thread:$0]  (%p3549_p5), %s4340_s29, 32, %s4338_s14, %s2803_s19  }
0x27eb PF: > { %p3090_p1 = scmp.ge.s32.totalorder %s3443_s20, 2  ;;  %s2828_s13 = sand.u32 1, %s3431_s17  }
0x27ec   : > { %s2829_s26 = scalar_lea.sflag [#allocation6], %s2828_s13 }
0x27ed   : > { %p3087_p2 = pnand %p3090_p1, %p3553_p6 }
0x27ef   : > { %3426 = dma.done.wait (!%p3087_p2), %s2829_s26, 32  }
0x27f0   : > { %3428 = vsyncadd (!%p3087_p2), %s2829_s26, 4294967264  ;;  %s4406_s20 = sld [smem:[#allocation9_spill]]  ;;  %s4407_s21 = sld [smem:[#allocation8_spill]] }
0x27f1   : > { %s4408_s19 = sld [smem:[#allocation10_spill]]  ;;  %s4409_s17 = smov %s3435_s18 }
0x27f6   : > { %p21_p3 = scmp.ge.s32.totalorder %s4406_s20, 4   ;;  %s4410_s18 = smov %s4407_s21 }
0x27f8   :  { %23 = sbr.rel (!%p21_p3) target bundleno = 3 (0x3), region = 99 }
0x27ff   :  { %2834 = vsyncpa [#allocation6], 1 }
0x2800   :  { %2836 = vsyncpa [#allocation6 + $0x1], 1 }

</bundles_post_ra>
